<compile_context>
chip_gen: v7x
topology: tpu7x:2x2x1
jax: 0.10.0
libtpu: 0.0.40
codegen_flags: <defaults>
</compile_context>

<pallas_src>
import functools

import jax
import jax.numpy as jnp
from jax.experimental import pallas as pl
from jax.experimental.pallas import tpu as pltpu  # noqa: F401  (TPU backend)

BN_EPS = 1e-5

# Fixed genotype (see header). The fused kernel below hard-codes this DAG.
GENOTYPE_NORMAL = [('gcn', 0), ('skip_connect', 1), ('gcn', 1), ('skip_connect', 2)]
GENOTYPE_CONCAT = [2, 3]


# ----------------------------- Pallas kernel --------------------------------


def _full_spec(shape):
    # Whole-array block (grid = ()), resident in VMEM.
    return pl.BlockSpec(shape, lambda: tuple(0 for _ in shape))


def _make_network_kernel(layers):
    """Fully fused NetworkPPI forward (stem -> `layers` cells -> head)."""

    def kernel(*refs):
        adj_ref, x_ref, w_stem_ref, ss_stem_ref = refs[0:4]
        cell_refs = refs[4:4 + 8 * layers]
        w_head_ref, b_head_ref = refs[4 + 8 * layers:6 + 8 * layers]
        o_ref = refs[6 + 8 * layers]

        # Hoisted: adjacency (bf16 in HBM) is DMA'd once, reused by every cell.
        # TODO(synk): for N >~ 2-3k the dense N^2 adjacency must be tiled
        # (grid over adj row-blocks) — v7x's 64 MiB VMEM runs out first.
        adj = adj_ref[...]

        def lin_bn(x_bf16, w_ref, ss_ref, relu):
            # Linear(no bias) -> folded BatchNorm (eval) -> optional ReLU.
            y = jnp.dot(x_bf16, w_ref[...], preferred_element_type=jnp.float32)
            y = y * ss_ref[0] + ss_ref[1]
            if relu:
                y = jnp.maximum(y, 0.0)
            return y

        # stem: MLP([in_channels, 3C], None, 'batch', bias=False) — no act.
        stem = lin_bn(x_ref[...].astype(jnp.bfloat16), w_stem_ref, ss_stem_ref,
                      relu=False)
        s0 = s1 = stem.astype(jnp.bfloat16)

        for l in range(layers):
            (w_pre0, ss_pre0, w_pre1, ss_pre1,
             w_g0, ss_g0, w_g1, ss_g1) = cell_refs[8 * l:8 * (l + 1)]
            c = w_g0.shape[1]

            # preprocess0 / preprocess1: Linear -> BN -> ReLU
            s0p = lin_bn(s0, w_pre0, ss_pre0, relu=True)   # f32 [N, C]
            s1p = lin_bn(s1, w_pre1, ss_pre1, relu=True)   # f32 [N, C]

            # gcn feature transforms, then ONE merged adjacency aggregation:
            #   agg = adj @ [ s0p@Wg0 | s1p@Wg1 ]   ([N,N] @ [N,2C])
            # Legal because gcn1 depends only on s1p (not on s2).
            xw0 = jnp.dot(s0p.astype(jnp.bfloat16), w_g0[...],
                          preferred_element_type=jnp.float32)
            xw1 = jnp.dot(s1p.astype(jnp.bfloat16), w_g1[...],
                          preferred_element_type=jnp.float32)
            xw = jnp.concatenate([xw0, xw1], axis=1).astype(jnp.bfloat16)
            agg = jnp.dot(adj, xw, preferred_element_type=jnp.float32)

            # gcn epilogues (folded BN + ReLU) on tile-aligned halves.
            g0 = jnp.maximum(agg[:, :c] * ss_g0[0] + ss_g0[1], 0.0)
            g1 = jnp.maximum(agg[:, c:] * ss_g1[0] + ss_g1[1], 0.0)

            # TODO(synk): drop_path is a training-only stochastic op
            # (self.training and drop_prob > 0); inference path skips it.
            s2 = g0 + s1p                       # gcn(s0') + skip(s1')
            s3 = g1 + s2                        # gcn(s1') + skip(s2)

            s0 = s1
            s1 = jnp.concatenate([s2, s3], axis=1).astype(jnp.bfloat16)

        # Head: mean-pool was folded into w_head at init, so this is a single
        # matmul + bias:  logits = s1 @ (W_feat + ones/C * W_pool) + b.
        logits = jnp.dot(s1, w_head_ref[...], preferred_element_type=jnp.float32)
        o_ref[...] = logits + b_head_ref[...]

    return kernel


# ------------------------------ call wrapper ---------------------------------


def network_pallas_call(params, x, adj):
    n = x.shape[0]
    layers = len(params['cells'])
    k = params['head']['w'].shape[1]

    args = [adj, x, params['stem']['w'], params['stem']['ss']]
    for cp in params['cells']:
        args += [cp['pre0']['w'], cp['pre0']['ss'],
                 cp['pre1']['w'], cp['pre1']['ss'],
                 cp['gcn0']['w'], cp['gcn0']['ss'],
                 cp['gcn1']['w'], cp['gcn1']['ss']]
    args += [params['head']['w'], params['head']['b']]

    # Advisory cost estimate for XLA's scheduler.
    flops = 2 * n * x.shape[1] * params['stem']['w'].shape[1]
    for cp in params['cells']:
        c = cp['gcn0']['w'].shape[1]
        flops += 2 * n * cp['pre0']['w'].shape[0] * c
        flops += 2 * n * cp['pre1']['w'].shape[0] * c
        flops += 2 * 2 * n * c * c          # xw0, xw1
        flops += 2 * n * n * 2 * c          # merged adjacency aggregation
    flops += 2 * n * params['head']['w'].shape[0] * k
    bytes_accessed = sum(int(a.size) * a.dtype.itemsize for a in args) + n * k * 4

    # TODO(synk): for multi-graph batches or larger N, add a leading grid axis
    # over node-row tiles with dimension_semantics=("parallel",...) so v7x's
    # second TensorCore is used; at N=128 a single TC is already underfed.
    return pl.pallas_call(
        _make_network_kernel(layers),
        out_shape=jax.ShapeDtypeStruct((n, k), jnp.float32),
        in_specs=[_full_spec(a.shape) for a in args],
        out_specs=_full_spec((n, k)),
        cost_estimate=pl.CostEstimate(flops=flops, transcendentals=0,
                                      bytes_accessed=bytes_accessed),
    )(*args)


# ------------------------------ params / glue --------------------------------


def _fold_bn(gamma, beta, mean, var):
    scale = gamma / jnp.sqrt(var + BN_EPS)
    shift = beta - mean * scale
    return scale, shift


def _mlp_params(key, cin, cout):
    k_w, k_g, k_b, k_m, k_v = jax.random.split(key, 5)
    w = jax.random.normal(k_w, (cin, cout), jnp.float32) * (1.0 / jnp.sqrt(cin))
    gamma = 1.0 + 0.1 * jax.random.normal(k_g, (cout,), jnp.float32)
    beta = 0.1 * jax.random.normal(k_b, (cout,), jnp.float32)
    mean = 0.05 * jax.random.normal(k_m, (cout,), jnp.float32)
    var = 1.0 + 0.1 * jax.random.uniform(k_v, (cout,), jnp.float32)
    scale, shift = _fold_bn(gamma, beta, mean, var)
    ss = jnp.stack([scale.reshape(1, cout), shift.reshape(1, cout)], axis=0)
    # Weights in bf16 (MXU-native); BN scale/shift stay f32.
    return {'w': w.astype(jnp.bfloat16), 'ss': ss.astype(jnp.float32)}


def init_cell_params(key, c_prev_prev, c_prev, c):
    k0, k1, k2, k3 = jax.random.split(key, 4)
    return {'pre0': _mlp_params(k0, c_prev_prev, c),
            'pre1': _mlp_params(k1, c_prev, c),
            'gcn0': _mlp_params(k2, c, c),
            'gcn1': _mlp_params(k3, c, c)}


def init_network_params(key, in_channels, c, num_classes, layers, stem_multiplier=3):
    keys = jax.random.split(key, layers + 2)
    c_curr = stem_multiplier * c
    stem = _mlp_params(keys[0], in_channels, c_curr)
    c_prev_prev, c_prev = c_curr, c_curr
    cells = []
    for i in range(layers):
        cells.append(init_cell_params(keys[1 + i], c_prev_prev, c_prev, c))
        c_prev_prev, c_prev = c_prev, len(GENOTYPE_CONCAT) * c
    k_w, k_b = jax.random.split(keys[-1], 2)
    w_cls = jax.random.normal(k_w, (c_prev + 1, num_classes), jnp.float32)
    w_cls = w_cls * (1.0 / jnp.sqrt(c_prev + 1))
    b_cls = 0.1 * jax.random.normal(k_b, (num_classes,), jnp.float32)
    # Fold the AdaptiveAvgPool1d(1) term into the classifier weights in f32,
    # then cast once to bf16:  logits = s1 @ (W_feat + ones/C * W_pool) + b.
    w_pool = w_cls[:1, :]                                   # (1, K)
    w_feat = w_cls[1:, :]                                   # (C_prev, K)
    w_comb = w_feat + (jnp.ones((c_prev, 1), jnp.float32) / c_prev) * w_pool
    head = {'w': w_comb.astype(jnp.bfloat16),               # (C_prev, K) bf16
            'b': b_cls.reshape(1, num_classes)}             # (1, K)      f32
    return {'stem': stem, 'cells': cells, 'head': head}


def build_norm_adj(edge_index, n):
    # Dense row-normalized adjacency with self loops (plain-JAX glue, not hot
    # path). Note: random-walk normalization (D^-1 A), duplicate edges add up;
    # a fixed, documented choice — not a bit-exact PyG GCNConv match.
    src = edge_index[0]
    dst = edge_index[1]
    a = jnp.zeros((n, n), jnp.float32).at[dst, src].add(1.0)
    a = a + jnp.eye(n, dtype=jnp.float32)
    deg = jnp.sum(a, axis=1, keepdims=True)
    return (a / deg).astype(jnp.bfloat16)   # bf16 once: MXU-native, half the DMA


@functools.partial(jax.jit, static_argnames=())
def network_forward(params, x, edge_index):
    n = x.shape[0]
    adj = build_norm_adj(edge_index, n)
    logits = network_pallas_call(params, x, adj)
    logits_aux = None
    return logits, logits_aux


# ---------------------------------- main ------------------------------------

if __name__ == "__main__":
    key = jax.random.PRNGKey(0)
    k_p, k_x, k_e = jax.random.split(key, 3)

    N = 128              # graph nodes
    IN_CHANNELS = 16
    C = 128              # multiple of 128 -> lane-dense tiles / stores
    LAYERS = 2
    NUM_CLASSES = 128
    E = 256              # edges

    params = init_network_params(k_p, IN_CHANNELS, C, NUM_CLASSES, LAYERS,
                                 stem_multiplier=3)

    x = jax.random.normal(k_x, (N, IN_CHANNELS), jnp.float32)
    edge_index = jax.random.randint(k_e, (2, E), 0, N, dtype=jnp.int32)

    logits, logits_aux = network_forward(params, x, edge_index)
    logits = jax.block_until_ready(logits)

    assert logits.shape == (N, NUM_CLASSES), logits.shape
    assert logits.dtype == jnp.float32
    assert logits_aux is None
    assert bool(jnp.all(jnp.isfinite(logits)))

    print("KERNEL_OK")
</pallas_src>

<mosaic_0001>
module attributes {stable_mosaic.version = 11 : i64} {
  func.func private @main(%arg0: i32) attributes {dimension_semantics = [#tpu.dimension_semantics<core_parallel>], iteration_bounds = array<i64: 2>, tpu.core_type = #tpu.core_type<sc_scalar_subcore>, window_params = []} {
    return
  }
}

module attributes {stable_mosaic.version = 11 : i64} {
  func.func private @main(%arg0: i32) attributes {dimension_semantics = [#tpu.dimension_semantics<core_parallel>], iteration_bounds = array<i64: 2>, tpu.core_type = #tpu.core_type<sc_scalar_subcore>, window_params = []} {
    return
  }
}

module attributes {stable_mosaic.version = 11 : i64} {
  func.func @kernel(%arg0: memref<128x128xbf16, #tpu.memory_space<vmem>>, %arg1: memref<128x16xf32, #tpu.memory_space<vmem>>, %arg2: memref<16x384xbf16, #tpu.memory_space<vmem>>, %arg3: memref<2x1x384xf32, #tpu.memory_space<vmem>>, %arg4: memref<384x128xbf16, #tpu.memory_space<vmem>>, %arg5: memref<2x1x128xf32, #tpu.memory_space<vmem>>, %arg6: memref<384x128xbf16, #tpu.memory_space<vmem>>, %arg7: memref<2x1x128xf32, #tpu.memory_space<vmem>>, %arg8: memref<128x128xbf16, #tpu.memory_space<vmem>>, %arg9: memref<2x1x128xf32, #tpu.memory_space<vmem>>, %arg10: memref<128x128xbf16, #tpu.memory_space<vmem>>, %arg11: memref<2x1x128xf32, #tpu.memory_space<vmem>>, %arg12: memref<384x128xbf16, #tpu.memory_space<vmem>>, %arg13: memref<2x1x128xf32, #tpu.memory_space<vmem>>, %arg14: memref<256x128xbf16, #tpu.memory_space<vmem>>, %arg15: memref<2x1x128xf32, #tpu.memory_space<vmem>>, %arg16: memref<128x128xbf16, #tpu.memory_space<vmem>>, %arg17: memref<2x1x128xf32, #tpu.memory_space<vmem>>, %arg18: memref<128x128xbf16, #tpu.memory_space<vmem>>, %arg19: memref<2x1x128xf32, #tpu.memory_space<vmem>>, %arg20: memref<256x128xbf16, #tpu.memory_space<vmem>>, %arg21: memref<1x128xf32, #tpu.memory_space<vmem>>, %arg22: memref<128x128xf32, #tpu.memory_space<vmem>>) attributes {dimension_semantics = [], scalar_prefetch = 0 : i64, scratch_operands = 0 : i64, tpu.core_type = #tpu.core_type<tc>} {
    %c0 = arith.constant 0 : index
    %c0_0 = arith.constant 0 : index
    %0 = vector.load %arg0[%c0, %c0_0] : memref<128x128xbf16, #tpu.memory_space<vmem>>, vector<128x128xbf16>
    %c0_1 = arith.constant 0 : index
    %c0_2 = arith.constant 0 : index
    %1 = vector.load %arg1[%c0_1, %c0_2] : memref<128x16xf32, #tpu.memory_space<vmem>>, vector<128x16xf32>
    %2 = arith.truncf %1 : vector<128x16xf32> to vector<128x16xbf16>
    %c0_3 = arith.constant 0 : index
    %c0_4 = arith.constant 0 : index
    %3 = vector.load %arg2[%c0_3, %c0_4] : memref<16x384xbf16, #tpu.memory_space<vmem>>, vector<16x384xbf16>
    %cst = arith.constant dense<0.000000e+00> : vector<128x384xf32>
    %4 = tpu.matmul %2, %3, %cst {dimension_numbers = #tpu.dot_dimension_numbers<[1], [0], [0], [1], [0, 0, 1, 1], [], []>} : vector<128x16xbf16>, vector<16x384xbf16>, vector<128x384xf32> -> vector<128x384xf32>
    %c0_5 = arith.constant 0 : index
    %c0_6 = arith.constant 0 : index
    %c0_7 = arith.constant 0 : index
    %5 = vector.load %arg3[%c0_5, %c0_6, %c0_7] : memref<2x1x384xf32, #tpu.memory_space<vmem>>, vector<1x1x384xf32>
    %6 = vector.shape_cast %5 : vector<1x1x384xf32> to vector<1x384xf32>
    %7 = vector.broadcast %6 : vector<1x384xf32> to vector<128x384xf32>
    %8 = arith.mulf %4, %7 : vector<128x384xf32>
    %c1 = arith.constant 1 : index
    %c0_8 = arith.constant 0 : index
    %c0_9 = arith.constant 0 : index
    %9 = vector.load %arg3[%c1, %c0_8, %c0_9] : memref<2x1x384xf32, #tpu.memory_space<vmem>>, vector<1x1x384xf32>
    %10 = vector.shape_cast %9 : vector<1x1x384xf32> to vector<1x384xf32>
    %11 = vector.broadcast %10 : vector<1x384xf32> to vector<128x384xf32>
    %12 = arith.addf %8, %11 : vector<128x384xf32>
    %13 = arith.truncf %12 : vector<128x384xf32> to vector<128x384xbf16>
    %c0_10 = arith.constant 0 : index
    %c0_11 = arith.constant 0 : index
    %14 = vector.load %arg4[%c0_10, %c0_11] : memref<384x128xbf16, #tpu.memory_space<vmem>>, vector<384x128xbf16>
    %cst_12 = arith.constant dense<0.000000e+00> : vector<128x128xf32>
    %15 = tpu.matmul %13, %14, %cst_12 {dimension_numbers = #tpu.dot_dimension_numbers<[1], [0], [0], [1], [0, 0, 1, 1], [], []>} : vector<128x384xbf16>, vector<384x128xbf16>, vector<128x128xf32> -> vector<128x128xf32>
    %c0_13 = arith.constant 0 : index
    %c0_14 = arith.constant 0 : index
    %c0_15 = arith.constant 0 : index
    %16 = vector.load %arg5[%c0_13, %c0_14, %c0_15] : memref<2x1x128xf32, #tpu.memory_space<vmem>>, vector<1x1x128xf32>
    %17 = vector.shape_cast %16 : vector<1x1x128xf32> to vector<1x128xf32>
    %18 = vector.broadcast %17 : vector<1x128xf32> to vector<128x128xf32>
    %19 = arith.mulf %15, %18 : vector<128x128xf32>
    %c1_16 = arith.constant 1 : index
    %c0_17 = arith.constant 0 : index
    %c0_18 = arith.constant 0 : index
    %20 = vector.load %arg5[%c1_16, %c0_17, %c0_18] : memref<2x1x128xf32, #tpu.memory_space<vmem>>, vector<1x1x128xf32>
    %21 = vector.shape_cast %20 : vector<1x1x128xf32> to vector<1x128xf32>
    %22 = vector.broadcast %21 : vector<1x128xf32> to vector<128x128xf32>
    %23 = arith.addf %19, %22 : vector<128x128xf32>
    %cst_19 = arith.constant 0.000000e+00 : f32
    %24 = vector.broadcast %cst_19 : f32 to vector<128x128xf32>
    %25 = arith.maximumf %23, %24 : vector<128x128xf32>
    %c0_20 = arith.constant 0 : index
    %c0_21 = arith.constant 0 : index
    %26 = vector.load %arg6[%c0_20, %c0_21] : memref<384x128xbf16, #tpu.memory_space<vmem>>, vector<384x128xbf16>
    %cst_22 = arith.constant dense<0.000000e+00> : vector<128x128xf32>
    %27 = tpu.matmul %13, %26, %cst_22 {dimension_numbers = #tpu.dot_dimension_numbers<[1], [0], [0], [1], [0, 0, 1, 1], [], []>} : vector<128x384xbf16>, vector<384x128xbf16>, vector<128x128xf32> -> vector<128x128xf32>
    %c0_23 = arith.constant 0 : index
    %c0_24 = arith.constant 0 : index
    %c0_25 = arith.constant 0 : index
    %28 = vector.load %arg7[%c0_23, %c0_24, %c0_25] : memref<2x1x128xf32, #tpu.memory_space<vmem>>, vector<1x1x128xf32>
    %29 = vector.shape_cast %28 : vector<1x1x128xf32> to vector<1x128xf32>
    %30 = vector.broadcast %29 : vector<1x128xf32> to vector<128x128xf32>
    %31 = arith.mulf %27, %30 : vector<128x128xf32>
    %c1_26 = arith.constant 1 : index
    %c0_27 = arith.constant 0 : index
    %c0_28 = arith.constant 0 : index
    %32 = vector.load %arg7[%c1_26, %c0_27, %c0_28] : memref<2x1x128xf32, #tpu.memory_space<vmem>>, vector<1x1x128xf32>
    %33 = vector.shape_cast %32 : vector<1x1x128xf32> to vector<1x128xf32>
    %34 = vector.broadcast %33 : vector<1x128xf32> to vector<128x128xf32>
    %35 = arith.addf %31, %34 : vector<128x128xf32>
    %cst_29 = arith.constant 0.000000e+00 : f32
    %36 = vector.broadcast %cst_29 : f32 to vector<128x128xf32>
    %37 = arith.maximumf %35, %36 : vector<128x128xf32>
    %38 = arith.truncf %25 : vector<128x128xf32> to vector<128x128xbf16>
    %c0_30 = arith.constant 0 : index
    %c0_31 = arith.constant 0 : index
    %39 = vector.load %arg8[%c0_30, %c0_31] : memref<128x128xbf16, #tpu.memory_space<vmem>>, vector<128x128xbf16>
    %cst_32 = arith.constant dense<0.000000e+00> : vector<128x128xf32>
    %40 = tpu.matmul %38, %39, %cst_32 {dimension_numbers = #tpu.dot_dimension_numbers<[1], [0], [0], [1], [0, 0, 1, 1], [], []>} : vector<128x128xbf16>, vector<128x128xbf16>, vector<128x128xf32> -> vector<128x128xf32>
    %41 = arith.truncf %37 : vector<128x128xf32> to vector<128x128xbf16>
    %c0_33 = arith.constant 0 : index
    %c0_34 = arith.constant 0 : index
    %42 = vector.load %arg10[%c0_33, %c0_34] : memref<128x128xbf16, #tpu.memory_space<vmem>>, vector<128x128xbf16>
    %cst_35 = arith.constant dense<0.000000e+00> : vector<128x128xf32>
    %43 = tpu.matmul %41, %42, %cst_35 {dimension_numbers = #tpu.dot_dimension_numbers<[1], [0], [0], [1], [0, 0, 1, 1], [], []>} : vector<128x128xbf16>, vector<128x128xbf16>, vector<128x128xf32> -> vector<128x128xf32>
    %44 = tpu.concatenate %40, %43 in 1 : vector<128x128xf32>, vector<128x128xf32> -> vector<128x256xf32>
    %45 = arith.truncf %44 : vector<128x256xf32> to vector<128x256xbf16>
    %cst_36 = arith.constant dense<0.000000e+00> : vector<128x256xf32>
    %46 = tpu.matmul %0, %45, %cst_36 {dimension_numbers = #tpu.dot_dimension_numbers<[1], [0], [0], [1], [0, 0, 1, 1], [], []>} : vector<128x128xbf16>, vector<128x256xbf16>, vector<128x256xf32> -> vector<128x256xf32>
    %47 = vector.extract_strided_slice %46 {offsets = [0, 0], sizes = [128, 128], strides = [1, 1]} : vector<128x256xf32> to vector<128x128xf32>
    %c0_37 = arith.constant 0 : index
    %c0_38 = arith.constant 0 : index
    %c0_39 = arith.constant 0 : index
    %48 = vector.load %arg9[%c0_37, %c0_38, %c0_39] : memref<2x1x128xf32, #tpu.memory_space<vmem>>, vector<1x1x128xf32>
    %49 = vector.shape_cast %48 : vector<1x1x128xf32> to vector<1x128xf32>
    %50 = vector.broadcast %49 : vector<1x128xf32> to vector<128x128xf32>
    %51 = arith.mulf %47, %50 : vector<128x128xf32>
    %c1_40 = arith.constant 1 : index
    %c0_41 = arith.constant 0 : index
    %c0_42 = arith.constant 0 : index
    %52 = vector.load %arg9[%c1_40, %c0_41, %c0_42] : memref<2x1x128xf32, #tpu.memory_space<vmem>>, vector<1x1x128xf32>
    %53 = vector.shape_cast %52 : vector<1x1x128xf32> to vector<1x128xf32>
    %54 = vector.broadcast %53 : vector<1x128xf32> to vector<128x128xf32>
    %55 = arith.addf %51, %54 : vector<128x128xf32>
    %cst_43 = arith.constant 0.000000e+00 : f32
    %56 = vector.broadcast %cst_43 : f32 to vector<128x128xf32>
    %57 = arith.maximumf %55, %56 : vector<128x128xf32>
    %58 = vector.extract_strided_slice %46 {offsets = [0, 128], sizes = [128, 128], strides = [1, 1]} : vector<128x256xf32> to vector<128x128xf32>
    %c0_44 = arith.constant 0 : index
    %c0_45 = arith.constant 0 : index
    %c0_46 = arith.constant 0 : index
    %59 = vector.load %arg11[%c0_44, %c0_45, %c0_46] : memref<2x1x128xf32, #tpu.memory_space<vmem>>, vector<1x1x128xf32>
    %60 = vector.shape_cast %59 : vector<1x1x128xf32> to vector<1x128xf32>
    %61 = vector.broadcast %60 : vector<1x128xf32> to vector<128x128xf32>
    %62 = arith.mulf %58, %61 : vector<128x128xf32>
    %c1_47 = arith.constant 1 : index
    %c0_48 = arith.constant 0 : index
    %c0_49 = arith.constant 0 : index
    %63 = vector.load %arg11[%c1_47, %c0_48, %c0_49] : memref<2x1x128xf32, #tpu.memory_space<vmem>>, vector<1x1x128xf32>
    %64 = vector.shape_cast %63 : vector<1x1x128xf32> to vector<1x128xf32>
    %65 = vector.broadcast %64 : vector<1x128xf32> to vector<128x128xf32>
    %66 = arith.addf %62, %65 : vector<128x128xf32>
    %cst_50 = arith.constant 0.000000e+00 : f32
    %67 = vector.broadcast %cst_50 : f32 to vector<128x128xf32>
    %68 = arith.maximumf %66, %67 : vector<128x128xf32>
    %69 = arith.addf %57, %37 : vector<128x128xf32>
    %70 = arith.addf %68, %69 : vector<128x128xf32>
    %71 = tpu.concatenate %69, %70 in 1 : vector<128x128xf32>, vector<128x128xf32> -> vector<128x256xf32>
    %72 = arith.truncf %71 : vector<128x256xf32> to vector<128x256xbf16>
    %c0_51 = arith.constant 0 : index
    %c0_52 = arith.constant 0 : index
    %73 = vector.load %arg12[%c0_51, %c0_52] : memref<384x128xbf16, #tpu.memory_space<vmem>>, vector<384x128xbf16>
    %cst_53 = arith.constant dense<0.000000e+00> : vector<128x128xf32>
    %74 = tpu.matmul %13, %73, %cst_53 {dimension_numbers = #tpu.dot_dimension_numbers<[1], [0], [0], [1], [0, 0, 1, 1], [], []>} : vector<128x384xbf16>, vector<384x128xbf16>, vector<128x128xf32> -> vector<128x128xf32>
    %c0_54 = arith.constant 0 : index
    %c0_55 = arith.constant 0 : index
    %c0_56 = arith.constant 0 : index
    %75 = vector.load %arg13[%c0_54, %c0_55, %c0_56] : memref<2x1x128xf32, #tpu.memory_space<vmem>>, vector<1x1x128xf32>
    %76 = vector.shape_cast %75 : vector<1x1x128xf32> to vector<1x128xf32>
    %77 = vector.broadcast %76 : vector<1x128xf32> to vector<128x128xf32>
    %78 = arith.mulf %74, %77 : vector<128x128xf32>
    %c1_57 = arith.constant 1 : index
    %c0_58 = arith.constant 0 : index
    %c0_59 = arith.constant 0 : index
    %79 = vector.load %arg13[%c1_57, %c0_58, %c0_59] : memref<2x1x128xf32, #tpu.memory_space<vmem>>, vector<1x1x128xf32>
    %80 = vector.shape_cast %79 : vector<1x1x128xf32> to vector<1x128xf32>
    %81 = vector.broadcast %80 : vector<1x128xf32> to vector<128x128xf32>
    %82 = arith.addf %78, %81 : vector<128x128xf32>
    %cst_60 = arith.constant 0.000000e+00 : f32
    %83 = vector.broadcast %cst_60 : f32 to vector<128x128xf32>
    %84 = arith.maximumf %82, %83 : vector<128x128xf32>
    %c0_61 = arith.constant 0 : index
    %c0_62 = arith.constant 0 : index
    %85 = vector.load %arg14[%c0_61, %c0_62] : memref<256x128xbf16, #tpu.memory_space<vmem>>, vector<256x128xbf16>
    %cst_63 = arith.constant dense<0.000000e+00> : vector<128x128xf32>
    %86 = tpu.matmul %72, %85, %cst_63 {dimension_numbers = #tpu.dot_dimension_numbers<[1], [0], [0], [1], [0, 0, 1, 1], [], []>} : vector<128x256xbf16>, vector<256x128xbf16>, vector<128x128xf32> -> vector<128x128xf32>
    %c0_64 = arith.constant 0 : index
    %c0_65 = arith.constant 0 : index
    %c0_66 = arith.constant 0 : index
    %87 = vector.load %arg15[%c0_64, %c0_65, %c0_66] : memref<2x1x128xf32, #tpu.memory_space<vmem>>, vector<1x1x128xf32>
    %88 = vector.shape_cast %87 : vector<1x1x128xf32> to vector<1x128xf32>
    %89 = vector.broadcast %88 : vector<1x128xf32> to vector<128x128xf32>
    %90 = arith.mulf %86, %89 : vector<128x128xf32>
    %c1_67 = arith.constant 1 : index
    %c0_68 = arith.constant 0 : index
    %c0_69 = arith.constant 0 : index
    %91 = vector.load %arg15[%c1_67, %c0_68, %c0_69] : memref<2x1x128xf32, #tpu.memory_space<vmem>>, vector<1x1x128xf32>
    %92 = vector.shape_cast %91 : vector<1x1x128xf32> to vector<1x128xf32>
    %93 = vector.broadcast %92 : vector<1x128xf32> to vector<128x128xf32>
    %94 = arith.addf %90, %93 : vector<128x128xf32>
    %cst_70 = arith.constant 0.000000e+00 : f32
    %95 = vector.broadcast %cst_70 : f32 to vector<128x128xf32>
    %96 = arith.maximumf %94, %95 : vector<128x128xf32>
    %97 = arith.truncf %84 : vector<128x128xf32> to vector<128x128xbf16>
    %c0_71 = arith.constant 0 : index
    %c0_72 = arith.constant 0 : index
    %98 = vector.load %arg16[%c0_71, %c0_72] : memref<128x128xbf16, #tpu.memory_space<vmem>>, vector<128x128xbf16>
    %cst_73 = arith.constant dense<0.000000e+00> : vector<128x128xf32>
    %99 = tpu.matmul %97, %98, %cst_73 {dimension_numbers = #tpu.dot_dimension_numbers<[1], [0], [0], [1], [0, 0, 1, 1], [], []>} : vector<128x128xbf16>, vector<128x128xbf16>, vector<128x128xf32> -> vector<128x128xf32>
    %100 = arith.truncf %96 : vector<128x128xf32> to vector<128x128xbf16>
    %c0_74 = arith.constant 0 : index
    %c0_75 = arith.constant 0 : index
    %101 = vector.load %arg18[%c0_74, %c0_75] : memref<128x128xbf16, #tpu.memory_space<vmem>>, vector<128x128xbf16>
    %cst_76 = arith.constant dense<0.000000e+00> : vector<128x128xf32>
    %102 = tpu.matmul %100, %101, %cst_76 {dimension_numbers = #tpu.dot_dimension_numbers<[1], [0], [0], [1], [0, 0, 1, 1], [], []>} : vector<128x128xbf16>, vector<128x128xbf16>, vector<128x128xf32> -> vector<128x128xf32>
    %103 = tpu.concatenate %99, %102 in 1 : vector<128x128xf32>, vector<128x128xf32> -> vector<128x256xf32>
    %104 = arith.truncf %103 : vector<128x256xf32> to vector<128x256xbf16>
    %cst_77 = arith.constant dense<0.000000e+00> : vector<128x256xf32>
    %105 = tpu.matmul %0, %104, %cst_77 {dimension_numbers = #tpu.dot_dimension_numbers<[1], [0], [0], [1], [0, 0, 1, 1], [], []>} : vector<128x128xbf16>, vector<128x256xbf16>, vector<128x256xf32> -> vector<128x256xf32>
    %106 = vector.extract_strided_slice %105 {offsets = [0, 0], sizes = [128, 128], strides = [1, 1]} : vector<128x256xf32> to vector<128x128xf32>
    %c0_78 = arith.constant 0 : index
    %c0_79 = arith.constant 0 : index
    %c0_80 = arith.constant 0 : index
    %107 = vector.load %arg17[%c0_78, %c0_79, %c0_80] : memref<2x1x128xf32, #tpu.memory_space<vmem>>, vector<1x1x128xf32>
    %108 = vector.shape_cast %107 : vector<1x1x128xf32> to vector<1x128xf32>
    %109 = vector.broadcast %108 : vector<1x128xf32> to vector<128x128xf32>
    %110 = arith.mulf %106, %109 : vector<128x128xf32>
    %c1_81 = arith.constant 1 : index
    %c0_82 = arith.constant 0 : index
    %c0_83 = arith.constant 0 : index
    %111 = vector.load %arg17[%c1_81, %c0_82, %c0_83] : memref<2x1x128xf32, #tpu.memory_space<vmem>>, vector<1x1x128xf32>
    %112 = vector.shape_cast %111 : vector<1x1x128xf32> to vector<1x128xf32>
    %113 = vector.broadcast %112 : vector<1x128xf32> to vector<128x128xf32>
    %114 = arith.addf %110, %113 : vector<128x128xf32>
    %cst_84 = arith.constant 0.000000e+00 : f32
    %115 = vector.broadcast %cst_84 : f32 to vector<128x128xf32>
    %116 = arith.maximumf %114, %115 : vector<128x128xf32>
    %117 = vector.extract_strided_slice %105 {offsets = [0, 128], sizes = [128, 128], strides = [1, 1]} : vector<128x256xf32> to vector<128x128xf32>
    %c0_85 = arith.constant 0 : index
    %c0_86 = arith.constant 0 : index
    %c0_87 = arith.constant 0 : index
    %118 = vector.load %arg19[%c0_85, %c0_86, %c0_87] : memref<2x1x128xf32, #tpu.memory_space<vmem>>, vector<1x1x128xf32>
    %119 = vector.shape_cast %118 : vector<1x1x128xf32> to vector<1x128xf32>
    %120 = vector.broadcast %119 : vector<1x128xf32> to vector<128x128xf32>
    %121 = arith.mulf %117, %120 : vector<128x128xf32>
    %c1_88 = arith.constant 1 : index
    %c0_89 = arith.constant 0 : index
    %c0_90 = arith.constant 0 : index
    %122 = vector.load %arg19[%c1_88, %c0_89, %c0_90] : memref<2x1x128xf32, #tpu.memory_space<vmem>>, vector<1x1x128xf32>
    %123 = vector.shape_cast %122 : vector<1x1x128xf32> to vector<1x128xf32>
    %124 = vector.broadcast %123 : vector<1x128xf32> to vector<128x128xf32>
    %125 = arith.addf %121, %124 : vector<128x128xf32>
    %cst_91 = arith.constant 0.000000e+00 : f32
    %126 = vector.broadcast %cst_91 : f32 to vector<128x128xf32>
    %127 = arith.maximumf %125, %126 : vector<128x128xf32>
    %128 = arith.addf %116, %96 : vector<128x128xf32>
    %129 = arith.addf %127, %128 : vector<128x128xf32>
    %130 = tpu.concatenate %128, %129 in 1 : vector<128x128xf32>, vector<128x128xf32> -> vector<128x256xf32>
    %131 = arith.truncf %130 : vector<128x256xf32> to vector<128x256xbf16>
    %c0_92 = arith.constant 0 : index
    %c0_93 = arith.constant 0 : index
    %132 = vector.load %arg20[%c0_92, %c0_93] : memref<256x128xbf16, #tpu.memory_space<vmem>>, vector<256x128xbf16>
    %cst_94 = arith.constant dense<0.000000e+00> : vector<128x128xf32>
    %133 = tpu.matmul %131, %132, %cst_94 {dimension_numbers = #tpu.dot_dimension_numbers<[1], [0], [0], [1], [0, 0, 1, 1], [], []>} : vector<128x256xbf16>, vector<256x128xbf16>, vector<128x128xf32> -> vector<128x128xf32>
    %c0_95 = arith.constant 0 : index
    %c0_96 = arith.constant 0 : index
    %134 = vector.load %arg21[%c0_95, %c0_96] : memref<1x128xf32, #tpu.memory_space<vmem>>, vector<1x128xf32>
    %135 = vector.broadcast %134 : vector<1x128xf32> to vector<128x128xf32>
    %136 = arith.addf %133, %135 : vector<128x128xf32>
    %c0_97 = arith.constant 0 : index
    %c0_98 = arith.constant 0 : index
    %137 = vector.load %arg22[%c0_97, %c0_98] : memref<128x128xf32, #tpu.memory_space<vmem>>, vector<128x128xf32>
    tpu.vector_store %arg22[%c0_97, %c0_98], %136 {strides = array<i32>} : memref<128x128xf32, #tpu.memory_space<vmem>>, vector<128x128xf32>,
    return
  }
}

</mosaic_0001>

<bundles_post_ra>
// kernel: network_forward.1
= control target key start
LH: loop header
LB: loop body
LE: loop exit
PB: predicated region body
PF: predicated region fallthrough
CT: control target
= control target key end

     0   :  { %s6414_s0 = inlined_call_operand.vmem [shape: bf16[128,128], index: 0, kind: input, shape index: {}]   ;;  %s6415_s1 = inlined_call_operand.vmem [shape: f32[128,16], index: 1, kind: input, shape index: {}]   ;;  %s6416_s2 = inlined_call_operand.vmem [shape: bf16[16,384], index: 2, kind: input, shape index: {}]   ;;  %s6417_s3 = inlined_call_operand.vmem [shape: f32[2,1,384], index: 3, kind: input, shape index: {}]   ;;  %s6418_s4 = inlined_call_operand.vmem [shape: bf16[384,128], index: 4, kind: input, shape index: {}]   ;;  %s6419_s5 = inlined_call_operand.vmem [shape: f32[2,1,128], index: 5, kind: input, shape index: {}]   ;;  %s6420_s6 = inlined_call_operand.vmem [shape: bf16[384,128], index: 6, kind: input, shape index: {}]   ;;  %s6421_s7 = inlined_call_operand.vmem [shape: f32[2,1,128], index: 7, kind: input, shape index: {}]   ;;  %s6422_s8 = inlined_call_operand.vmem [shape: bf16[128,128], index: 8, kind: input, shape index: {}]   ;;  %s6423_s9 = inlined_call_operand.vmem [shape: f32[2,1,128], index: 9, kind: input, shape index: {}]   ;;  %s6424_s10 = inlined_call_operand.vmem [shape: bf16[128,128], index: 10, kind: input, shape index: {}]   ;;  %s6425_s11 = inlined_call_operand.vmem [shape: f32[2,1,128], index: 11, kind: input, shape index: {}]   ;;  %s6426_s12 = inlined_call_operand.vmem [shape: bf16[384,128], index: 12, kind: input, shape index: {}]   ;;  %s6427_s13 = inlined_call_operand.vmem [shape: f32[2,1,128], index: 13, kind: input, shape index: {}]   ;;  %s6428_s14 = inlined_call_operand.vmem [shape: bf16[256,128], index: 14, kind: input, shape index: {}]   ;;  %s6429_s15 = inlined_call_operand.vmem [shape: f32[2,1,128], index: 15, kind: input, shape index: {}]   ;;  %s6430_s16 = inlined_call_operand.vmem [shape: bf16[128,128], index: 16, kind: input, shape index: {}]   ;;  %s6431_s17 = inlined_call_operand.vmem [shape: f32[2,1,128], index: 17, kind: input, shape index: {}]   ;;  %s6432_s18 = inlined_call_operand.vmem [shape: bf16[128,128], index: 18, kind: input, shape index: {}]   ;;  %s6433_s19 = inlined_call_operand.vmem [shape: f32[2,1,128], index: 19, kind: input, shape index: {}]   ;;  %s6434_s20 = inlined_call_operand.vmem [shape: bf16[256,128], index: 20, kind: input, shape index: {}]   ;;  %s6435_s21 = inlined_call_operand.vmem [shape: f32[1,128], index: 21, kind: input, shape index: {}]   ;;  %s6436_s22 = inlined_call_operand.hbm [shape: f32[128,128], index: 22, kind: output, shape index: {}]  }
   0x1   :  { %6452 = sst [smem:[#allocation5_spill]] %s6414_s0 }
   0x2   :  { %6453 = sst [smem:[#allocation6_spill]] %s6415_s1 }
   0x3   :  { %6454 = sst [smem:[#allocation7_spill]] %s6416_s2 }
   0x4   :  { %6455 = sst [smem:[#allocation8_spill]] %s6417_s3 }
   0x5   :  { %6456 = sst [smem:[#allocation9_spill]] %s6418_s4 }
   0x6   :  { %6457 = sst [smem:[#allocation10_spill]] %s6419_s5 }
   0x7   :  { %6458 = sst [smem:[#allocation11_spill]] %s6420_s6 }
   0x8   :  { %s6459_s29 = sld [smem:[#allocation7_spill]]  ;;  %v6449_v2 = vmov 0   ;;  %s6460_s24 = sld [smem:[#allocation6_spill]]  ;;  %vm133_vm0 = vcmask 130048  }
   0x9   :  { %190 = vmatprep.mubr.bf16.mxu0 %v6449_v2  ;;  %s6461_s28 = sld [smem:[#allocation9_spill]]  ;;  %s6462_s5 = sld [smem:[#allocation11_spill]] }
   0xe   :  { %v4628_v0 = vld [vmem:[%s6459_s29 + $0x4] ss:$12 sps:$4 sm:$0xff]   ;;  %v4630_v1 = vld [vmem:[%s6459_s29 + $0x8] ss:$12 sps:$4 sm:$0xff]   ;;  %v4631_v3 = vld [vmem:[%s6459_s29] ss:$12 sps:$4 sm:$0xff]  }
   0xf   :  { %158 = vmatprep.subr.bf16.mxu0 %v4628_v0  ;;  %v89_v4 = vld [vmem:[%s6460_s24] sm:$0xff]  ;;  %v90_v5 = vld [vmem:[%s6460_s24 + $0x8] sm:$0xff]  ;;  %4382 = vmatprep.subr.bf16.mxu1 %v4630_v1  ;;  %v91_v7 = vld [vmem:[%s6460_s24 + $0x10] sm:$0xff] }
  0x10   :  { %v105_v6 = vpack.c.bf16 %v90_v5, %v89_v4  ;;  %v92_v8 = vld [vmem:[%s6460_s24 + $0x18] sm:$0xff]  ;;  %v93_v9 = vld [vmem:[%s6460_s24 + $0x20] sm:$0xff]  ;;  %159 = vmatpush1.bf16.msra.mxu0 %v4631_v3  ;;  %4383 = vmatpush3.bf16.msra.mxu1 %v4630_v1  ;;  %v94_v11 = vld [vmem:[%s6460_s24 + $0x28] sm:$0xff] }
  0x11   :  { %v106_v10 = vpack.c.bf16 %v92_v8, %v91_v7  ;;  %v107_v12 = vpack.c.bf16 %v94_v11, %v93_v9  ;;  %v95_v13 = vld [vmem:[%s6460_s24 + $0x30] sm:$0xff]  ;;  %v96_v14 = vld [vmem:[%s6460_s24 + $0x38] sm:$0xff]  ;;  %v97_v15 = vld [vmem:[%s6460_s24 + $0x40] sm:$0xff] }
  0x12   :  { %4384 = vmatprep.mubr.msk.bf16.mxu1 %vm133_vm0, %v105_v6  ;;  %v98_v16 = vld [vmem:[%s6460_s24 + $0x48] sm:$0xff]  ;;  %v4632_v17 = vld [vmem:[%s6461_s28 + $0x80] sm:$0xff]   ;;  %v108_v19 = vpack.c.bf16 %v96_v14, %v95_v13  ;;  %v4634_v22 = vld [vmem:[%s6461_s28 + $0x90] sm:$0xff]  }
  0x13   :  { %3755 = vmatmul.mubr.msk.bf16.vlgmr.msra.gmra.mrb[0].mxu0 %vm133_vm0, %v105_v6  ;;  %4385 = vmatmul.mubr.msk.bf16.vlgmr.msra.gmra.mrb[0].mxu1 %vm133_vm0, %v106_v10  ;;  %v4633_v18 = vld [vmem:[%s6461_s28 + $0x88] sm:$0xff]   ;;  %v4635_v20 = vld [vmem:[%s6461_s28 + $0x40] sm:$0xff]   ;;  %v109_v21 = vpack.c.bf16 %v98_v16, %v97_v15  ;;  %v99_v24 = vld [vmem:[%s6460_s24 + $0x50] sm:$0xff] }
  0x14   :  { %200 = vmatprep.mubr.bf16.mxu0 %v6449_v2  ;;  %4388 = vmatprep.mubr.msk.bf16.mxu1 %vm133_vm0, %v107_v12  ;;  %v4637_v23 = vld [vmem:[%s6461_s28] sm:$0xff]   ;;  %v100_v25 = vld [vmem:[%s6460_s24 + $0x58] sm:$0xff]  ;;  %v4638_v26 = vld [vmem:[%s6461_s28 + $0x48] sm:$0xff]  }
  0x15   :  { %4400 = vmatprep.subr.bf16.mxu0 %v4632_v17  ;;  %3950 = vmatprep.subr.bf16.mxu1 %v4635_v20  ;;  %v101_v27 = vld [vmem:[%s6460_s24 + $0x60] sm:$0xff]  ;;  %v102_v28 = vld [vmem:[%s6460_s24 + $0x68] sm:$0xff]  ;;  %v4636_v29 = vld [vmem:[%s6461_s28 + $0x98] sm:$0xff]   ;;  %v110_v32 = vpack.c.bf16 %v100_v25, %v99_v24 }
  0x16   :  { %4401 = vmatpush3.bf16.msra.mxu0 %v4632_v17  ;;  %3951 = vmatpush3.bf16.msra.mxu1 %v4637_v23  ;;  %v4639_v30 = vld [vmem:[%s6461_s28 + $0x8] sm:$0xff]   ;;  %v4640_v31 = vld [vmem:[%s6461_s28 + $0x50] sm:$0xff]   ;;  %v111_v33 = vpack.c.bf16 %v102_v28, %v101_v27  ;;  %v4641_v34 = vld [vmem:[%s6461_s28 + $0xa0] sm:$0xff]  }
  0x17   :  { %4402 = vmatprep.subr.bf16.mxu0 %v4633_v18  ;;  %3952 = vmatprep.subr.bf16.mxu1 %v4638_v26  ;;  %v4642_v35 = vld [vmem:[%s6461_s28 + $0x10] sm:$0xff]   ;;  %v104_v37 = vld [vmem:[%s6460_s24 + $0x78] sm:$0xff]  ;;  %v4645_v40 = vld [vmem:[%s6461_s28 + $0x60] sm:$0xff]  }
  0x18   :  { %v103_v36 = vld [vmem:[%s6460_s24 + $0x70] sm:$0xff]  ;;  %v4643_v38 = vld [vmem:[%s6461_s28 + $0x58] sm:$0xff]   ;;  %v4646_v41 = vld [vmem:[%s6461_s28 + $0xa8] sm:$0xff]  }
  0x19   :  { %v4644_v39 = vld [vmem:[%s6461_s28 + $0x18] sm:$0xff]   ;;  %v112_v42 = vpack.c.bf16 %v104_v37, %v103_v36  ;;  %v4647_v43 = vld [vmem:[%s6461_s28 + $0x20] sm:$0xff]   ;;  %v4648_v44 = vld [vmem:[%s6461_s28 + $0x68] sm:$0xff]  }
  0x1a   :  { %4403 = vmatpush3.bf16.msra.mxu0 %v4633_v18  ;;  %3953 = vmatpush3.bf16.msra.mxu1 %v4639_v30  ;;  %v4649_v45 = vld [vmem:[%s6461_s28 + $0x28] sm:$0xff]   ;;  %v4650_v46 = vld [vmem:[%s6461_s28 + $0x70] sm:$0xff]   ;;  %v4653_v49 = vld [vmem:[%s6461_s28 + $0x78] sm:$0xff]  }
  0x1b   :  { %3756 = vmatmul.mubr.msk.bf16.gmra.mrb[4].mxu0 %vm133_vm0, %v106_v10  ;;  %4389 = vmatmul.mubr.msk.bf16.gmra.mrb[4].mxu1 %vm133_vm0, %v108_v19  ;;  %v4651_v47 = vld [vmem:[%s6461_s28 + $0xb0] sm:$0xff]   ;;  %v4654_v50 = vld [vmem:[%s6461_s28 + $0xb8] sm:$0xff]   ;;  %v4656_v52 = vld [vmem:[%s6462_s5 + $0x40] sm:$0xff]  }
  0x1c   :  { %210 = vmatprep.mubr.bf16.mxu0 %v6449_v2  ;;  %4392 = vmatprep.mubr.msk.bf16.mxu1 %vm133_vm0, %v109_v21  ;;  %v4652_v48 = vld [vmem:[%s6461_s28 + $0x30] sm:$0xff]   ;;  %v4655_v51 = vld [vmem:[%s6461_s28 + $0x38] sm:$0xff]   ;;  %v5086_v53 = vld [vmem:[%s6462_s5 + $0x80] sm:$0xff]  }
  0x1d   :  { %4404 = vmatprep.subr.bf16.mxu0 %v4634_v22  ;;  %3954 = vmatprep.subr.bf16.mxu1 %v4640_v31 }
  0x1e   :  { %4405 = vmatpush3.bf16.msra.mxu0 %v4634_v22  ;;  %3955 = vmatpush3.bf16.msra.mxu1 %v4642_v35 }
  0x1f   :  { %4406 = vmatprep.subr.bf16.mxu0 %v4636_v29  ;;  %3956 = vmatprep.subr.bf16.mxu1 %v4643_v38 }
  0x22   :  { %4407 = vmatpush3.bf16.msra.mxu0 %v4636_v29  ;;  %3957 = vmatpush3.bf16.msra.mxu1 %v4644_v39 }
  0x23   :  { %3757 = vmatmul.mubr.msk.bf16.gmra.mrb[8].mxu0 %vm133_vm0, %v107_v12  ;;  %4393 = vmatmul.mubr.msk.bf16.gmra.mrb[8].mxu1 %vm133_vm0, %v110_v32 }
  0x24   :  { %220 = vmatprep.mubr.bf16.mxu0 %v6449_v2  ;;  %4396 = vmatprep.mubr.msk.bf16.mxu1 %vm133_vm0, %v111_v33 }
  0x25   :  { %4408 = vmatprep.subr.bf16.mxu0 %v4641_v34  ;;  %3958 = vmatprep.subr.bf16.mxu1 %v4645_v40 }
  0x26   :  { %4409 = vmatpush3.bf16.msra.mxu0 %v4641_v34  ;;  %3959 = vmatpush3.bf16.msra.mxu1 %v4647_v43 }
  0x27   :  { %4410 = vmatprep.subr.bf16.mxu0 %v4646_v41  ;;  %3960 = vmatprep.subr.bf16.mxu1 %v4648_v44 }
  0x2a   :  { %4411 = vmatpush3.bf16.msra.mxu0 %v4646_v41  ;;  %3961 = vmatpush3.bf16.msra.mxu1 %v4649_v45 }
  0x2b   :  { %3758 = vmatmul.mubr.msk.bf16.gmra.mrb[12].mxu0 %vm133_vm0, %v108_v19  ;;  %4397 = vmatmul.mubr.msk.bf16.gmra.mrb[12].mxu1 %vm133_vm0, %v112_v42 }
  0x2c   :  { %230 = vmatprep.mubr.bf16.mxu0 %v6449_v2  ;;  %3962 = vmatprep.subr.bf16.mxu1 %v4650_v46 }
  0x2d   :  { %4412 = vmatprep.subr.bf16.mxu0 %v4651_v47 }
  0x2e   :  { %3963 = vmatpush3.bf16.msra.mxu1 %v4652_v48  ;;  %4413 = vmatpush3.bf16.msra.mxu0 %v4651_v47 }
  0x2f   :  { %3964 = vmatprep.subr.bf16.mxu1 %v4653_v49  ;;  %4414 = vmatprep.subr.bf16.mxu0 %v4654_v50 }
  0x32   :  { %3965 = vmatpush3.bf16.msra.mxu1 %v4655_v51  ;;  %4415 = vmatpush3.bf16.msra.mxu0 %v4654_v50 }
  0x33   :  { %3759 = vmatmul.mubr.msk.bf16.gmra.mrb[16].mxu0 %vm133_vm0, %v109_v21  ;;  %4030 = vmatprep.subr.bf16.mxu0 %v4656_v52 }
  0x34   :  { %240 = vmatprep.mubr.bf16.mxu0 %v6449_v2  ;;  %4432 = vmatprep.subr.bf16.mxu1 %v5086_v53 }
  0x3b   :  { %3760 = vmatmul.mubr.msk.bf16.gmra.mrb[20].mxu0 %vm133_vm0, %v110_v32 }
  0x3c   :  { %250 = vmatprep.mubr.bf16.mxu0 %v6449_v2 }
  0x43   :  { %3761 = vmatmul.mubr.msk.bf16.gmra.mrb[24].mxu0 %vm133_vm0, %v111_v33 }
  0x44   :  { %260 = vmatprep.mubr.bf16.mxu0 %v6449_v2 }
  0x4b   :  { %3762 = vmatmul.mubr.msk.bf16.gmra.mrb[28].mxu0 %vm133_vm0, %v112_v42 }
  0x4c   :  { %27 = vsyncpa [#allocation3], 0  ;;  %v370_v54 = vlaneseq  ;;  %s6463_s2 = sld [smem:[#allocation8_spill]]  ;;  %v4657_v38 = vld [vmem:[%s6462_s5] sm:$0xff]   ;;  %v4658_v43 = vld [vmem:[%s6462_s5 + $0x48] sm:$0xff]   ;;  %s6464_s1 = sld [smem:[#allocation10_spill]] }
  0x4d   :  { %v4667_v44 = vld [vmem:[%s6462_s5 + $0x88] sm:$0xff]  }
  0x4e   :  { %v371_v55 = vshrl.u32 %v370_v54, 7 }
  0x50   :  { %v372_v56 = vsub.s32 0, %v371_v55  ;;  %v380_v57 = vsub.s32 2, %v371_v55  ;;  %v376_v59 = vsub.s32 1, %v371_v55 }
  0x52   :  { %v368_v58 = vld [vmem:[%s6463_s2] sm:$0x7]  ;;  %v3771_v60 = vld [vmem:[%s6463_s2 + $0x3] sm:$0x7] }
  0x53   :  { %v5095_v61 = vrot.slane %v368_v58, %v372_v56  ;;  %v5097_v62 = vrot.slane %v368_v58, %v380_v57  ;;  %v5099_v63 = vrot.slane %v368_v58, %v376_v59  ;;  %v5101_v0 = vrot.slane %v3771_v60, %v372_v56 }
  0x54   :  { %v5105_v6 = vrot.slane %v3771_v60, %v380_v57  ;;  %v5108_v10 = vrot.slane %v3771_v60, %v376_v59  ;;  %v4659_v57 = vld [vmem:[%s6462_s5 + $0x8] sm:$0xff]  }
  0xe6   :  { %v192_v1 = vpop.f32.mrb[0].mxu0  ;;  %v4386_v3 = vpop.f32.mrb[0].mxu1 }
  0xe7   :  { %v385_v4 = vmul.f32 %v5095_v61, %v192_v1  ;;  %v393_v5 = vmul.f32 %v4386_v3, %v5097_v62  ;;  %v194_v7 = vpop.f32.mrb[1].mxu0  ;;  %v305_v8 = vpop.f32.mrb[1].mxu1 }
  0xe8   :  { %v386_v9 = vmul.f32 %v5099_v63, %v194_v7  ;;  %v387_v11 = vmul.f32 %v5097_v62, %v305_v8  ;;  %v196_v12 = vpop.f32.mrb[2].mxu0  ;;  %v4387_v13 = vpop.f32.mrb[2].mxu1 }
  0xe9   :  { %v451_v14 = vadd.f32 %v5101_v0, %v385_v4  ;;  %v388_v15 = vmul.f32 %v5095_v61, %v196_v12  ;;  %v396_v16 = vmul.f32 %v4387_v13, %v5097_v62  ;;  %v198_v17 = vpop.f32.mrb[3].mxu0  ;;  %v308_v18 = vpop.f32.mrb[3].mxu1  ;;  %v459_v21 = vadd.f32 %v5105_v6, %v393_v5  ;;  %v4660_v13 = vld [vmem:[%s6462_s5 + $0x50] sm:$0xff]  }
  0xea   :  { %v389_v19 = vmul.f32 %v5099_v63, %v198_v17  ;;  %v390_v20 = vmul.f32 %v5097_v62, %v308_v18  ;;  %v452_v24 = vadd.f32 %v5108_v10, %v386_v9  ;;  %v453_v25 = vadd.f32 %v5105_v6, %v387_v11 }
  0xeb   :  { %v454_v22 = vadd.f32 %v5101_v0, %v388_v15  ;;  %v462_v23 = vadd.f32 %v5105_v6, %v396_v16 }
  0xec   :  { %v455_v26 = vadd.f32 %v5108_v10, %v389_v19  ;;  %v456_v27 = vadd.f32 %v5105_v6, %v390_v20  ;;  %v4661_v19 = vld [vmem:[%s6462_s5 + $0x10] sm:$0xff]  }
  0xed   :  { %v5123_v28 = vpack.c.bf16 %v454_v22, %v451_v14  ;;  %v5125_v29 = vpack.c.bf16 %v462_v23, %v459_v21  ;;  %v4672_v14 = vld [vmem:[%s6462_s5 + $0x90] sm:$0xff]  }
  0xee   :  { %v202_v30 = vpop.f32.mrb[4].mxu0  ;;  %v4390_v31 = vpop.f32.mrb[4].mxu1  ;;  %v5127_v32 = vpack.c.bf16 %v455_v26, %v452_v24  ;;  %v5129_v33 = vpack.c.bf16 %v456_v27, %v453_v25  ;;  %v4663_v25 = vld [vmem:[%s6462_s5 + $0x58] sm:$0xff]  }
  0xef   :  { %v391_v34 = vmul.f32 %v5095_v61, %v202_v30  ;;  %v405_v35 = vmul.f32 %v4390_v31, %v5097_v62  ;;  %v204_v36 = vpop.f32.mrb[5].mxu0  ;;  %v321_v37 = vpop.f32.mrb[5].mxu1  ;;  %v4675_v26 = vld [vmem:[%s6462_s5 + $0x98] sm:$0xff]  }
  0xf0   :  { %v392_v39 = vmul.f32 %v5099_v63, %v204_v36  ;;  %v399_v40 = vmul.f32 %v5097_v62, %v321_v37  ;;  %v206_v41 = vpop.f32.mrb[6].mxu0  ;;  %v4391_v42 = vpop.f32.mrb[6].mxu1  ;;  %747 = vmatprep.mubr.bf16.mxu1 %v5127_v32  ;;  %4416 = vmatprep.mubr.bf16.mxu0 %v5129_v33 }
  0xf1   :  { %v457_v45 = vadd.f32 %v5101_v0, %v391_v34  ;;  %v394_v46 = vmul.f32 %v5095_v61, %v206_v41  ;;  %v408_v47 = vmul.f32 %v4391_v42, %v5097_v62  ;;  %v208_v48 = vpop.f32.mrb[7].mxu0  ;;  %v324_v49 = vpop.f32.mrb[7].mxu1  ;;  %748 = vmatmul.mubr.bf16.vlgmr.msra.gmra.mrb[16].mxu1 %v5123_v28  ;;  %v471_v50 = vadd.f32 %v5105_v6, %v405_v35 }
  0xf2   :  { %v395_v51 = vmul.f32 %v5099_v63, %v208_v48  ;;  %v402_v52 = vmul.f32 %v5097_v62, %v324_v49  ;;  %4417 = vmatmul.mubr.bf16.vlgmr.msra.gmra.mrb[32].mxu0 %v5125_v29  ;;  %v458_v54 = vadd.f32 %v5108_v10, %v392_v39  ;;  %4433 = vmatpush3.bf16.msra.mxu1 %v5086_v53 }
  0xf3   :  { %v460_v55 = vadd.f32 %v5101_v0, %v394_v46  ;;  %v474_v56 = vadd.f32 %v5105_v6, %v408_v47  ;;  %4031 = vmatpush3.bf16.msra.mxu0 %v4657_v38  ;;  %v465_v58 = vadd.f32 %v5105_v6, %v399_v40  ;;  %4434 = vmatprep.subr.bf16.mxu1 %v4667_v44  ;;  %v4664_v40 = vld [vmem:[%s6462_s5 + $0x18] sm:$0xff]  }
  0xf4   :  { %v461_v59 = vadd.f32 %v5108_v10, %v395_v51  ;;  %v468_v60 = vadd.f32 %v5105_v6, %v402_v52  ;;  %4032 = vmatprep.subr.bf16.mxu0 %v4658_v43  ;;  %v4665_v51 = vld [vmem:[%s6462_s5 + $0x60] sm:$0xff]  }
  0xf5   :  { %v5164_v1 = vpack.c.bf16 %v460_v55, %v457_v45  ;;  %v5166_v3 = vpack.c.bf16 %v474_v56, %v471_v50 }
  0xf6   :  { %v212_v4 = vpop.f32.mrb[8].mxu0  ;;  %v4394_v5 = vpop.f32.mrb[8].mxu1  ;;  %v5168_v7 = vpack.c.bf16 %v461_v59, %v458_v54  ;;  %v5170_v8 = vpack.c.bf16 %v468_v60, %v465_v58  ;;  %4435 = vmatpush3.bf16.msra.mxu1 %v4667_v44 }
  0xf7   :  { %v397_v53 = vmul.f32 %v5095_v61, %v212_v4  ;;  %v417_v9 = vmul.f32 %v4394_v5, %v5097_v62  ;;  %4033 = vmatpush3.bf16.msra.mxu0 %v4659_v57  ;;  %v214_v11 = vpop.f32.mrb[9].mxu0  ;;  %v337_v12 = vpop.f32.mrb[9].mxu1  ;;  %4436 = vmatprep.subr.bf16.mxu1 %v4672_v14  ;;  %v4666_v57 = vld [vmem:[%s6462_s5 + $0x20] sm:$0xff]  }
  0xf8   :  { %v398_v15 = vmul.f32 %v5099_v63, %v214_v11  ;;  %v411_v16 = vmul.f32 %v5097_v62, %v337_v12  ;;  %v216_v17 = vpop.f32.mrb[10].mxu0  ;;  %v4395_v18 = vpop.f32.mrb[10].mxu1  ;;  %755 = vmatprep.mubr.bf16.mxu1 %v5168_v7  ;;  %4420 = vmatprep.mubr.bf16.mxu0 %v5170_v8 }
  0xf9   :  { %v463_v20 = vadd.f32 %v5101_v0, %v397_v53  ;;  %v400_v21 = vmul.f32 %v5095_v61, %v216_v17  ;;  %v420_v22 = vmul.f32 %v4395_v18, %v5097_v62  ;;  %v218_v23 = vpop.f32.mrb[11].mxu0  ;;  %v340_v24 = vpop.f32.mrb[11].mxu1  ;;  %756 = vmatmul.mubr.bf16.gmra.mrb[20].mxu1 %v5164_v1  ;;  %v483_v27 = vadd.f32 %v5105_v6, %v417_v9  ;;  %v4668_v53 = vld [vmem:[%s6462_s5 + $0x68] sm:$0xff]   ;;  %v4676_v9 = vld [vmem:[%s6462_s5 + $0xa0] sm:$0xff]  }
  0xfa   :  { %v401_v30 = vmul.f32 %v5099_v63, %v218_v23  ;;  %v414_v31 = vmul.f32 %v5097_v62, %v340_v24  ;;  %4421 = vmatmul.mubr.bf16.gmra.mrb[36].mxu0 %v5166_v3  ;;  %v464_v34 = vadd.f32 %v5108_v10, %v398_v15  ;;  %4034 = vmatprep.subr.bf16.mxu0 %v4660_v13 }
  0xfb   :  { %v466_v35 = vadd.f32 %v5101_v0, %v400_v21  ;;  %v486_v36 = vadd.f32 %v5105_v6, %v420_v22  ;;  %v477_v37 = vadd.f32 %v5105_v6, %v411_v16  ;;  %4035 = vmatpush3.bf16.msra.mxu0 %v4661_v19  ;;  %4437 = vmatpush3.bf16.msra.mxu1 %v4672_v14  ;;  %v4670_v22 = vld [vmem:[%s6462_s5 + $0x70] sm:$0xff]  }
  0xfc   :  { %v467_v38 = vadd.f32 %v5108_v10, %v401_v30  ;;  %v480_v39 = vadd.f32 %v5105_v6, %v414_v31  ;;  %4036 = vmatprep.subr.bf16.mxu0 %v4663_v25  ;;  %4438 = vmatprep.subr.bf16.mxu1 %v4675_v26  ;;  %v4671_v31 = vld [vmem:[%s6462_s5 + $0x30] sm:$0xff]  }
  0xfd   :  { %v5210_v41 = vpack.c.bf16 %v466_v35, %v463_v20  ;;  %v5212_v42 = vpack.c.bf16 %v486_v36, %v483_v27 }
  0xfe   :  { %v222_v43 = vpop.f32.mrb[12].mxu0  ;;  %v4398_v44 = vpop.f32.mrb[12].mxu1  ;;  %v5214_v45 = vpack.c.bf16 %v467_v38, %v464_v34  ;;  %v5216_v46 = vpack.c.bf16 %v480_v39, %v477_v37  ;;  %v4673_v37 = vld [vmem:[%s6462_s5 + $0x78] sm:$0xff]   ;;  %v4677_v38 = vld [vmem:[%s6462_s5 + $0xa8] sm:$0xff]  }
  0xff   :  { %v403_v47 = vmul.f32 %v5095_v61, %v222_v43  ;;  %v429_v48 = vmul.f32 %v4398_v44, %v5097_v62  ;;  %v224_v49 = vpop.f32.mrb[13].mxu0  ;;  %v353_v50 = vpop.f32.mrb[13].mxu1  ;;  %4037 = vmatpush3.bf16.msra.mxu0 %v4664_v40  ;;  %4439 = vmatpush3.bf16.msra.mxu1 %v4675_v26 }
 0x100   :  { %v404_v52 = vmul.f32 %v5099_v63, %v224_v49  ;;  %v423_v54 = vmul.f32 %v5097_v62, %v353_v50  ;;  %v226_v55 = vpop.f32.mrb[14].mxu0  ;;  %v4399_v56 = vpop.f32.mrb[14].mxu1  ;;  %763 = vmatprep.mubr.bf16.mxu1 %v5214_v45  ;;  %4424 = vmatprep.mubr.bf16.mxu0 %v5216_v46  ;;  %v4678_v49 = vld [vmem:[%s6462_s5 + $0xb0] sm:$0xff]  }
 0x101   :  { %v469_v58 = vadd.f32 %v5101_v0, %v403_v47  ;;  %v406_v59 = vmul.f32 %v5095_v61, %v226_v55  ;;  %v432_v60 = vmul.f32 %v4399_v56, %v5097_v62  ;;  %v228_v4 = vpop.f32.mrb[15].mxu0  ;;  %v356_v5 = vpop.f32.mrb[15].mxu1  ;;  %v495_v11 = vadd.f32 %v5105_v6, %v429_v48  ;;  %764 = vmatmul.mubr.bf16.gmra.mrb[24].mxu1 %v5210_v41  ;;  %v4674_v47 = vld [vmem:[%s6462_s5 + $0x38] sm:$0xff]  }
 0x102   :  { %v407_v12 = vmul.f32 %v5099_v63, %v228_v4  ;;  %v426_v13 = vmul.f32 %v5097_v62, %v356_v5  ;;  %v470_v14 = vadd.f32 %v5108_v10, %v404_v52  ;;  %4425 = vmatmul.mubr.bf16.gmra.mrb[40].mxu0 %v5212_v42  ;;  %4038 = vmatprep.subr.bf16.mxu0 %v4665_v51  ;;  %v4669_v62 = vld [vmem:[%s6462_s5 + $0x28] sm:$0xff]  }
 0x103   :  { %v472_v15 = vadd.f32 %v5101_v0, %v406_v59  ;;  %v498_v16 = vadd.f32 %v5105_v6, %v432_v60  ;;  %v489_v17 = vadd.f32 %v5105_v6, %v423_v54  ;;  %4039 = vmatpush3.bf16.msra.mxu0 %v4666_v57  ;;  %4440 = vmatprep.subr.bf16.mxu1 %v4676_v9  ;;  %v4679_v57 = vld [vmem:[%s6462_s5 + $0xb8] sm:$0xff]  }
 0x104   :  { %v473_v18 = vadd.f32 %v5108_v10, %v407_v12  ;;  %v492_v19 = vadd.f32 %v5105_v6, %v426_v13  ;;  %4040 = vmatprep.subr.bf16.mxu0 %v4668_v53  ;;  %4441 = vmatpush3.bf16.msra.mxu1 %v4676_v9 }
 0x105   :  { %v5253_v20 = vpack.c.bf16 %v472_v15, %v469_v58  ;;  %v5255_v21 = vpack.c.bf16 %v498_v16, %v495_v11  ;;  %4442 = vmatprep.subr.bf16.mxu1 %v4677_v38  ;;  %v4680_v11 = vld [vmem:[%s6422_s8] sm:$0xff]  }
 0x106   :  { %v232_v23 = vpop.f32.mrb[16].mxu0  ;;  %v5260_v24 = vpack.c.bf16 %v473_v18, %v470_v14  ;;  %v5262_v6 = vpack.c.bf16 %v492_v19, %v489_v17 }
 0x107   :  { %v409_v25 = vmul.f32 %v5095_v61, %v232_v23  ;;  %v234_v27 = vpop.f32.mrb[17].mxu0  ;;  %4041 = vmatpush3.bf16.msra.mxu0 %v4669_v62 }
 0x108   :  { %v410_v26 = vmul.f32 %v5099_v63, %v234_v27  ;;  %v236_v30 = vpop.f32.mrb[18].mxu0  ;;  %771 = vmatprep.mubr.bf16.mxu1 %v5260_v24  ;;  %4428 = vmatprep.mubr.bf16.mxu0 %v5262_v6 }
 0x109   :  { %v475_v34 = vadd.f32 %v5101_v0, %v409_v25  ;;  %v412_v35 = vmul.f32 %v5095_v61, %v236_v30  ;;  %v238_v36 = vpop.f32.mrb[19].mxu0  ;;  %4042 = vmatprep.subr.bf16.mxu0 %v4670_v22  ;;  %772 = vmatmul.mubr.bf16.gmra.mrb[28].mxu1 %v5253_v20 }
 0x10a   :  { %v413_v39 = vmul.f32 %v5099_v63, %v238_v36  ;;  %4429 = vmatmul.mubr.bf16.gmra.mrb[44].mxu0 %v5255_v21  ;;  %v476_v43 = vadd.f32 %v5108_v10, %v410_v26  ;;  %4443 = vmatpush3.bf16.msra.mxu1 %v4677_v38 }
 0x10b   :  { %v478_v40 = vadd.f32 %v5101_v0, %v412_v35  ;;  %4043 = vmatpush3.bf16.msra.mxu0 %v4671_v31  ;;  %1196 = vmatprep.mubr.bf16.mxu0 %v5127_v32 }
 0x10c   :  { %v479_v44 = vadd.f32 %v5108_v10, %v413_v39  ;;  %4044 = vmatprep.subr.bf16.mxu0 %v4673_v37  ;;  %4444 = vmatprep.subr.bf16.mxu1 %v4678_v49 }
 0x10d   :  { %v5289_v48 = vpack.c.bf16 %v478_v40, %v475_v34 }
 0x10e   :  { %v242_v50 = vpop.f32.mrb[20].mxu0  ;;  %v5294_v51 = vpack.c.bf16 %v479_v44, %v476_v43  ;;  %4445 = vmatpush3.bf16.msra.mxu1 %v4678_v49 }
 0x10f   :  { %v415_v52 = vmul.f32 %v5095_v61, %v242_v50  ;;  %v244_v54 = vpop.f32.mrb[21].mxu0  ;;  %4045 = vmatpush3.bf16.msra.mxu0 %v4674_v47  ;;  %4446 = vmatprep.subr.bf16.mxu1 %v4679_v57 }
 0x110   :  { %v416_v55 = vmul.f32 %v5099_v63, %v244_v54  ;;  %v246_v56 = vpop.f32.mrb[22].mxu0  ;;  %779 = vmatprep.mubr.bf16.mxu1 %v5294_v51 }
 0x111   :  { %v481_v58 = vadd.f32 %v5101_v0, %v415_v52  ;;  %v418_v59 = vmul.f32 %v5095_v61, %v246_v56  ;;  %v248_v60 = vpop.f32.mrb[23].mxu0  ;;  %780 = vmatmul.mubr.bf16.gmra.mrb[32].mxu1 %v5289_v48  ;;  %v4686_v56 = vld [vmem:[%s6422_s8 + $0x30] sm:$0xff]  }
 0x112   :  { %v419_v4 = vmul.f32 %v5099_v63, %v248_v60  ;;  %1197 = vmatmul.mubr.bf16.vlgmr.msra.gmra.mrb[48].mxu0 %v5123_v28  ;;  %v482_v53 = vadd.f32 %v5108_v10, %v416_v55  ;;  %4447 = vmatpush3.bf16.msra.mxu1 %v4679_v57  ;;  %v4685_v55 = vld [vmem:[%s6422_s8 + $0x28] sm:$0xff]   ;;  %v4687_v57 = vld [vmem:[%s6422_s8 + $0x38] sm:$0xff]   ;;  %v4690_v60 = vld [vmem:[%s6424_s10 + $0x10] sm:$0xff]  }
 0x113   :  { %v484_v5 = vadd.f32 %v5101_v0, %v418_v59  ;;  %1204 = vmatprep.mubr.bf16.mxu0 %v5168_v7  ;;  %4464 = vmatprep.subr.bf16.mxu1 %v4680_v11  ;;  %v4689_v59 = vld [vmem:[%s6424_s10 + $0x8] sm:$0xff]  }
 0x114   :  { %v485_v9 = vadd.f32 %v5108_v10, %v419_v4  ;;  %v4691_v4 = vld [vmem:[%s6424_s10 + $0x18] sm:$0xff]  }
 0x115   :  { %v5314_v12 = vpack.c.bf16 %v484_v5, %v481_v58  ;;  %v4688_v58 = vld [vmem:[%s6424_s10] sm:$0xff]  }
 0x116   :  { %v252_v13 = vpop.f32.mrb[24].mxu0  ;;  %v5316_v14 = vpack.c.bf16 %v485_v9, %v482_v53  ;;  %4496 = vmatprep.subr.bf16.mxu0 %v4688_v58  ;;  %v4692_v5 = vld [vmem:[%s6424_s10 + $0x20] sm:$0xff]   ;;  %v4693_v53 = vld [vmem:[%s6424_s10 + $0x28] sm:$0xff]   ;;  %v4694_v9 = vld [vmem:[%s6424_s10 + $0x30] sm:$0xff]  }
 0x117   :  { %v421_v15 = vmul.f32 %v5095_v61, %v252_v13  ;;  %v254_v16 = vpop.f32.mrb[25].mxu0  ;;  %4497 = vmatpush3.bf16.msra.mxu0 %v4688_v58  ;;  %v4696_v13 = vld [vmem:[%s6426_s12 + $0x40] sm:$0xff]  }
 0x118   :  { %v422_v17 = vmul.f32 %v5099_v63, %v254_v16  ;;  %v256_v18 = vpop.f32.mrb[26].mxu0  ;;  %787 = vmatprep.mubr.bf16.mxu1 %v5316_v14  ;;  %4498 = vmatprep.subr.bf16.mxu0 %v4689_v59 }
 0x119   :  { %v487_v19 = vadd.f32 %v5101_v0, %v421_v15  ;;  %v424_v62 = vmul.f32 %v5095_v61, %v256_v18  ;;  %v258_v22 = vpop.f32.mrb[27].mxu0  ;;  %788 = vmatmul.mubr.bf16.gmra.mrb[36].mxu1 %v5314_v12 }
 0x11a   :  { %v425_v23 = vmul.f32 %v5099_v63, %v258_v22  ;;  %1205 = vmatmul.mubr.bf16.gmra.mrb[52].mxu0 %v5164_v1  ;;  %v488_v27 = vadd.f32 %v5108_v10, %v422_v17  ;;  %v5420_v22 = vld [vmem:[%s6464_s1] ss:$0 sm:$0xff] }
 0x11b   :  { %v490_v25 = vadd.f32 %v5101_v0, %v424_v62  ;;  %1212 = vmatprep.mubr.bf16.mxu0 %v5214_v45  ;;  %4499 = vmatpush3.bf16.msra.mxu0 %v4689_v59 }
 0x11c   :  { %v491_v26 = vadd.f32 %v5108_v10, %v425_v23  ;;  %4500 = vmatprep.subr.bf16.mxu0 %v4690_v60 }
 0x11d   :  { %v5330_v30 = vpack.c.bf16 %v490_v25, %v487_v19 }
 0x11e   :  { %v262_v31 = vpop.f32.mrb[28].mxu0  ;;  %v5332_v34 = vpack.c.bf16 %v491_v26, %v488_v27 }
 0x11f   :  { %v427_v35 = vmul.f32 %v5095_v61, %v262_v31  ;;  %v264_v36 = vpop.f32.mrb[29].mxu0  ;;  %4501 = vmatpush3.bf16.msra.mxu0 %v4690_v60 }
 0x120   :  { %v428_v37 = vmul.f32 %v5099_v63, %v264_v36  ;;  %v266_v38 = vpop.f32.mrb[30].mxu0  ;;  %795 = vmatprep.mubr.bf16.mxu1 %v5332_v34  ;;  %4502 = vmatprep.subr.bf16.mxu0 %v4691_v4 }
 0x121   :  { %v493_v39 = vadd.f32 %v5101_v0, %v427_v35  ;;  %v430_v40 = vmul.f32 %v5095_v61, %v266_v38  ;;  %v268_v43 = vpop.f32.mrb[31].mxu0  ;;  %796 = vmatmul.mubr.bf16.gmra.mrb[40].mxu1 %v5330_v30  ;;  %v4681_v61 = vld [vmem:[%s6422_s8 + $0x8] sm:$0xff]   ;;  %v5425_v35 = vld [vmem:[%s6464_s1 + $0x1] ss:$0 sm:$0xff] }
 0x122   :  { %v431_v44 = vmul.f32 %v5099_v63, %v268_v43  ;;  %1213 = vmatmul.mubr.bf16.gmra.mrb[56].mxu0 %v5210_v41  ;;  %v494_v49 = vadd.f32 %v5108_v10, %v428_v37  ;;  %v4682_v63 = vld [vmem:[%s6422_s8 + $0x10] sm:$0xff]  }
 0x123   :  { %v496_v47 = vadd.f32 %v5101_v0, %v430_v40  ;;  %1220 = vmatprep.mubr.bf16.mxu0 %v5260_v24  ;;  %v4683_v0 = vld [vmem:[%s6422_s8 + $0x18] sm:$0xff]   ;;  %4503 = vmatpush3.bf16.msra.mxu0 %v4691_v4 }
 0x124   :  { %v497_v50 = vadd.f32 %v5108_v10, %v431_v44  ;;  %v4684_v10 = vld [vmem:[%s6422_s8 + $0x20] sm:$0xff]   ;;  %4504 = vmatprep.subr.bf16.mxu0 %v4692_v5 }
 0x125   :  { %v5346_v52 = vpack.c.bf16 %v496_v47, %v493_v39 }
 0x126   :  { %v5348_v54 = vpack.c.bf16 %v497_v50, %v494_v49 }
 0x127   :  { %4505 = vmatpush3.bf16.msra.mxu0 %v4692_v5 }
 0x128   :  { %803 = vmatprep.mubr.bf16.mxu1 %v5348_v54  ;;  %4506 = vmatprep.subr.bf16.mxu0 %v4693_v53 }
 0x129   :  { %804 = vmatmul.mubr.bf16.gmra.mrb[44].mxu1 %v5346_v52 }
 0x12a   :  { %1221 = vmatmul.mubr.bf16.gmra.mrb[60].mxu0 %v5253_v20  ;;  %4448 = vmatprep.mubr.bf16.mxu1 %v5129_v33 }
 0x12b   :  { %1228 = vmatprep.mubr.bf16.mxu0 %v5294_v51  ;;  %4507 = vmatpush3.bf16.msra.mxu0 %v4693_v53 }
 0x12c   :  { %4508 = vmatprep.subr.bf16.mxu0 %v4694_v9 }
 0x12f   :  { %4509 = vmatpush3.bf16.msra.mxu0 %v4694_v9 }
 0x131   :  { %4449 = vmatmul.mubr.bf16.vlgmr.msra.gmra.mrb[48].mxu1 %v5125_v29 }
 0x132   :  { %1229 = vmatmul.mubr.bf16.gmra.mrb[64].mxu0 %v5289_v48  ;;  %4452 = vmatprep.mubr.bf16.mxu1 %v5170_v8 }
 0x133   :  { %1236 = vmatprep.mubr.bf16.mxu0 %v5316_v14  ;;  %4465 = vmatpush3.bf16.msra.mxu1 %v4680_v11  ;;  %v4695_v11 = vld [vmem:[%s6424_s10 + $0x38] sm:$0xff]  }
 0x134   :  { %4466 = vmatprep.subr.bf16.mxu1 %v4681_v61  ;;  %4510 = vmatprep.subr.bf16.mxu0 %v4695_v11 }
 0x135   :  { %4511 = vmatpush3.bf16.msra.mxu0 %v4695_v11 }
 0x136   :  { %4142 = vmatprep.subr.bf16.mxu0 %v4696_v13 }
 0x137   :  { %4467 = vmatpush3.bf16.msra.mxu1 %v4681_v61 }
 0x138   :  { %4468 = vmatprep.subr.bf16.mxu1 %v4682_v63 }
 0x139   :  { %4453 = vmatmul.mubr.bf16.gmra.mrb[52].mxu1 %v5166_v3 }
 0x13a   :  { %1237 = vmatmul.mubr.bf16.gmra.mrb[68].mxu0 %v5314_v12  ;;  %4456 = vmatprep.mubr.bf16.mxu1 %v5216_v46 }
 0x13b   :  { %1244 = vmatprep.mubr.bf16.mxu0 %v5332_v34  ;;  %4469 = vmatpush3.bf16.msra.mxu1 %v4682_v63 }
 0x13c   :  { %4470 = vmatprep.subr.bf16.mxu1 %v4683_v0 }
 0x13f   :  { %4471 = vmatpush3.bf16.msra.mxu1 %v4683_v0 }
 0x140   :  { %4472 = vmatprep.subr.bf16.mxu1 %v4684_v10 }
 0x141   :  { %4457 = vmatmul.mubr.bf16.gmra.mrb[56].mxu1 %v5212_v42 }
 0x142   :  { %1245 = vmatmul.mubr.bf16.gmra.mrb[72].mxu0 %v5330_v30  ;;  %4460 = vmatprep.mubr.bf16.mxu1 %v5262_v6 }
 0x143   :  { %1252 = vmatprep.mubr.bf16.mxu0 %v5348_v54  ;;  %4473 = vmatpush3.bf16.msra.mxu1 %v4684_v10 }
 0x144   :  { %4474 = vmatprep.subr.bf16.mxu1 %v4685_v55 }
 0x147   :  { %4475 = vmatpush3.bf16.msra.mxu1 %v4685_v55 }
 0x148   :  { %4476 = vmatprep.subr.bf16.mxu1 %v4686_v56 }
 0x149   :  { %4461 = vmatmul.mubr.bf16.gmra.mrb[60].mxu1 %v5255_v21 }
 0x14a   :  { %1253 = vmatmul.mubr.bf16.gmra.mrb[76].mxu0 %v5346_v52 }
 0x14b   :  { %4477 = vmatpush3.bf16.msra.mxu1 %v4686_v56 }
 0x14c   :  { %4478 = vmatprep.subr.bf16.mxu1 %v4687_v57 }
 0x14f   :  { %4479 = vmatpush3.bf16.msra.mxu1 %v4687_v57 }
 0x1c4   :  { %v3966_v15 = vpop.f32.mrb[16].mxu1 }
 0x1c5   :  { %v4418_v16 = vpop.f32.mrb[32].mxu0  ;;  %v3967_v17 = vpop.f32.mrb[17].mxu1 }
 0x1c6   :  { %v3968_v18 = vadd.f32 %v3967_v17, %v3966_v15  ;;  %v846_v19 = vpop.f32.mrb[33].mxu0  ;;  %v3969_v62 = vpop.f32.mrb[18].mxu1 }
 0x1c7   :  { %v4419_v23 = vpop.f32.mrb[34].mxu0  ;;  %v3970_v25 = vpop.f32.mrb[19].mxu1 }
 0x1c8   :  { %v847_v27 = vadd.f32 %v3968_v18, %v846_v19  ;;  %v3971_v26 = vadd.f32 %v3970_v25, %v3969_v62  ;;  %v849_v31 = vpop.f32.mrb[35].mxu0 }
 0x1ca   :  { %v916_v36 = vmul.f32 %v5420_v22, %v847_v27  ;;  %v850_v37 = vadd.f32 %v3971_v26, %v849_v31 }
 0x1cc   :  { %v940_v38 = vadd.f32 %v5425_v35, %v916_v36  ;;  %v917_v39 = vmul.f32 %v5420_v22, %v850_v37  ;;  %v3972_v40 = vpop.f32.mrb[20].mxu1 }
 0x1cd   :  { %v4422_v43 = vpop.f32.mrb[36].mxu0  ;;  %v3973_v44 = vpop.f32.mrb[21].mxu1 }
 0x1ce   :  { %v941_v47 = vadd.f32 %v5425_v35, %v917_v39  ;;  %v3974_v49 = vadd.f32 %v3973_v44, %v3972_v40  ;;  %v862_v50 = vpop.f32.mrb[37].mxu0  ;;  %v3975_v61 = vpop.f32.mrb[22].mxu1  ;;  %v956_v10 = vmax.f32 %v940_v38, 0.0 }
 0x1cf   :  { %v4423_v63 = vpop.f32.mrb[38].mxu0  ;;  %v3976_v0 = vpop.f32.mrb[23].mxu1 }
 0x1d0   :  { %v957_v55 = vmax.f32 %v941_v47, 0.0  ;;  %v855_v56 = vadd.f32 %v4418_v16, %v3974_v49  ;;  %v3977_v57 = vadd.f32 %v3976_v0, %v3975_v61  ;;  %v865_v58 = vpop.f32.mrb[39].mxu0 }
 0x1d2   :  { %v918_v59 = vmul.f32 %v5420_v22, %v855_v56  ;;  %v858_v60 = vadd.f32 %v4419_v23, %v3977_v57  ;;  %v1421_v4 = vpack.c.bf16 %v957_v55, %v956_v10 }
 0x1d4   :  { %v942_v5 = vadd.f32 %v5425_v35, %v918_v59  ;;  %v919_v53 = vmul.f32 %v5420_v22, %v858_v60  ;;  %4480 = vmatprep.mubr.bf16.mxu1 %v1421_v4  ;;  %v3978_v9 = vpop.f32.mrb[24].mxu1 }
 0x1d5   :  { %v5435_v13 = vpop.f32.mrb[40].mxu0  ;;  %v3979_v15 = vpop.f32.mrb[25].mxu1 }
 0x1d6   :  { %v943_v11 = vadd.f32 %v5425_v35, %v919_v53  ;;  %v3980_v17 = vadd.f32 %v3979_v15, %v3978_v9  ;;  %v878_v18 = vpop.f32.mrb[41].mxu0  ;;  %v3981_v16 = vpop.f32.mrb[26].mxu1  ;;  %v958_v19 = vmax.f32 %v942_v5, 0.0 }
 0x1d7   :  { %v5437_v25 = vpop.f32.mrb[42].mxu0  ;;  %v3982_v23 = vpop.f32.mrb[27].mxu1 }
 0x1d8   :  { %v959_v62 = vmax.f32 %v943_v11, 0.0  ;;  %v863_v27 = vadd.f32 %v3980_v17, %v862_v50  ;;  %v3983_v26 = vadd.f32 %v3982_v23, %v3981_v16  ;;  %v881_v31 = vpop.f32.mrb[43].mxu0 }
 0x1da   :  { %v1422_v36 = vpack.c.bf16 %v959_v62, %v958_v19  ;;  %v920_v37 = vmul.f32 %v5420_v22, %v863_v27  ;;  %v866_v38 = vadd.f32 %v3983_v26, %v865_v58 }
 0x1dc   :  { %4481 = vmatmul.mubr.bf16.vlgmr.msra.gmra.mrb[64].mxu1 %v1422_v36  ;;  %v921_v39 = vmul.f32 %v5420_v22, %v866_v38  ;;  %v3984_v40 = vpop.f32.mrb[28].mxu1  ;;  %v944_v44 = vadd.f32 %v5425_v35, %v920_v37 }
 0x1dd   :  { %v5442_v47 = vpop.f32.mrb[44].mxu0  ;;  %v3985_v49 = vpop.f32.mrb[29].mxu1 }
 0x1de   :  { %v3986_v61 = vadd.f32 %v3985_v49, %v3984_v40  ;;  %v5444_v0 = vpop.f32.mrb[45].mxu0  ;;  %v3987_v10 = vpop.f32.mrb[30].mxu1  ;;  %v945_v50 = vadd.f32 %v5425_v35, %v921_v39  ;;  %v960_v60 = vmax.f32 %v944_v44, 0.0 }
 0x1df   :  { %v5447_v55 = vpop.f32.mrb[46].mxu0  ;;  %v3988_v56 = vpop.f32.mrb[31].mxu1 }
 0x1e0   :  { %v871_v57 = vadd.f32 %v4422_v43, %v3986_v61  ;;  %v3989_v58 = vadd.f32 %v3988_v56, %v3987_v10  ;;  %v5449_v59 = vpop.f32.mrb[47].mxu0  ;;  %v961_v4 = vmax.f32 %v945_v50, 0.0 }
 0x1e2   :  { %v922_v5 = vmul.f32 %v5420_v22, %v871_v57  ;;  %v874_v53 = vadd.f32 %v4423_v63, %v3989_v58  ;;  %v1423_v9 = vpack.c.bf16 %v961_v4, %v960_v60 }
 0x1e4   :  { %v923_v11 = vmul.f32 %v5420_v22, %v874_v53  ;;  %v3990_v15 = vpop.f32.mrb[32].mxu1  ;;  %4484 = vmatprep.mubr.bf16.mxu1 %v1423_v9  ;;  %v946_v17 = vadd.f32 %v5425_v35, %v922_v5 }
 0x1e5   :  { %v4046_v16 = vpop.f32.mrb[48].mxu0  ;;  %v3991_v19 = vpop.f32.mrb[33].mxu1 }
 0x1e6   :  { %v3992_v62 = vadd.f32 %v3991_v19, %v3990_v15  ;;  %v4047_v23 = vpop.f32.mrb[49].mxu0  ;;  %v3993_v43 = vpop.f32.mrb[34].mxu1  ;;  %v947_v27 = vadd.f32 %v5425_v35, %v923_v11  ;;  %v962_v40 = vmax.f32 %v946_v17, 0.0 }
 0x1e7   :  { %v5455_v26 = vadd.f32 %v4047_v23, %v4046_v16  ;;  %v4049_v36 = vpop.f32.mrb[50].mxu0  ;;  %v3994_v37 = vpop.f32.mrb[35].mxu1 }
 0x1e8   :  { %v879_v38 = vadd.f32 %v3992_v62, %v878_v18  ;;  %v3995_v63 = vadd.f32 %v3994_v37, %v3993_v43  ;;  %v4050_v39 = vpop.f32.mrb[51].mxu0  ;;  %v963_v44 = vmax.f32 %v947_v27, 0.0 }
 0x1e9   :  { %v5457_v49 = vadd.f32 %v4050_v39, %v4049_v36 }
 0x1ea   :  { %v924_v61 = vmul.f32 %v5420_v22, %v879_v38  ;;  %v882_v10 = vadd.f32 %v3995_v63, %v881_v31  ;;  %v1424_v50 = vpack.c.bf16 %v963_v44, %v962_v40 }
 0x1ec   :  { %v925_v56 = vmul.f32 %v5420_v22, %v882_v10  ;;  %v3996_v57 = vpop.f32.mrb[36].mxu1  ;;  %4485 = vmatmul.mubr.bf16.gmra.mrb[68].mxu1 %v1424_v50  ;;  %v948_v58 = vadd.f32 %v5425_v35, %v924_v61 }
 0x1ed   :  { %v4052_v60 = vpop.f32.mrb[52].mxu0  ;;  %v3997_v4 = vpop.f32.mrb[37].mxu1 }
 0x1ee   :  { %v3998_v5 = vadd.f32 %v3997_v4, %v3996_v57  ;;  %v4053_v18 = vpop.f32.mrb[53].mxu0  ;;  %v3999_v53 = vpop.f32.mrb[38].mxu1  ;;  %v949_v9 = vadd.f32 %v5425_v35, %v925_v56  ;;  %v964_v62 = vmax.f32 %v948_v58, 0.0 }
 0x1ef   :  { %v4054_v11 = vadd.f32 %v4053_v18, %v4052_v60  ;;  %v4055_v15 = vpop.f32.mrb[54].mxu0  ;;  %v4000_v17 = vpop.f32.mrb[39].mxu1 }
 0x1f0   :  { %v887_v16 = vadd.f32 %v5435_v13, %v3998_v5  ;;  %v4001_v31 = vadd.f32 %v4000_v17, %v3999_v53  ;;  %v4056_v19 = vpop.f32.mrb[55].mxu0  ;;  %v965_v23 = vmax.f32 %v949_v9, 0.0 }
 0x1f1   :  { %v5464_v43 = vadd.f32 %v4056_v19, %v4055_v15 }
 0x1f2   :  { %v926_v27 = vmul.f32 %v5420_v22, %v887_v16  ;;  %v890_v36 = vadd.f32 %v5437_v25, %v4001_v31  ;;  %v1425_v37 = vpack.c.bf16 %v965_v23, %v964_v62 }
 0x1f4   :  { %v927_v38 = vmul.f32 %v5420_v22, %v890_v36  ;;  %v4002_v63 = vpop.f32.mrb[40].mxu1  ;;  %4488 = vmatprep.mubr.bf16.mxu1 %v1425_v37  ;;  %v950_v39 = vadd.f32 %v5425_v35, %v926_v27 }
 0x1f5   :  { %v4058_v40 = vpop.f32.mrb[56].mxu0  ;;  %v4003_v44 = vpop.f32.mrb[41].mxu1 }
 0x1f6   :  { %v4004_v13 = vadd.f32 %v4003_v44, %v4002_v63  ;;  %v4059_v61 = vpop.f32.mrb[57].mxu0  ;;  %v4005_v10 = vpop.f32.mrb[42].mxu1  ;;  %v951_v50 = vadd.f32 %v5425_v35, %v927_v38  ;;  %v966_v5 = vmax.f32 %v950_v39, 0.0 }
 0x1f7   :  { %v5471_v56 = vadd.f32 %v4059_v61, %v4058_v40  ;;  %v4061_v57 = vpop.f32.mrb[58].mxu0  ;;  %v4006_v58 = vpop.f32.mrb[43].mxu1 }
 0x1f8   :  { %v895_v25 = vadd.f32 %v4004_v13, %v5444_v0  ;;  %v4007_v60 = vadd.f32 %v4006_v58, %v4005_v10  ;;  %v4062_v4 = vpop.f32.mrb[59].mxu0  ;;  %v967_v18 = vmax.f32 %v951_v50, 0.0 }
 0x1f9   :  { %v5474_v53 = vadd.f32 %v4062_v4, %v4061_v57  ;;  %v5488_v4 = vld [vmem:[%s6421_s7] ss:$0 sm:$0xff] }
 0x1fa   :  { %v928_v9 = vmul.f32 %v5420_v22, %v895_v25  ;;  %v898_v15 = vadd.f32 %v4007_v60, %v5449_v59  ;;  %v1426_v17 = vpack.c.bf16 %v967_v18, %v966_v5 }
 0x1fc   :  { %v929_v16 = vmul.f32 %v5420_v22, %v898_v15  ;;  %v4008_v31 = vpop.f32.mrb[44].mxu1  ;;  %4489 = vmatmul.mubr.bf16.gmra.mrb[72].mxu1 %v1426_v17  ;;  %v952_v19 = vadd.f32 %v5425_v35, %v928_v9 }
 0x1fd   :  { %v4064_v62 = vpop.f32.mrb[60].mxu0  ;;  %v4009_v23 = vpop.f32.mrb[45].mxu1 }
 0x1fe   :  { %v4010_v0 = vadd.f32 %v4009_v23, %v4008_v31  ;;  %v4065_v27 = vpop.f32.mrb[61].mxu0  ;;  %v4011_v36 = vpop.f32.mrb[46].mxu1  ;;  %v953_v37 = vadd.f32 %v5425_v35, %v929_v16  ;;  %v968_v13 = vmax.f32 %v952_v19, 0.0  ;;  %v5497_v31 = vld [vmem:[%s6421_s7 + $0x1] ss:$0 sm:$0xff]  ;;  %s6465_s7 = sld [smem:[#allocation5_spill]] }
 0x1ff   :  { %v4066_v38 = vadd.f32 %v4065_v27, %v4064_v62  ;;  %v4067_v63 = vpop.f32.mrb[62].mxu0  ;;  %v4012_v39 = vpop.f32.mrb[47].mxu1 }
 0x200   :  { %v903_v40 = vadd.f32 %v5442_v47, %v4010_v0  ;;  %v4013_v59 = vadd.f32 %v4012_v39, %v4011_v36  ;;  %v4068_v44 = vpop.f32.mrb[63].mxu0  ;;  %v969_v61 = vmax.f32 %v953_v37, 0.0 }
 0x201   :  { %v4069_v10 = vadd.f32 %v4068_v44, %v4067_v63 }
 0x202   :  { %v930_v50 = vmul.f32 %v5420_v22, %v903_v40  ;;  %v906_v57 = vadd.f32 %v5447_v55, %v4013_v59  ;;  %v1427_v58 = vpack.c.bf16 %v969_v61, %v968_v13 }
 0x204   :  { %v931_v25 = vmul.f32 %v5420_v22, %v906_v57  ;;  %v4450_v60 = vpop.f32.mrb[48].mxu1  ;;  %4492 = vmatprep.mubr.bf16.mxu1 %v1427_v58  ;;  %v954_v47 = vadd.f32 %v5425_v35, %v930_v50 }
 0x205   :  { %v4070_v5 = vpop.f32.mrb[64].mxu0  ;;  %v1304_v18 = vadd.f32 %v4450_v60, %v4054_v11  ;;  %v1295_v9 = vpop.f32.mrb[49].mxu1 }
 0x206   :  { %v4071_v15 = vpop.f32.mrb[65].mxu0  ;;  %v1296_v17 = vadd.f32 %v5455_v26, %v1295_v9  ;;  %v4451_v16 = vpop.f32.mrb[50].mxu1  ;;  %v955_v55 = vadd.f32 %v5425_v35, %v931_v25  ;;  %v970_v36 = vmax.f32 %v954_v47, 0.0 }
 0x207   :  { %v1367_v22 = vmul.f32 %v5488_v4, %v1304_v18  ;;  %v5499_v19 = vadd.f32 %v4071_v15, %v4070_v5  ;;  %v4073_v62 = vpop.f32.mrb[66].mxu0  ;;  %v1307_v23 = vadd.f32 %v4451_v16, %v5464_v43  ;;  %v1298_v11 = vpop.f32.mrb[51].mxu1 }
 0x208   :  { %v1365_v0 = vmul.f32 %v5488_v4, %v1296_v17  ;;  %v4074_v27 = vpop.f32.mrb[67].mxu0  ;;  %v1299_v26 = vadd.f32 %v5457_v49, %v1298_v11  ;;  %v971_v35 = vmax.f32 %v955_v55, 0.0 }
 0x209   :  { %v1368_v37 = vmul.f32 %v5488_v4, %v1307_v23  ;;  %v5505_v63 = vadd.f32 %v4074_v27, %v4073_v62  ;;  %v5512_v43 = vadd.f32 %v5497_v31, %v1367_v22 }
 0x20a   :  { %v5508_v39 = vadd.f32 %v5497_v31, %v1365_v0  ;;  %v1366_v40 = vmul.f32 %v5488_v4, %v1299_v26  ;;  %v1428_v59 = vpack.c.bf16 %v971_v35, %v970_v36 }
 0x20b   :  { %v5515_v44 = vadd.f32 %v5497_v31, %v1368_v37  ;;  %v1407_v9 = vmax.f32 %v5512_v43, 0.0 }
 0x20c   :  { %v5518_v49 = vadd.f32 %v5497_v31, %v1366_v40  ;;  %v4454_v13 = vpop.f32.mrb[52].mxu1  ;;  %4493 = vmatmul.mubr.bf16.gmra.mrb[76].mxu1 %v1428_v59  ;;  %v1405_v25 = vmax.f32 %v5508_v39, 0.0 }
 0x20d   :  { %v6448_v61 = vmax.f32 %v5515_v44, 0.0  ;;  %v4076_v50 = vpop.f32.mrb[68].mxu0  ;;  %v1320_v57 = vadd.f32 %v4454_v13, %v4066_v38  ;;  %v1311_v58 = vpop.f32.mrb[53].mxu1  ;;  %1855 = vmatprep.mubr.bf16.mxu1 %v6449_v2  ;;  %v4699_v13 = vld [vmem:[%s6426_s12 + $0x8] sm:$0xff]  }
 0x20e   :  { %v1406_v60 = vmax.f32 %v5518_v49, 0.0  ;;  %v4077_v47 = vpop.f32.mrb[69].mxu0  ;;  %v1312_v5 = vadd.f32 %v5471_v56, %v1311_v58  ;;  %v4455_v18 = vpop.f32.mrb[54].mxu1  ;;  %v4697_v56 = vld [vmem:[%s6426_s12] sm:$0xff]  }
 0x20f   :  { %v1371_v15 = vmul.f32 %v5488_v4, %v1320_v57  ;;  %v4078_v17 = vadd.f32 %v4077_v47, %v4076_v50  ;;  %v4079_v16 = vpop.f32.mrb[70].mxu0  ;;  %v1323_v55 = vadd.f32 %v4455_v18, %v4069_v10  ;;  %v1314_v22 = vpop.f32.mrb[55].mxu1  ;;  %v1591_v10 = vpack.c.bf16 %v6448_v61, %v1407_v9 }
 0x210   :  { %v1369_v38 = vmul.f32 %v5488_v4, %v1312_v5  ;;  %v4080_v62 = vpop.f32.mrb[71].mxu0  ;;  %v1315_v23 = vadd.f32 %v5474_v53, %v1314_v22  ;;  %v1590_v11 = vpack.c.bf16 %v1406_v60, %v1405_v25  ;;  %v4698_v53 = vld [vmem:[%s6426_s12 + $0x48] sm:$0xff]   ;;  %v4700_v5 = vld [vmem:[%s6426_s12 + $0x50] sm:$0xff]  }
 0x211   :  { %v1372_v0 = vmul.f32 %v5488_v4, %v1323_v55  ;;  %v4081_v27 = vadd.f32 %v4080_v62, %v4079_v16  ;;  %v5549_v35 = vadd.f32 %v5497_v31, %v1371_v15 }
 0x212   :  { %v5545_v26 = vadd.f32 %v5497_v31, %v1369_v38  ;;  %v1370_v36 = vmul.f32 %v5488_v4, %v1315_v23  ;;  %4512 = vmatprep.mubr.bf16.mxu0 %v1590_v11 }
 0x213   :  { %v5552_v37 = vadd.f32 %v5497_v31, %v1372_v0  ;;  %4513 = vmatmul.mubr.bf16.vlgmr.msra.gmra.mrb[80].mxu0 %v1591_v10  ;;  %v6445_v38 = vmax.f32 %v5549_v35, 0.0 }
 0x214   :  { %v5555_v40 = vadd.f32 %v5497_v31, %v1370_v36  ;;  %v4458_v59 = vpop.f32.mrb[56].mxu1  ;;  %4143 = vmatpush3.bf16.msra.mxu0 %v4697_v56  ;;  %v6447_v18 = vmax.f32 %v5545_v26, 0.0  ;;  %v4701_v36 = vld [vmem:[%s6426_s12 + $0x10] sm:$0xff]  }
 0x215   :  { %v6444_v50 = vmax.f32 %v5552_v37, 0.0  ;;  %v4082_v57 = vpop.f32.mrb[72].mxu0  ;;  %v1336_v58 = vadd.f32 %v4458_v59, %v4078_v17  ;;  %v1327_v47 = vpop.f32.mrb[57].mxu1  ;;  %4144 = vmatprep.subr.bf16.mxu0 %v4698_v53 }
 0x216   :  { %v6446_v15 = vmax.f32 %v5555_v40, 0.0  ;;  %v4083_v16 = vpop.f32.mrb[73].mxu0  ;;  %v1328_v55 = vadd.f32 %v5499_v19, %v1327_v47  ;;  %v4459_v22 = vpop.f32.mrb[58].mxu1 }
 0x217   :  { %v1375_v62 = vmul.f32 %v5488_v4, %v1336_v58  ;;  %v4084_v23 = vadd.f32 %v4083_v16, %v4082_v57  ;;  %v4085_v17 = vpop.f32.mrb[74].mxu0  ;;  %v1339_v11 = vadd.f32 %v4459_v22, %v4081_v27  ;;  %v1330_v56 = vpop.f32.mrb[59].mxu1  ;;  %v1593_v27 = vpack.c.bf16 %v6444_v50, %v6445_v38  ;;  %v4703_v22 = vld [vmem:[%s6426_s12 + $0x18] sm:$0xff]  }
 0x218   :  { %v1373_v10 = vmul.f32 %v5488_v4, %v1328_v55  ;;  %v4086_v0 = vpop.f32.mrb[75].mxu0  ;;  %v1331_v53 = vadd.f32 %v5505_v63, %v1330_v56  ;;  %4145 = vmatpush3.bf16.msra.mxu0 %v4699_v13  ;;  %v1592_v19 = vpack.c.bf16 %v6446_v15, %v6447_v18  ;;  %v4702_v63 = vld [vmem:[%s6426_s12 + $0x58] sm:$0xff]  }
 0x219   :  { %v1376_v59 = vmul.f32 %v5488_v4, %v1339_v11  ;;  %v4087_v57 = vadd.f32 %v4086_v0, %v4085_v17  ;;  %4146 = vmatprep.subr.bf16.mxu0 %v4700_v5  ;;  %v5591_v47 = vadd.f32 %v5497_v31, %v1375_v62  ;;  %v4704_v62 = vld [vmem:[%s6426_s12 + $0x60] sm:$0xff]  }
 0x21a   :  { %v5587_v13 = vadd.f32 %v5497_v31, %v1373_v10  ;;  %v1374_v58 = vmul.f32 %v5488_v4, %v1331_v53  ;;  %4516 = vmatprep.mubr.bf16.mxu0 %v1592_v19 }
 0x21b   :  { %v5594_v16 = vadd.f32 %v5497_v31, %v1376_v59  ;;  %4517 = vmatmul.mubr.bf16.gmra.mrb[84].mxu0 %v1593_v27  ;;  %v1415_v59 = vmax.f32 %v5591_v47, 0.0 }
 0x21c   :  { %v5597_v55 = vadd.f32 %v5497_v31, %v1374_v58  ;;  %v4462_v5 = vpop.f32.mrb[60].mxu1  ;;  %4147 = vmatpush3.bf16.msra.mxu0 %v4701_v36  ;;  %v1413_v10 = vmax.f32 %v5587_v13, 0.0 }
 0x21d   :  { %v1416_v17 = vmax.f32 %v5594_v16, 0.0  ;;  %v4088_v11 = vpop.f32.mrb[76].mxu0  ;;  %v1343_v56 = vpop.f32.mrb[61].mxu1  ;;  %4148 = vmatprep.subr.bf16.mxu0 %v4702_v63 }
 0x21e   :  { %v1414_v0 = vmax.f32 %v5597_v55, 0.0  ;;  %v4089_v53 = vpop.f32.mrb[77].mxu0  ;;  %v1344_v19 = vadd.f32 %v4084_v23, %v1343_v56  ;;  %v4463_v36 = vpop.f32.mrb[62].mxu1  ;;  %v4705_v23 = vld [vmem:[%s6426_s12 + $0x20] sm:$0xff]  }
 0x21f   :  { %v4090_v27 = vadd.f32 %v4089_v53, %v4088_v11  ;;  %v4091_v58 = vpop.f32.mrb[78].mxu0  ;;  %v1346_v50 = vpop.f32.mrb[63].mxu1  ;;  %v1595_v11 = vpack.c.bf16 %v1416_v17, %v1415_v59 }
 0x220   :  { %v1377_v38 = vmul.f32 %v5488_v4, %v1344_v19  ;;  %v4092_v15 = vpop.f32.mrb[79].mxu0  ;;  %v1347_v63 = vadd.f32 %v4087_v57, %v1346_v50  ;;  %4149 = vmatpush3.bf16.msra.mxu0 %v4703_v22  ;;  %v1594_v18 = vpack.c.bf16 %v1414_v0, %v1413_v10  ;;  %v4706_v50 = vld [vmem:[%s6426_s12 + $0x68] sm:$0xff]  }
 0x221   :  { %v1352_v56 = vadd.f32 %v4462_v5, %v4090_v27  ;;  %v4093_v61 = vadd.f32 %v4092_v15, %v4091_v58  ;;  %4150 = vmatprep.subr.bf16.mxu0 %v4704_v62  ;;  %v4707_v62 = vld [vmem:[%s6426_s12 + $0x28] sm:$0xff]   ;;  %v4709_v58 = vld [vmem:[%s6426_s12 + $0x30] sm:$0xff]  }
 0x222   :  { %v5625_v57 = vadd.f32 %v5497_v31, %v1377_v38  ;;  %v1378_v22 = vmul.f32 %v5488_v4, %v1347_v63  ;;  %4520 = vmatprep.mubr.bf16.mxu0 %v1594_v18  ;;  %v4708_v18 = vld [vmem:[%s6426_s12 + $0x70] sm:$0xff]  }
 0x223   :  { %v1379_v53 = vmul.f32 %v5488_v4, %v1352_v56  ;;  %v1355_v5 = vadd.f32 %v4463_v36, %v4093_v61  ;;  %4521 = vmatmul.mubr.bf16.gmra.mrb[88].mxu0 %v1595_v11  ;;  %v4711_v11 = vld [vmem:[%s6426_s12 + $0x38] sm:$0xff]  }
 0x224   :  { %v5630_v15 = vadd.f32 %v5497_v31, %v1378_v22  ;;  %4151 = vmatpush3.bf16.msra.mxu0 %v4705_v23  ;;  %v1417_v61 = vmax.f32 %v5625_v57, 0.0 }
 0x225   :  { %v1380_v19 = vmul.f32 %v5488_v4, %v1355_v5  ;;  %4152 = vmatprep.subr.bf16.mxu0 %v4706_v50  ;;  %v5637_v38 = vadd.f32 %v5497_v31, %v1379_v53 }
 0x226   :  { %v1418_v36 = vmax.f32 %v5630_v15, 0.0 }
 0x227   :  { %v5645_v27 = vadd.f32 %v5497_v31, %v1380_v19  ;;  %v1419_v63 = vmax.f32 %v5637_v38, 0.0  ;;  %v4710_v31 = vld [vmem:[%s6426_s12 + $0x78] sm:$0xff]   ;;  %v5992_v38 = vld [vmem:[%s6427_s13 + $0x1] ss:$0 sm:$0xff] }
 0x228   :  { %4153 = vmatpush3.bf16.msra.mxu0 %v4707_v62  ;;  %v1596_v4 = vpack.c.bf16 %v1418_v36, %v1417_v61 }
 0x229   :  { %v6451_v23 = vmax.f32 %v5645_v27, 0.0  ;;  %4154 = vmatprep.subr.bf16.mxu0 %v4708_v18 }
 0x22a   :  { %4524 = vmatprep.mubr.bf16.mxu0 %v1596_v4 }
 0x22b   :  { %v1597_v56 = vpack.c.bf16 %v6451_v23, %v1419_v63 }
 0x22c   :  { %4155 = vmatpush3.bf16.msra.mxu0 %v4709_v58 }
 0x22d   :  { %4525 = vmatmul.mubr.bf16.gmra.mrb[92].mxu0 %v1597_v56  ;;  %4156 = vmatprep.subr.bf16.mxu0 %v4710_v31  ;;  %v4728_v31 = vld [vmem:[%s6428_s14 + $0x40] sm:$0xff]  }
 0x22e   :  { %2334 = vmatprep.mubr.bf16.mxu0 %v5127_v32  ;;  %v4729_v56 = vld [vmem:[%s6428_s14] sm:$0xff]  }
 0x230   :  { %4157 = vmatpush3.bf16.msra.mxu0 %v4711_v11  ;;  %v4730_v11 = vld [vmem:[%s6428_s14 + $0x48] sm:$0xff]  }
 0x231   :  { %4222 = vmatprep.subr.bf16.mxu0 %v4728_v31  ;;  %v4736_v31 = vld [vmem:[%s6428_s14 + $0x60] sm:$0xff]  }
 0x235   :  { %2335 = vmatmul.mubr.bf16.vlgmr.msra.gmra.mrb[96].mxu0 %v5123_v28 }
 0x236   :  { %2342 = vmatprep.mubr.bf16.mxu0 %v5168_v7  ;;  %4223 = vmatpush3.bf16.msra.mxu0 %v4729_v56  ;;  %v4737_v56 = vld [vmem:[%s6428_s14 + $0x20] sm:$0xff]  }
 0x237   :  { %4224 = vmatprep.subr.bf16.mxu0 %v4730_v11 }
 0x23d   :  { %2343 = vmatmul.mubr.bf16.gmra.mrb[100].mxu0 %v5164_v1 }
 0x23e   :  { %2350 = vmatprep.mubr.bf16.mxu0 %v5214_v45 }
 0x245   :  { %2351 = vmatmul.mubr.bf16.gmra.mrb[104].mxu0 %v5210_v41 }
 0x246   :  { %2358 = vmatprep.mubr.bf16.mxu0 %v5260_v24 }
 0x24d   :  { %2359 = vmatmul.mubr.bf16.gmra.mrb[108].mxu0 %v5253_v20 }
 0x24e   :  { %2366 = vmatprep.mubr.bf16.mxu0 %v5294_v51 }
 0x255   :  { %2367 = vmatmul.mubr.bf16.gmra.mrb[112].mxu0 %v5289_v48 }
 0x256   :  { %2374 = vmatprep.mubr.bf16.mxu0 %v5316_v14 }
 0x25d   :  { %2375 = vmatmul.mubr.bf16.gmra.mrb[116].mxu0 %v5314_v12 }
 0x25e   :  { %2382 = vmatprep.mubr.bf16.mxu0 %v5332_v34 }
 0x265   :  { %2383 = vmatmul.mubr.bf16.gmra.mrb[120].mxu0 %v5330_v30 }
 0x266   :  { %2390 = vmatprep.mubr.bf16.mxu0 %v5348_v54 }
 0x26d   :  { %2391 = vmatmul.mubr.bf16.gmra.mrb[124].mxu0 %v5346_v52 }
 0x2af   :  { %v4482_v28 = vpop.f32.mrb[64].mxu1 }
 0x2b0   :  { %v1527_v32 = vpop.f32.mrb[65].mxu1 }
 0x2b1   :  { %v4483_v1 = vpop.f32.mrb[66].mxu1 }
 0x2b2   :  { %v1761_v7 = vpack.c.bf16 %v4483_v1, %v4482_v28  ;;  %v1530_v41 = vpop.f32.mrb[67].mxu1 }
 0x2b3   :  { %v1759_v45 = vpack.c.bf16 %v1530_v41, %v1527_v32 }
 0x2bf   :  { %v4486_v20 = vpop.f32.mrb[68].mxu1 }
 0x2c0   :  { %v1543_v24 = vpop.f32.mrb[69].mxu1 }
 0x2c1   :  { %v4487_v48 = vpop.f32.mrb[70].mxu1 }
 0x2c2   :  { %v1765_v51 = vpack.c.bf16 %v4487_v48, %v4486_v20  ;;  %v1546_v14 = vpop.f32.mrb[71].mxu1  ;;  %v4731_v20 = vld [vmem:[%s6428_s14 + $0x8] sm:$0xff]   ;;  %v4732_v48 = vld [vmem:[%s6428_s14 + $0x50] sm:$0xff]  }
 0x2c3   :  { %v1763_v12 = vpack.c.bf16 %v1546_v14, %v1543_v24  ;;  %4225 = vmatpush3.bf16.msra.mxu0 %v4731_v20  ;;  %v4733_v14 = vld [vmem:[%s6428_s14 + $0x10] sm:$0xff]  }
 0x2c4   :  { %4226 = vmatprep.subr.bf16.mxu0 %v4732_v48 }
 0x2c7   :  { %4227 = vmatpush3.bf16.msra.mxu0 %v4733_v14 }
 0x2cf   :  { %v5682_v50 = vpop.f32.mrb[72].mxu1 }
 0x2d0   :  { %v1559_v34 = vpop.f32.mrb[73].mxu1 }
 0x2d1   :  { %v4491_v30 = vpop.f32.mrb[74].mxu1 }
 0x2d2   :  { %v1769_v54 = vpack.c.bf16 %v4491_v30, %v5682_v50  ;;  %v1562_v22 = vpop.f32.mrb[75].mxu1 }
 0x2d3   :  { %v1767_v52 = vpack.c.bf16 %v1562_v22, %v1559_v34  ;;  %v4734_v34 = vld [vmem:[%s6428_s14 + $0x58] sm:$0xff]  }
 0x2d4   :  { %4228 = vmatprep.subr.bf16.mxu0 %v4734_v34 }
 0x2df   :  { %v5685_v53 = vpop.f32.mrb[76].mxu1 }
 0x2e0   :  { %v1575_v5 = vpop.f32.mrb[77].mxu1 }
 0x2e1   :  { %v5687_v62 = vpop.f32.mrb[78].mxu1 }
 0x2e2   :  { %v1773_v19 = vpack.c.bf16 %v5687_v62, %v5685_v53  ;;  %v1578_v18 = vpop.f32.mrb[79].mxu1 }
 0x2e3   :  { %v1771_v4 = vpack.c.bf16 %v1578_v18, %v1575_v5 }
 0x2e6   :  { %v4514_v58 = vpop.f32.mrb[80].mxu0 }
 0x2e7   :  { %v1696_v28 = vpop.f32.mrb[81].mxu0 }
 0x2e8   :  { %v4515_v32 = vpop.f32.mrb[82].mxu0 }
 0x2e9   :  { %v1762_v1 = vpack.c.bf16 %v4515_v32, %v4514_v58  ;;  %v1699_v41 = vpop.f32.mrb[83].mxu0 }
 0x2ea   :  { %v1760_v24 = vpack.c.bf16 %v1699_v41, %v1696_v28 }
 0x2ec   :  { %1823 = vmatprep.subr.bf16.mxu1 %v1760_v24 }
 0x2ed   :  { %1824 = vmatpush1.bf16.msra.mxu1 %v1759_v45  ;;  %v4735_v45 = vld [vmem:[%s6428_s14 + $0x18] sm:$0xff]  }
 0x2ee   :  { %v4518_v50 = vpop.f32.mrb[84].mxu0  ;;  %1825 = vmatprep.subr.bf16.mxu1 %v1762_v1  ;;  %4229 = vmatpush3.bf16.msra.mxu0 %v4735_v45 }
 0x2ef   :  { %v1712_v30 = vpop.f32.mrb[85].mxu0  ;;  %4230 = vmatprep.subr.bf16.mxu0 %v4736_v31  ;;  %v4713_v31 = vld [vmem:[%s6465_s7 + $0x8] sm:$0xff]  }
 0x2f0   :  { %v4519_v22 = vpop.f32.mrb[86].mxu0 }
 0x2f1   :  { %v1766_v5 = vpack.c.bf16 %v4519_v22, %v4518_v50  ;;  %v1715_v18 = vpop.f32.mrb[87].mxu0  ;;  %1826 = vmatpush1.bf16.msra.mxu1 %v1761_v7 }
 0x2f2   :  { %v1764_v58 = vpack.c.bf16 %v1715_v18, %v1712_v30  ;;  %4231 = vmatpush3.bf16.msra.mxu0 %v4737_v56  ;;  %v4718_v18 = vld [vmem:[%s6426_s12 + $0x88] sm:$0xff]  }
 0x2f4   :  { %1827 = vmatprep.subr.bf16.mxu1 %v1764_v58  ;;  %v4720_v58 = vld [vmem:[%s6426_s12 + $0x90] sm:$0xff]  }
 0x2f5   :  { %1828 = vmatpush1.bf16.msra.mxu1 %v1763_v12 }
 0x2f6   :  { %v4522_v11 = vpop.f32.mrb[88].mxu0  ;;  %1829 = vmatprep.subr.bf16.mxu1 %v1766_v5 }
 0x2f7   :  { %v1728_v7 = vpop.f32.mrb[89].mxu0 }
 0x2f8   :  { %v4523_v28 = vpop.f32.mrb[90].mxu0 }
 0x2f9   :  { %v1770_v32 = vpack.c.bf16 %v4523_v28, %v4522_v11  ;;  %v1731_v1 = vpop.f32.mrb[91].mxu0  ;;  %1830 = vmatpush1.bf16.msra.mxu1 %v1765_v51  ;;  %v4717_v51 = vld [vmem:[%s6426_s12 + $0x80] sm:$0xff]  }
 0x2fa   :  { %v1768_v41 = vpack.c.bf16 %v1731_v1, %v1728_v7  ;;  %v4721_v7 = vld [vmem:[%s6426_s12 + $0x98] sm:$0xff]  }
 0x2fc   :  { %1831 = vmatprep.subr.bf16.mxu1 %v1768_v41 }
 0x2fd   :  { %1832 = vmatpush1.bf16.msra.mxu1 %v1767_v52 }
 0x2fe   :  { %1833 = vmatprep.subr.bf16.mxu1 %v1770_v32  ;;  %v4723_v32 = vld [vmem:[%s6426_s12 + $0xa0] sm:$0xff]  }
 0x300   :  { %v4526_v20 = vpop.f32.mrb[92].mxu0 }
 0x301   :  { %v1744_v12 = vpop.f32.mrb[93].mxu0  ;;  %1834 = vmatpush1.bf16.msra.mxu1 %v1769_v54  ;;  %v4712_v54 = vld [vmem:[%s6465_s7] sm:$0xff]  }
 0x302   :  { %v4527_v24 = vpop.f32.mrb[94].mxu0 }
 0x303   :  { %v1774_v48 = vpack.c.bf16 %v4527_v24, %v4526_v20  ;;  %v1747_v14 = vpop.f32.mrb[95].mxu0 }
 0x304   :  { %v1772_v50 = vpack.c.bf16 %v1747_v14, %v1744_v12  ;;  %v4714_v12 = vld [vmem:[%s6465_s7 + $0x10] sm:$0xff]   ;;  %v4724_v14 = vld [vmem:[%s6426_s12 + $0xa8] sm:$0xff]  }
 0x306   :  { %1835 = vmatprep.subr.bf16.mxu1 %v1772_v50 }
 0x307   :  { %1836 = vmatpush1.bf16.msra.mxu1 %v1771_v4 }
 0x308   :  { %1837 = vmatprep.subr.bf16.mxu1 %v1774_v48  ;;  %v4158_v34 = vpop.f32.mrb[96].mxu0 }
 0x309   :  { %v4159_v30 = vpop.f32.mrb[97].mxu0 }
 0x30a   :  { %v5724_v22 = vadd.f32 %v4159_v30, %v4158_v34  ;;  %v4161_v52 = vpop.f32.mrb[98].mxu0  ;;  %v4726_v34 = vld [vmem:[%s6426_s12 + $0xb0] sm:$0xff]  }
 0x30b   :  { %1838 = vmatpush1.bf16.msra.mxu1 %v1773_v19  ;;  %v4162_v5 = vpop.f32.mrb[99].mxu0 }
 0x30c   :  { %v5732_v4 = vadd.f32 %v4162_v5, %v4161_v52  ;;  %4528 = vmatprep.subr.bf16.mxu1 %v4717_v51 }
 0x30e   :  { %1856 = vmatmul.mubr.bf16.vlgmr.msra.gmra.mrb[80].mxu1 %v4712_v54  ;;  %v4715_v54 = vld [vmem:[%s6465_s7 + $0x18] sm:$0xff]  }
 0x30f   :  { %1865 = vmatprep.mubr.bf16.mxu1 %v6449_v2  ;;  %4529 = vmatpush3.bf16.msra.mxu1 %v4717_v51 }
 0x310   :  { %v4164_v45 = vpop.f32.mrb[100].mxu0  ;;  %4530 = vmatprep.subr.bf16.mxu1 %v4718_v18 }
 0x311   :  { %v4165_v53 = vpop.f32.mrb[101].mxu0 }
 0x312   :  { %v5741_v62 = vadd.f32 %v4165_v53, %v4164_v45  ;;  %v4167_v19 = vpop.f32.mrb[102].mxu0  ;;  %v4727_v45 = vld [vmem:[%s6426_s12 + $0xb8] sm:$0xff]  }
 0x313   :  { %v4168_v56 = vpop.f32.mrb[103].mxu0  ;;  %4531 = vmatpush3.bf16.msra.mxu1 %v4718_v18 }
 0x314   :  { %v5746_v11 = vadd.f32 %v4168_v56, %v4167_v19  ;;  %4532 = vmatprep.subr.bf16.mxu1 %v4720_v58  ;;  %v4716_v56 = vld [vmem:[%s6465_s7 + $0x20] sm:$0xff]  }
 0x316   :  { %1866 = vmatmul.mubr.bf16.gmra.mrb[84].mxu1 %v4713_v31 }
 0x317   :  { %1875 = vmatprep.mubr.bf16.mxu1 %v6449_v2  ;;  %4533 = vmatpush3.bf16.msra.mxu1 %v4720_v58 }
 0x318   :  { %v4170_v28 = vpop.f32.mrb[104].mxu0  ;;  %4534 = vmatprep.subr.bf16.mxu1 %v4721_v7 }
 0x319   :  { %v4171_v1 = vpop.f32.mrb[105].mxu0 }
 0x31a   :  { %v5755_v41 = vadd.f32 %v4171_v1, %v4170_v28  ;;  %v4173_v20 = vpop.f32.mrb[106].mxu0 }
 0x31b   :  { %v4174_v24 = vpop.f32.mrb[107].mxu0  ;;  %4535 = vmatpush3.bf16.msra.mxu1 %v4721_v7 }
 0x31c   :  { %v5760_v48 = vadd.f32 %v4174_v24, %v4173_v20  ;;  %4536 = vmatprep.subr.bf16.mxu1 %v4723_v32  ;;  %v4719_v24 = vld [vmem:[%s6465_s7 + $0x28] sm:$0xff]  }
 0x31e   :  { %1876 = vmatmul.mubr.bf16.gmra.mrb[88].mxu1 %v4714_v12 }
 0x31f   :  { %1885 = vmatprep.mubr.bf16.mxu1 %v6449_v2  ;;  %4537 = vmatpush3.bf16.msra.mxu1 %v4723_v32 }
 0x320   :  { %v4176_v50 = vpop.f32.mrb[108].mxu0  ;;  %4538 = vmatprep.subr.bf16.mxu1 %v4724_v14 }
 0x321   :  { %v4177_v51 = vpop.f32.mrb[109].mxu0 }
 0x322   :  { %v5769_v30 = vadd.f32 %v4177_v51, %v4176_v50  ;;  %v4179_v52 = vpop.f32.mrb[110].mxu0 }
 0x323   :  { %v4180_v5 = vpop.f32.mrb[111].mxu0  ;;  %4539 = vmatpush3.bf16.msra.mxu1 %v4724_v14 }
 0x324   :  { %v5774_v18 = vadd.f32 %v4180_v5, %v4179_v52  ;;  %4540 = vmatprep.subr.bf16.mxu1 %v4726_v34  ;;  %v4722_v5 = vld [vmem:[%s6465_s7 + $0x30] sm:$0xff]  }
 0x326   :  { %1886 = vmatmul.mubr.bf16.gmra.mrb[92].mxu1 %v4715_v54 }
 0x327   :  { %1895 = vmatprep.mubr.bf16.mxu1 %v6449_v2  ;;  %4541 = vmatpush3.bf16.msra.mxu1 %v4726_v34 }
 0x328   :  { %v4182_v58 = vpop.f32.mrb[112].mxu0  ;;  %4542 = vmatprep.subr.bf16.mxu1 %v4727_v45 }
 0x329   :  { %v4183_v53 = vpop.f32.mrb[113].mxu0 }
 0x32a   :  { %v5780_v19 = vadd.f32 %v4183_v53, %v4182_v58  ;;  %v4185_v31 = vpop.f32.mrb[114].mxu0 }
 0x32b   :  { %v4186_v7 = vpop.f32.mrb[115].mxu0  ;;  %4543 = vmatpush3.bf16.msra.mxu1 %v4727_v45 }
 0x32c   :  { %v5785_v28 = vadd.f32 %v4186_v7, %v4185_v31 }
 0x32e   :  { %1896 = vmatmul.mubr.bf16.gmra.mrb[96].mxu1 %v4716_v56 }
 0x32f   :  { %1905 = vmatprep.mubr.bf16.mxu1 %v6449_v2 }
 0x330   :  { %v4188_v32 = vpop.f32.mrb[116].mxu0 }
 0x331   :  { %v4189_v1 = vpop.f32.mrb[117].mxu0 }
 0x332   :  { %v5788_v20 = vadd.f32 %v4189_v1, %v4188_v32  ;;  %v4191_v12 = vpop.f32.mrb[118].mxu0  ;;  %v4725_v32 = vld [vmem:[%s6465_s7 + $0x38] sm:$0xff]  }
 0x333   :  { %v4192_v14 = vpop.f32.mrb[119].mxu0 }
 0x334   :  { %v5793_v50 = vadd.f32 %v4192_v14, %v4191_v12  ;;  %v4747_v14 = vld [vmem:[%s6430_s16 + $0x18] sm:$0xff]  }
 0x336   :  { %1906 = vmatmul.mubr.bf16.gmra.mrb[100].mxu1 %v4719_v24  ;;  %v4738_v24 = vld [vmem:[%s6428_s14 + $0x68] sm:$0xff]  }
 0x337   :  { %1915 = vmatprep.mubr.bf16.mxu1 %v6449_v2  ;;  %4232 = vmatprep.subr.bf16.mxu0 %v4738_v24 }
 0x338   :  { %v4194_v34 = vpop.f32.mrb[120].mxu0 }
 0x339   :  { %v4195_v51 = vpop.f32.mrb[121].mxu0 }
 0x33a   :  { %v5796_v52 = vadd.f32 %v4195_v51, %v4194_v34  ;;  %v4197_v54 = vpop.f32.mrb[122].mxu0  ;;  %v4748_v34 = vld [vmem:[%s6430_s16 + $0x20] sm:$0xff]   ;;  %v4749_v51 = vld [vmem:[%s6430_s16 + $0x28] sm:$0xff]  }
 0x33b   :  { %v4198_v45 = vpop.f32.mrb[123].mxu0 }
 0x33c   :  { %v5801_v58 = vadd.f32 %v4198_v45, %v4197_v54  ;;  %v4750_v54 = vld [vmem:[%s6430_s16 + $0x30] sm:$0xff]   ;;  %v5864_v45 = vld [vmem:[%s6432_s18] sm:$0xff]  }
 0x33e   :  { %1916 = vmatmul.mubr.bf16.gmra.mrb[104].mxu1 %v4722_v5  ;;  %v4751_v5 = vld [vmem:[%s6430_s16 + $0x38] sm:$0xff]  }
 0x33f   :  { %1925 = vmatprep.mubr.bf16.mxu1 %v6449_v2 }
 0x340   :  { %v4200_v53 = vpop.f32.mrb[124].mxu0 }
 0x341   :  { %v4201_v31 = vpop.f32.mrb[125].mxu0 }
 0x342   :  { %v5804_v56 = vadd.f32 %v4201_v31, %v4200_v53  ;;  %v4203_v7 = vpop.f32.mrb[126].mxu0  ;;  %v5870_v53 = vld [vmem:[%s6423_s9] ss:$0 sm:$0xff] }
 0x343   :  { %v4204_v1 = vpop.f32.mrb[127].mxu0  ;;  %v5875_v31 = vld [vmem:[%s6425_s11] ss:$0 sm:$0xff] }
 0x344   :  { %v5809_v12 = vadd.f32 %v4204_v1, %v4203_v7 }
 0x346   :  { %1926 = vmatmul.mubr.bf16.gmra.mrb[108].mxu1 %v4725_v32  ;;  %v5880_v32 = vld [vmem:[%s6423_s9 + $0x1] ss:$0 sm:$0xff] }
 0x347   :  { %4544 = vmatprep.mubr.bf16.mxu1 %v5129_v33  ;;  %v4739_v33 = vld [vmem:[%s6428_s14 + $0x28] sm:$0xff]  }
 0x348   :  { %4233 = vmatpush3.bf16.msra.mxu0 %v4739_v33  ;;  %v5886_v33 = vld [vmem:[%s6425_s11 + $0x1] ss:$0 sm:$0xff] }
 0x34e   :  { %4545 = vmatmul.mubr.bf16.vlgmr.msra.gmra.mrb[112].mxu1 %v5125_v29  ;;  %v4740_v29 = vld [vmem:[%s6428_s14 + $0x70] sm:$0xff]  }
 0x34f   :  { %4548 = vmatprep.mubr.bf16.mxu1 %v5170_v8  ;;  %4234 = vmatprep.subr.bf16.mxu0 %v4740_v29  ;;  %v4742_v8 = vld [vmem:[%s6428_s14 + $0x78] sm:$0xff]  }
 0x356   :  { %4549 = vmatmul.mubr.bf16.gmra.mrb[116].mxu1 %v5166_v3  ;;  %v4741_v3 = vld [vmem:[%s6428_s14 + $0x30] sm:$0xff]  }
 0x357   :  { %4552 = vmatprep.mubr.bf16.mxu1 %v5216_v46  ;;  %4235 = vmatpush3.bf16.msra.mxu0 %v4741_v3  ;;  %v4744_v46 = vld [vmem:[%s6430_s16] sm:$0xff]  }
 0x358   :  { %4236 = vmatprep.subr.bf16.mxu0 %v4742_v8  ;;  %4560 = vmatprep.subr.bf16.mxu1 %v4744_v46 }
 0x359   :  { %4561 = vmatpush3.bf16.msra.mxu1 %v4744_v46 }
 0x35e   :  { %4553 = vmatmul.mubr.bf16.gmra.mrb[120].mxu1 %v5212_v42  ;;  %v4743_v42 = vld [vmem:[%s6428_s14 + $0x38] sm:$0xff]  }
 0x35f   :  { %4556 = vmatprep.mubr.bf16.mxu1 %v5262_v6  ;;  %4237 = vmatpush3.bf16.msra.mxu0 %v4743_v42  ;;  %v4746_v6 = vld [vmem:[%s6430_s16 + $0x10] sm:$0xff]  }
 0x366   :  { %4557 = vmatmul.mubr.bf16.gmra.mrb[124].mxu1 %v5255_v21  ;;  %v4745_v21 = vld [vmem:[%s6430_s16 + $0x8] sm:$0xff]  }
 0x367   :  { %4562 = vmatprep.subr.bf16.mxu1 %v4745_v21 }
 0x368   :  { %4563 = vmatpush3.bf16.msra.mxu1 %v4745_v21 }
 0x369   :  { %4564 = vmatprep.subr.bf16.mxu1 %v4746_v6 }
 0x36c   :  { %4565 = vmatpush3.bf16.msra.mxu1 %v4746_v6 }
 0x36d   :  { %4566 = vmatprep.subr.bf16.mxu1 %v4747_v14 }
 0x370   :  { %4567 = vmatpush3.bf16.msra.mxu1 %v4747_v14 }
 0x371   :  { %4568 = vmatprep.subr.bf16.mxu1 %v4748_v34 }
 0x374   :  { %4569 = vmatpush3.bf16.msra.mxu1 %v4748_v34 }
 0x375   :  { %4570 = vmatprep.subr.bf16.mxu1 %v4749_v51 }
 0x378   :  { %4571 = vmatpush3.bf16.msra.mxu1 %v4749_v51 }
 0x379   :  { %4572 = vmatprep.subr.bf16.mxu1 %v4750_v54 }
 0x37c   :  { %4573 = vmatpush3.bf16.msra.mxu1 %v4750_v54 }
 0x37d   :  { %4574 = vmatprep.subr.bf16.mxu1 %v4751_v5 }
 0x380   :  { %4575 = vmatpush3.bf16.msra.mxu1 %v4751_v5 }
 0x381   :  { %4592 = vmatprep.subr.bf16.mxu1 %v5864_v45 }
 0x3e1   :  { %v1857_v7 = vpop.f32.mrb[80].mxu1 }
 0x3e2   :  { %v1943_v1 = vmul.f32 %v5870_v53, %v1857_v7  ;;  %v1859_v24 = vpop.f32.mrb[81].mxu1 }
 0x3e3   :  { %v2006_v29 = vmul.f32 %v5875_v31, %v1859_v24  ;;  %v1861_v3 = vpop.f32.mrb[82].mxu1 }
 0x3e4   :  { %v1967_v8 = vadd.f32 %v5880_v32, %v1943_v1  ;;  %v1944_v42 = vmul.f32 %v5870_v53, %v1861_v3  ;;  %v1863_v46 = vpop.f32.mrb[83].mxu1 }
 0x3e5   :  { %v2030_v21 = vadd.f32 %v5886_v33, %v2006_v29  ;;  %v2007_v6 = vmul.f32 %v5875_v31, %v1863_v46 }
 0x3e6   :  { %v1983_v14 = vmax.f32 %v1967_v8, 0.0  ;;  %v1968_v34 = vadd.f32 %v5880_v32, %v1944_v42 }
 0x3e7   :  { %v2046_v51 = vmax.f32 %v2030_v21, 0.0  ;;  %v2031_v54 = vadd.f32 %v5886_v33, %v2007_v6 }
 0x3e8   :  { %v2062_v5 = vadd.f32 %v1983_v14, %v1405_v25  ;;  %v1984_v7 = vmax.f32 %v1968_v34, 0.0 }
 0x3e9   :  { %v2047_v24 = vmax.f32 %v2031_v54, 0.0  ;;  %v1867_v2 = vpop.f32.mrb[84].mxu1 }
 0x3ea   :  { %v2078_v1 = vadd.f32 %v2062_v5, %v2046_v51  ;;  %v2063_v3 = vadd.f32 %v1984_v7, %v1406_v60  ;;  %v1945_v29 = vmul.f32 %v5870_v53, %v1867_v2  ;;  %v1869_v23 = vpop.f32.mrb[85].mxu1 }
 0x3eb   :  { %v2008_v8 = vmul.f32 %v5875_v31, %v1869_v23  ;;  %v1871_v46 = vpop.f32.mrb[86].mxu1 }
 0x3ec   :  { %v2094_v42 = vpack.c.bf16 %v2063_v3, %v2062_v5  ;;  %v2079_v21 = vadd.f32 %v2063_v3, %v2047_v24  ;;  %v1969_v6 = vadd.f32 %v5880_v32, %v1945_v29  ;;  %v1946_v39 = vmul.f32 %v5870_v53, %v1871_v46  ;;  %v1873_v25 = vpop.f32.mrb[87].mxu1 }
 0x3ed   :  { %v2032_v14 = vadd.f32 %v5886_v33, %v2008_v8  ;;  %v2009_v34 = vmul.f32 %v5875_v31, %v1873_v25  ;;  %v6466_v29 = vmax.f32 %v5515_v44, 0.0 }
 0x3ee   :  { %v1985_v51 = vmax.f32 %v1969_v6, 0.0  ;;  %v1970_v49 = vadd.f32 %v5880_v32, %v1946_v39  ;;  %v2095_v60 = vpack.c.bf16 %v2079_v21, %v2078_v1 }
 0x3ef   :  { %v2048_v2 = vmax.f32 %v2032_v14, 0.0  ;;  %v2033_v54 = vadd.f32 %v5886_v33, %v2009_v34 }
 0x3f0   :  { %v2064_v23 = vadd.f32 %v1985_v51, %v1407_v9  ;;  %v1986_v5 = vmax.f32 %v1970_v49, 0.0  ;;  %2719 = vmatprep.mubr.bf16.mxu0 %v2095_v60 }
 0x3f1   :  { %v2049_v7 = vmax.f32 %v2033_v54, 0.0  ;;  %v1877_v24 = vpop.f32.mrb[88].mxu1  ;;  %2720 = vmatmul.mubr.bf16.vlgmr.msra.gmra.mrb[128].mxu0 %v2094_v42  ;;  %v6467_v54 = vmax.f32 %v5545_v26, 0.0 }
 0x3f2   :  { %v2080_v3 = vadd.f32 %v2064_v23, %v2048_v2  ;;  %v2065_v8 = vadd.f32 %v1986_v5, %v6466_v29  ;;  %v1947_v46 = vmul.f32 %v5870_v53, %v1877_v24  ;;  %v1879_v6 = vpop.f32.mrb[89].mxu1 }
 0x3f3   :  { %v2010_v1 = vmul.f32 %v5875_v31, %v1879_v6  ;;  %v1881_v21 = vpop.f32.mrb[90].mxu1 }
 0x3f4   :  { %v2081_v39 = vadd.f32 %v2065_v8, %v2049_v7  ;;  %v1971_v25 = vadd.f32 %v5880_v32, %v1947_v46  ;;  %v1948_v43 = vmul.f32 %v5870_v53, %v1881_v21  ;;  %v1883_v9 = vpop.f32.mrb[91].mxu1  ;;  %v2096_v14 = vpack.c.bf16 %v2065_v8, %v2064_v23 }
 0x3f5   :  { %v2034_v34 = vadd.f32 %v5886_v33, %v2010_v1  ;;  %v2011_v42 = vmul.f32 %v5875_v31, %v1883_v9  ;;  %v6468_v8 = vmax.f32 %v5555_v40, 0.0 }
 0x3f6   :  { %v1987_v51 = vmax.f32 %v1971_v25, 0.0  ;;  %v1972_v44 = vadd.f32 %v5880_v32, %v1948_v43  ;;  %v2097_v49 = vpack.c.bf16 %v2081_v39, %v2080_v3 }
 0x3f7   :  { %v2050_v60 = vmax.f32 %v2034_v34, 0.0  ;;  %v2035_v2 = vadd.f32 %v5886_v33, %v2011_v42 }
 0x3f8   :  { %v2066_v5 = vadd.f32 %v1987_v51, %v6467_v54  ;;  %v1988_v7 = vmax.f32 %v1972_v44, 0.0  ;;  %2727 = vmatprep.mubr.bf16.mxu0 %v2097_v49 }
 0x3f9   :  { %v2051_v24 = vmax.f32 %v2035_v2, 0.0  ;;  %v1887_v29 = vpop.f32.mrb[92].mxu1  ;;  %2728 = vmatmul.mubr.bf16.gmra.mrb[132].mxu0 %v2096_v14 }
 0x3fa   :  { %v2082_v23 = vadd.f32 %v2066_v5, %v2050_v60  ;;  %v2067_v46 = vadd.f32 %v1988_v7, %v6468_v8  ;;  %v1949_v6 = vmul.f32 %v5870_v53, %v1887_v29  ;;  %v1889_v1 = vpop.f32.mrb[93].mxu1  ;;  %v6469_v60 = vmax.f32 %v5549_v35, 0.0 }
 0x3fb   :  { %v2012_v3 = vmul.f32 %v5875_v31, %v1889_v1  ;;  %v1891_v21 = vpop.f32.mrb[94].mxu1  ;;  %v6470_v29 = vmax.f32 %v5552_v37, 0.0 }
 0x3fc   :  { %v2083_v39 = vadd.f32 %v2067_v46, %v2051_v24  ;;  %v1973_v25 = vadd.f32 %v5880_v32, %v1949_v6  ;;  %v1950_v26 = vmul.f32 %v5870_v53, %v1891_v21  ;;  %v1893_v43 = vpop.f32.mrb[95].mxu1  ;;  %v2098_v9 = vpack.c.bf16 %v2067_v46, %v2066_v5 }
 0x3fd   :  { %v2036_v34 = vadd.f32 %v5886_v33, %v2012_v3  ;;  %v2013_v14 = vmul.f32 %v5875_v31, %v1893_v43 }
 0x3fe   :  { %v1989_v42 = vmax.f32 %v1973_v25, 0.0  ;;  %v1974_v40 = vadd.f32 %v5880_v32, %v1950_v26  ;;  %v2099_v51 = vpack.c.bf16 %v2083_v39, %v2082_v23 }
 0x3ff   :  { %v2052_v44 = vmax.f32 %v2036_v34, 0.0  ;;  %v2037_v49 = vadd.f32 %v5886_v33, %v2013_v14 }
 0x400   :  { %v2068_v2 = vadd.f32 %v1989_v42, %v6469_v60  ;;  %v1990_v54 = vmax.f32 %v1974_v40, 0.0  ;;  %2735 = vmatprep.mubr.bf16.mxu0 %v2099_v51 }
 0x401   :  { %v2053_v7 = vmax.f32 %v2037_v49, 0.0  ;;  %v1897_v24 = vpop.f32.mrb[96].mxu1  ;;  %2736 = vmatmul.mubr.bf16.gmra.mrb[136].mxu0 %v2098_v9 }
 0x402   :  { %v2084_v5 = vadd.f32 %v2068_v2, %v2052_v44  ;;  %v2069_v8 = vadd.f32 %v1990_v54, %v6470_v29  ;;  %v1951_v46 = vmul.f32 %v5870_v53, %v1897_v24  ;;  %v1899_v6 = vpop.f32.mrb[97].mxu1 }
 0x403   :  { %v2014_v23 = vmul.f32 %v5875_v31, %v1899_v6  ;;  %v1901_v1 = vpop.f32.mrb[98].mxu1 }
 0x404   :  { %v2085_v3 = vadd.f32 %v2069_v8, %v2053_v7  ;;  %v1975_v21 = vadd.f32 %v5880_v32, %v1951_v46  ;;  %v1952_v35 = vmul.f32 %v5870_v53, %v1901_v1  ;;  %v1903_v39 = vpop.f32.mrb[99].mxu1  ;;  %v2100_v25 = vpack.c.bf16 %v2069_v8, %v2068_v2 }
 0x405   :  { %v2038_v26 = vadd.f32 %v5886_v33, %v2014_v23  ;;  %v2015_v43 = vmul.f32 %v5875_v31, %v1903_v39 }
 0x406   :  { %v1991_v9 = vmax.f32 %v1975_v21, 0.0  ;;  %v1976_v37 = vadd.f32 %v5880_v32, %v1952_v35  ;;  %v2101_v34 = vpack.c.bf16 %v2085_v3, %v2084_v5 }
 0x407   :  { %v2054_v14 = vmax.f32 %v2038_v26, 0.0  ;;  %v2039_v42 = vadd.f32 %v5886_v33, %v2015_v43 }
 0x408   :  { %v2070_v40 = vadd.f32 %v1991_v9, %v1413_v10  ;;  %v1992_v51 = vmax.f32 %v1976_v37, 0.0  ;;  %2743 = vmatprep.mubr.bf16.mxu0 %v2101_v34 }
 0x409   :  { %v2055_v44 = vmax.f32 %v2039_v42, 0.0  ;;  %v1907_v49 = vpop.f32.mrb[100].mxu1  ;;  %2744 = vmatmul.mubr.bf16.gmra.mrb[140].mxu0 %v2100_v25 }
 0x40a   :  { %v2086_v60 = vadd.f32 %v2070_v40, %v2054_v14  ;;  %v2071_v2 = vadd.f32 %v1992_v51, %v1414_v0  ;;  %v1953_v54 = vmul.f32 %v5870_v53, %v1907_v49  ;;  %v1909_v7 = vpop.f32.mrb[101].mxu1 }
 0x40b   :  { %v2016_v24 = vmul.f32 %v5875_v31, %v1909_v7  ;;  %v1911_v5 = vpop.f32.mrb[102].mxu1 }
 0x40c   :  { %v2087_v29 = vadd.f32 %v2071_v2, %v2055_v44  ;;  %v1977_v8 = vadd.f32 %v5880_v32, %v1953_v54  ;;  %v1954_v13 = vmul.f32 %v5870_v53, %v1911_v5  ;;  %v1913_v10 = vpop.f32.mrb[103].mxu1  ;;  %v2102_v46 = vpack.c.bf16 %v2071_v2, %v2070_v40 }
 0x40d   :  { %v2040_v6 = vadd.f32 %v5886_v33, %v2016_v24  ;;  %v2017_v23 = vmul.f32 %v5875_v31, %v1913_v10 }
 0x40e   :  { %v1993_v1 = vmax.f32 %v1977_v8, 0.0  ;;  %v1978_v55 = vadd.f32 %v5880_v32, %v1954_v13  ;;  %v2103_v0 = vpack.c.bf16 %v2087_v29, %v2086_v60 }
 0x40f   :  { %v2056_v3 = vmax.f32 %v2040_v6, 0.0  ;;  %v2041_v21 = vadd.f32 %v5886_v33, %v2017_v23 }
 0x410   :  { %v2072_v35 = vadd.f32 %v1993_v1, %v1415_v59  ;;  %v1994_v39 = vmax.f32 %v1978_v55, 0.0  ;;  %2751 = vmatprep.mubr.bf16.mxu0 %v2103_v0 }
 0x411   :  { %v2057_v25 = vmax.f32 %v2041_v21, 0.0  ;;  %v1917_v26 = vpop.f32.mrb[104].mxu1  ;;  %2752 = vmatmul.mubr.bf16.gmra.mrb[144].mxu0 %v2102_v46 }
 0x412   :  { %v2088_v43 = vadd.f32 %v2072_v35, %v2056_v3  ;;  %v2073_v9 = vadd.f32 %v1994_v39, %v1416_v17  ;;  %v1955_v37 = vmul.f32 %v5870_v53, %v1917_v26  ;;  %v1919_v34 = vpop.f32.mrb[105].mxu1 }
 0x413   :  { %v2018_v14 = vmul.f32 %v5875_v31, %v1919_v34  ;;  %v1921_v42 = vpop.f32.mrb[106].mxu1  ;;  %v5984_v34 = vld [vmem:[%s6427_s13] ss:$0 sm:$0xff] }
 0x414   :  { %v2089_v40 = vadd.f32 %v2073_v9, %v2057_v25  ;;  %v1979_v51 = vadd.f32 %v5880_v32, %v1955_v37  ;;  %v1956_v47 = vmul.f32 %v5870_v53, %v1921_v42  ;;  %v1923_v59 = vpop.f32.mrb[107].mxu1  ;;  %v2104_v44 = vpack.c.bf16 %v2073_v9, %v2072_v35 }
 0x415   :  { %v2042_v49 = vadd.f32 %v5886_v33, %v2018_v14  ;;  %v2019_v60 = vmul.f32 %v5875_v31, %v1923_v59 }
 0x416   :  { %v1995_v2 = vmax.f32 %v1979_v51, 0.0  ;;  %v1980_v16 = vadd.f32 %v5880_v32, %v1956_v47  ;;  %v2105_v17 = vpack.c.bf16 %v2089_v40, %v2088_v43 }
 0x417   :  { %v2058_v54 = vmax.f32 %v2042_v49, 0.0  ;;  %v2043_v7 = vadd.f32 %v5886_v33, %v2019_v60 }
 0x418   :  { %v2074_v24 = vadd.f32 %v1995_v2, %v1417_v61  ;;  %v1996_v5 = vmax.f32 %v1980_v16, 0.0  ;;  %2759 = vmatprep.mubr.bf16.mxu0 %v2105_v17 }
 0x419   :  { %v2059_v29 = vmax.f32 %v2043_v7, 0.0  ;;  %v1927_v8 = vpop.f32.mrb[108].mxu1  ;;  %2760 = vmatmul.mubr.bf16.gmra.mrb[148].mxu0 %v2104_v44 }
 0x41a   :  { %v2090_v13 = vadd.f32 %v2074_v24, %v2058_v54  ;;  %v2075_v10 = vadd.f32 %v1996_v5, %v1418_v36  ;;  %v1957_v46 = vmul.f32 %v5870_v53, %v1927_v8  ;;  %v1929_v6 = vpop.f32.mrb[109].mxu1  ;;  %v6472_v8 = vmov 0  }
 0x41b   :  { %v2020_v23 = vmul.f32 %v5875_v31, %v1929_v6  ;;  %v1931_v1 = vpop.f32.mrb[110].mxu1 }
 0x41c   :  { %v2091_v55 = vadd.f32 %v2075_v10, %v2059_v29  ;;  %v1981_v0 = vadd.f32 %v5880_v32, %v1957_v46  ;;  %v1958_v57 = vmul.f32 %v5870_v53, %v1931_v1  ;;  %v1933_v61 = vpop.f32.mrb[111].mxu1  ;;  %v2106_v3 = vpack.c.bf16 %v2075_v10, %v2074_v24 }
 0x41d   :  { %v2044_v21 = vadd.f32 %v5886_v33, %v2020_v23  ;;  %v2021_v35 = vmul.f32 %v5875_v31, %v1933_v61 }
 0x41e   :  { %v1997_v39 = vmax.f32 %v1981_v0, 0.0  ;;  %v1982_v15 = vadd.f32 %v5880_v32, %v1958_v57  ;;  %v2107_v36 = vpack.c.bf16 %v2091_v55, %v2090_v13  ;;  %v6471_v32 = vmax.f32 %v5645_v27, 0.0 }
 0x41f   :  { %v2060_v25 = vmax.f32 %v2044_v21, 0.0  ;;  %v2045_v26 = vadd.f32 %v5886_v33, %v2021_v35 }
 0x420   :  { %v2076_v43 = vadd.f32 %v1997_v39, %v1419_v63  ;;  %v1998_v9 = vmax.f32 %v1982_v15, 0.0  ;;  %2767 = vmatprep.mubr.bf16.mxu0 %v2107_v36 }
 0x421   :  { %v2061_v37 = vmax.f32 %v2045_v26, 0.0  ;;  %v4546_v53 = vpop.f32.mrb[112].mxu1  ;;  %2768 = vmatmul.mubr.bf16.gmra.mrb[152].mxu0 %v2106_v3 }
 0x422   :  { %v2092_v31 = vadd.f32 %v2076_v43, %v2060_v25  ;;  %v2077_v14 = vadd.f32 %v1998_v9, %v6471_v32  ;;  %v2442_v42 = vadd.f32 %v4546_v53, %v5741_v62  ;;  %v2433_v33 = vpop.f32.mrb[113].mxu1  ;;  %v4754_v9 = vld [vmem:[%s6432_s18 + $0x10] sm:$0xff]  }
 0x423   :  { %v2434_v63 = vadd.f32 %v5724_v22, %v2433_v33  ;;  %v4547_v40 = vpop.f32.mrb[114].mxu1 }
 0x424   :  { %v2093_v51 = vadd.f32 %v2077_v14, %v2061_v37  ;;  %v2505_v47 = vmul.f32 %v5984_v34, %v2442_v42  ;;  %v2445_v59 = vadd.f32 %v4547_v40, %v5746_v11  ;;  %v2436_v44 = vpop.f32.mrb[115].mxu1  ;;  %v2108_v49 = vpack.c.bf16 %v2077_v14, %v2076_v43 }
 0x425   :  { %v2503_v27 = vmul.f32 %v5984_v34, %v2434_v63  ;;  %v2437_v62 = vadd.f32 %v5732_v4, %v2436_v44 }
 0x426   :  { %v2529_v60 = vadd.f32 %v5992_v38, %v2505_v47  ;;  %v2506_v2 = vmul.f32 %v5984_v34, %v2445_v59  ;;  %v2109_v16 = vpack.c.bf16 %v2093_v51, %v2092_v31 }
 0x427   :  { %v2527_v17 = vadd.f32 %v5992_v38, %v2503_v27  ;;  %v2504_v22 = vmul.f32 %v5984_v34, %v2437_v62 }
 0x428   :  { %v2530_v54 = vadd.f32 %v5992_v38, %v2506_v2  ;;  %2775 = vmatprep.mubr.bf16.mxu0 %v2109_v16  ;;  %v2545_v24 = vmax.f32 %v2529_v60, 0.0 }
 0x429   :  { %v2528_v11 = vadd.f32 %v5992_v38, %v2504_v22  ;;  %v4550_v7 = vpop.f32.mrb[116].mxu1  ;;  %2776 = vmatmul.mubr.bf16.gmra.mrb[156].mxu0 %v2108_v49  ;;  %v2543_v13 = vmax.f32 %v2527_v17, 0.0 }
 0x42a   :  { %v2546_v5 = vmax.f32 %v2530_v54, 0.0  ;;  %v2458_v4 = vadd.f32 %v4550_v7, %v5769_v30  ;;  %v2449_v29 = vpop.f32.mrb[117].mxu1  ;;  %3233 = vmatprep.mubr.bf16.mxu0 %v6472_v8 }
 0x42b   :  { %v2544_v10 = vmax.f32 %v2528_v11, 0.0  ;;  %v2450_v46 = vadd.f32 %v5755_v41, %v2449_v29  ;;  %v4551_v6 = vpop.f32.mrb[118].mxu1  ;;  %v4753_v41 = vld [vmem:[%s6432_s18 + $0x8] sm:$0xff]  }
 0x42c   :  { %v2848_v23 = vpack.c.bf16 %v2546_v5, %v2545_v24  ;;  %v2509_v1 = vmul.f32 %v5984_v34, %v2458_v4  ;;  %v2461_v55 = vadd.f32 %v4551_v6, %v5774_v18  ;;  %v2452_v0 = vpop.f32.mrb[119].mxu1 }
 0x42d   :  { %v2507_v57 = vmul.f32 %v5984_v34, %v2450_v46  ;;  %v2453_v61 = vadd.f32 %v5760_v48, %v2452_v0  ;;  %v2847_v3 = vpack.c.bf16 %v2544_v10, %v2543_v13  ;;  %v4755_v0 = vld [vmem:[%s6432_s18 + $0x18] sm:$0xff]  }
 0x42e   :  { %v2533_v30 = vadd.f32 %v5992_v38, %v2509_v1  ;;  %v2510_v21 = vmul.f32 %v5984_v34, %v2461_v55 }
 0x42f   :  { %v2531_v35 = vadd.f32 %v5992_v38, %v2507_v57  ;;  %v2508_v39 = vmul.f32 %v5984_v34, %v2453_v61  ;;  %4576 = vmatprep.mubr.bf16.mxu1 %v2847_v3  ;;  %v4758_v61 = vld [vmem:[%s6432_s18 + $0x30] sm:$0xff]   ;;  %v4759_v3 = vld [vmem:[%s6432_s18 + $0x38] sm:$0xff]  }
 0x430   :  { %v2534_v18 = vadd.f32 %v5992_v38, %v2510_v21  ;;  %4577 = vmatmul.mubr.bf16.vlgmr.msra.gmra.mrb[128].mxu1 %v2848_v23  ;;  %v2549_v36 = vmax.f32 %v2533_v30, 0.0 }
 0x431   :  { %v2532_v15 = vadd.f32 %v5992_v38, %v2508_v39  ;;  %v4554_v48 = vpop.f32.mrb[120].mxu1  ;;  %4593 = vmatpush3.bf16.msra.mxu1 %v5864_v45  ;;  %v2547_v37 = vmax.f32 %v2531_v35, 0.0 }
 0x432   :  { %v2550_v25 = vmax.f32 %v2534_v18, 0.0  ;;  %v2474_v26 = vadd.f32 %v4554_v48, %v5788_v20  ;;  %v2465_v43 = vpop.f32.mrb[121].mxu1  ;;  %4594 = vmatprep.subr.bf16.mxu1 %v4753_v41  ;;  %v6072_v18 = vld [vmem:[%s6429_s15 + $0x1] ss:$0 sm:$0xff] }
 0x433   :  { %v2548_v53 = vmax.f32 %v2532_v15, 0.0  ;;  %v2466_v31 = vadd.f32 %v5780_v19, %v2465_v43  ;;  %v4555_v32 = vpop.f32.mrb[122].mxu1 }
 0x434   :  { %v2513_v14 = vmul.f32 %v5984_v34, %v2474_v26  ;;  %v2477_v42 = vadd.f32 %v4555_v32, %v5793_v50  ;;  %v2468_v45 = vpop.f32.mrb[123].mxu1  ;;  %v2850_v33 = vpack.c.bf16 %v2550_v25, %v2549_v36 }
 0x435   :  { %v2511_v63 = vmul.f32 %v5984_v34, %v2466_v31  ;;  %v2469_v20 = vadd.f32 %v5785_v28, %v2468_v45  ;;  %v2849_v40 = vpack.c.bf16 %v2548_v53, %v2547_v37  ;;  %4595 = vmatpush3.bf16.msra.mxu1 %v4753_v41  ;;  %v6067_v41 = vld [vmem:[%s6429_s15] ss:$0 sm:$0xff] }
 0x436   :  { %v2537_v51 = vadd.f32 %v5992_v38, %v2513_v14  ;;  %v2514_v47 = vmul.f32 %v5984_v34, %v2477_v42  ;;  %4596 = vmatprep.subr.bf16.mxu1 %v4754_v9 }
 0x437   :  { %v2535_v19 = vadd.f32 %v5992_v38, %v2511_v63  ;;  %v2512_v59 = vmul.f32 %v5984_v34, %v2469_v20  ;;  %4580 = vmatprep.mubr.bf16.mxu1 %v2849_v40 }
 0x438   :  { %v2538_v50 = vadd.f32 %v5992_v38, %v2514_v47  ;;  %4581 = vmatmul.mubr.bf16.gmra.mrb[132].mxu1 %v2850_v33  ;;  %v2553_v28 = vmax.f32 %v2537_v51, 0.0 }
 0x439   :  { %v2536_v44 = vadd.f32 %v5992_v38, %v2512_v59  ;;  %v4558_v49 = vpop.f32.mrb[124].mxu1  ;;  %4597 = vmatpush3.bf16.msra.mxu1 %v4754_v9  ;;  %v2551_v2 = vmax.f32 %v2535_v19, 0.0 }
 0x43a   :  { %v2554_v27 = vmax.f32 %v2538_v50, 0.0  ;;  %v2490_v62 = vadd.f32 %v4558_v49, %v5804_v56  ;;  %v2481_v60 = vpop.f32.mrb[125].mxu1  ;;  %4598 = vmatprep.subr.bf16.mxu1 %v4755_v0 }
 0x43b   :  { %v2552_v16 = vmax.f32 %v2536_v44, 0.0  ;;  %v2482_v17 = vadd.f32 %v5796_v52, %v2481_v60  ;;  %v4559_v22 = vpop.f32.mrb[126].mxu1 }
 0x43c   :  { %v2517_v54 = vmul.f32 %v5984_v34, %v2490_v62  ;;  %v2493_v11 = vadd.f32 %v4559_v22, %v5809_v12  ;;  %v2484_v7 = vpop.f32.mrb[127].mxu1  ;;  %v2852_v24 = vpack.c.bf16 %v2554_v27, %v2553_v28 }
 0x43d   :  { %v2515_v5 = vmul.f32 %v5984_v34, %v2482_v17  ;;  %v2485_v4 = vadd.f32 %v5801_v58, %v2484_v7  ;;  %v2851_v29 = vpack.c.bf16 %v2552_v16, %v2551_v2  ;;  %4599 = vmatpush3.bf16.msra.mxu1 %v4755_v0 }
 0x43e   :  { %v2541_v13 = vadd.f32 %v5992_v38, %v2517_v54  ;;  %v2518_v56 = vmul.f32 %v5984_v34, %v2493_v11 }
 0x43f   :  { %v2539_v10 = vadd.f32 %v5992_v38, %v2515_v5  ;;  %v2516_v52 = vmul.f32 %v5984_v34, %v2485_v4  ;;  %4584 = vmatprep.mubr.bf16.mxu1 %v2851_v29  ;;  %v4756_v34 = vld [vmem:[%s6432_s18 + $0x20] sm:$0xff]  }
 0x440   :  { %v2542_v46 = vadd.f32 %v5992_v38, %v2518_v56  ;;  %4585 = vmatmul.mubr.bf16.gmra.mrb[136].mxu1 %v2852_v24  ;;  %v2557_v6 = vmax.f32 %v2541_v13, 0.0  ;;  %4600 = vmatprep.subr.bf16.mxu1 %v4756_v34 }
 0x441   :  { %v2540_v12 = vadd.f32 %v5992_v38, %v2516_v52  ;;  %v2555_v1 = vmax.f32 %v2539_v10, 0.0  ;;  %4601 = vmatpush3.bf16.msra.mxu1 %v4756_v34  ;;  %v4757_v38 = vld [vmem:[%s6432_s18 + $0x28] sm:$0xff]  }
 0x442   :  { %v2558_v23 = vmax.f32 %v2542_v46, 0.0  ;;  %4602 = vmatprep.subr.bf16.mxu1 %v4757_v38 }
 0x443   :  { %v2556_v55 = vmax.f32 %v2540_v12, 0.0 }
 0x444   :  { %v2854_v58 = vpack.c.bf16 %v2558_v23, %v2557_v6 }
 0x445   :  { %v2853_v57 = vpack.c.bf16 %v2556_v55, %v2555_v1  ;;  %4603 = vmatpush3.bf16.msra.mxu1 %v4757_v38 }
 0x446   :  { %4604 = vmatprep.subr.bf16.mxu1 %v4758_v61 }
 0x447   :  { %4588 = vmatprep.mubr.bf16.mxu1 %v2853_v57 }
 0x448   :  { %4589 = vmatmul.mubr.bf16.gmra.mrb[140].mxu1 %v2854_v58 }
 0x449   :  { %4605 = vmatpush3.bf16.msra.mxu1 %v4758_v61 }
 0x44a   :  { %4606 = vmatprep.subr.bf16.mxu1 %v4759_v3 }
 0x44d   :  { %4607 = vmatpush3.bf16.msra.mxu1 %v4759_v3 }
 0x4c4   :  { %v4238_v30 = vpop.f32.mrb[128].mxu0 }
 0x4c5   :  { %v4239_v21 = vpop.f32.mrb[129].mxu0 }
 0x4c6   :  { %v4240_v35 = vadd.f32 %v4239_v21, %v4238_v30  ;;  %v4241_v39 = vpop.f32.mrb[130].mxu0 }
 0x4c7   :  { %v4242_v15 = vpop.f32.mrb[131].mxu0 }
 0x4c8   :  { %v2791_v48 = vmul.f32 %v4240_v35, %v6067_v41  ;;  %v4243_v36 = vadd.f32 %v4242_v15, %v4241_v39 }
 0x4ca   :  { %v6076_v25 = vadd.f32 %v6072_v18, %v2791_v48  ;;  %v2792_v26 = vmul.f32 %v4243_v36, %v6067_v41 }
 0x4cc   :  { %v6080_v43 = vadd.f32 %v6072_v18, %v2792_v26  ;;  %v4244_v9 = vpop.f32.mrb[132].mxu0  ;;  %v2831_v53 = vmax.f32 %v6076_v25, 0.0 }
 0x4cd   :  { %v4245_v37 = vpop.f32.mrb[133].mxu0 }
 0x4ce   :  { %v2832_v31 = vmax.f32 %v6080_v43, 0.0  ;;  %v4246_v32 = vadd.f32 %v4245_v37, %v4244_v9  ;;  %v4247_v14 = vpop.f32.mrb[134].mxu0 }
 0x4cf   :  { %v4248_v42 = vpop.f32.mrb[135].mxu0 }
 0x4d0   :  { %v2793_v45 = vmul.f32 %v4246_v32, %v6067_v41  ;;  %v4249_v33 = vadd.f32 %v4248_v42, %v4247_v14  ;;  %v3016_v63 = vpack.c.bf16 %v2832_v31, %v2831_v53 }
 0x4d2   :  { %v6090_v20 = vadd.f32 %v6072_v18, %v2793_v45  ;;  %v2794_v40 = vmul.f32 %v4249_v33, %v6067_v41  ;;  %4608 = vmatprep.mubr.bf16.mxu1 %v3016_v63 }
 0x4d4   :  { %v6094_v51 = vadd.f32 %v6072_v18, %v2794_v40  ;;  %v4250_v47 = vpop.f32.mrb[136].mxu0  ;;  %v2833_v59 = vmax.f32 %v6090_v20, 0.0 }
 0x4d5   :  { %v4251_v19 = vpop.f32.mrb[137].mxu0 }
 0x4d6   :  { %v2834_v50 = vmax.f32 %v6094_v51, 0.0  ;;  %v4252_v44 = vadd.f32 %v4251_v19, %v4250_v47  ;;  %v4253_v49 = vpop.f32.mrb[138].mxu0 }
 0x4d7   :  { %v4254_v28 = vpop.f32.mrb[139].mxu0 }
 0x4d8   :  { %v3017_v27 = vpack.c.bf16 %v2834_v50, %v2833_v59  ;;  %v2795_v62 = vmul.f32 %v4252_v44, %v6067_v41  ;;  %v4255_v60 = vadd.f32 %v4254_v28, %v4253_v49 }
 0x4da   :  { %v6104_v2 = vadd.f32 %v6072_v18, %v2795_v62  ;;  %v2796_v16 = vmul.f32 %v4255_v60, %v6067_v41  ;;  %4609 = vmatmul.mubr.bf16.vlgmr.msra.gmra.mrb[144].mxu1 %v3017_v27 }
 0x4dc   :  { %v6108_v17 = vadd.f32 %v6072_v18, %v2796_v16  ;;  %v4256_v22 = vpop.f32.mrb[140].mxu0  ;;  %v2835_v11 = vmax.f32 %v6104_v2, 0.0 }
 0x4dd   :  { %v4257_v54 = vpop.f32.mrb[141].mxu0 }
 0x4de   :  { %v2836_v7 = vmax.f32 %v6108_v17, 0.0  ;;  %v4258_v24 = vadd.f32 %v4257_v54, %v4256_v22  ;;  %v4259_v5 = vpop.f32.mrb[142].mxu0 }
 0x4df   :  { %v4260_v4 = vpop.f32.mrb[143].mxu0 }
 0x4e0   :  { %v2797_v29 = vmul.f32 %v4258_v24, %v6067_v41  ;;  %v4261_v13 = vadd.f32 %v4260_v4, %v4259_v5  ;;  %v3018_v56 = vpack.c.bf16 %v2836_v7, %v2835_v11 }
 0x4e2   :  { %v6118_v10 = vadd.f32 %v6072_v18, %v2797_v29  ;;  %v2798_v52 = vmul.f32 %v4261_v13, %v6067_v41  ;;  %4612 = vmatprep.mubr.bf16.mxu1 %v3018_v56 }
 0x4e4   :  { %v6122_v46 = vadd.f32 %v6072_v18, %v2798_v52  ;;  %v4262_v12 = vpop.f32.mrb[144].mxu0  ;;  %v2837_v23 = vmax.f32 %v6118_v10, 0.0 }
 0x4e5   :  { %v4263_v6 = vpop.f32.mrb[145].mxu0 }
 0x4e6   :  { %v2838_v1 = vmax.f32 %v6122_v46, 0.0  ;;  %v4264_v55 = vadd.f32 %v4263_v6, %v4262_v12  ;;  %v4265_v58 = vpop.f32.mrb[146].mxu0 }
 0x4e7   :  { %v4266_v0 = vpop.f32.mrb[147].mxu0 }
 0x4e8   :  { %v2799_v57 = vmul.f32 %v4264_v55, %v6067_v41  ;;  %v4267_v34 = vadd.f32 %v4266_v0, %v4265_v58  ;;  %v3019_v38 = vpack.c.bf16 %v2838_v1, %v2837_v23 }
 0x4ea   :  { %v6132_v61 = vadd.f32 %v6072_v18, %v2799_v57  ;;  %v2800_v3 = vmul.f32 %v4267_v34, %v6067_v41  ;;  %4613 = vmatmul.mubr.bf16.gmra.mrb[148].mxu1 %v3019_v38 }
 0x4ec   :  { %v6136_v30 = vadd.f32 %v6072_v18, %v2800_v3  ;;  %v4268_v21 = vpop.f32.mrb[148].mxu0  ;;  %v2839_v39 = vmax.f32 %v6132_v61, 0.0 }
 0x4ed   :  { %v4269_v35 = vpop.f32.mrb[149].mxu0 }
 0x4ee   :  { %v2840_v15 = vmax.f32 %v6136_v30, 0.0  ;;  %v4270_v48 = vadd.f32 %v4269_v35, %v4268_v21  ;;  %v4271_v36 = vpop.f32.mrb[150].mxu0 }
 0x4ef   :  { %v4272_v26 = vpop.f32.mrb[151].mxu0 }
 0x4f0   :  { %v2801_v9 = vmul.f32 %v4270_v48, %v6067_v41  ;;  %v4273_v37 = vadd.f32 %v4272_v26, %v4271_v36  ;;  %v3020_v32 = vpack.c.bf16 %v2840_v15, %v2839_v39 }
 0x4f2   :  { %v6146_v14 = vadd.f32 %v6072_v18, %v2801_v9  ;;  %v2802_v42 = vmul.f32 %v4273_v37, %v6067_v41  ;;  %4616 = vmatprep.mubr.bf16.mxu1 %v3020_v32 }
 0x4f4   :  { %v6150_v45 = vadd.f32 %v6072_v18, %v2802_v42  ;;  %v4274_v33 = vpop.f32.mrb[152].mxu0  ;;  %v2841_v40 = vmax.f32 %v6146_v14, 0.0 }
 0x4f5   :  { %v4275_v63 = vpop.f32.mrb[153].mxu0 }
 0x4f6   :  { %v2842_v47 = vmax.f32 %v6150_v45, 0.0  ;;  %v4276_v19 = vadd.f32 %v4275_v63, %v4274_v33  ;;  %v4277_v44 = vpop.f32.mrb[154].mxu0 }
 0x4f7   :  { %v4278_v49 = vpop.f32.mrb[155].mxu0 }
 0x4f8   :  { %v2803_v28 = vmul.f32 %v4276_v19, %v6067_v41  ;;  %v4279_v27 = vadd.f32 %v4278_v49, %v4277_v44  ;;  %v3021_v62 = vpack.c.bf16 %v2842_v47, %v2841_v40 }
 0x4fa   :  { %v6160_v60 = vadd.f32 %v6072_v18, %v2803_v28  ;;  %v2804_v16 = vmul.f32 %v4279_v27, %v6067_v41  ;;  %4617 = vmatmul.mubr.bf16.gmra.mrb[152].mxu1 %v3021_v62 }
 0x4fc   :  { %v6164_v22 = vadd.f32 %v6072_v18, %v2804_v16  ;;  %v4280_v54 = vpop.f32.mrb[156].mxu0  ;;  %v2843_v5 = vmax.f32 %v6160_v60, 0.0 }
 0x4fd   :  { %v4281_v24 = vpop.f32.mrb[157].mxu0 }
 0x4fe   :  { %v2844_v4 = vmax.f32 %v6164_v22, 0.0  ;;  %v4282_v29 = vadd.f32 %v4281_v24, %v4280_v54  ;;  %v4283_v13 = vpop.f32.mrb[158].mxu0 }
 0x4ff   :  { %v4284_v56 = vpop.f32.mrb[159].mxu0 }
 0x500   :  { %v2805_v52 = vmul.f32 %v4282_v29, %v6067_v41  ;;  %v4285_v12 = vadd.f32 %v4284_v56, %v4283_v13  ;;  %v3022_v6 = vpack.c.bf16 %v2844_v4, %v2843_v5  ;;  %v4760_v13 = vld [vmem:[%s6434_s20 + $0x40] sm:$0xff]  }
 0x501   :  { %v4761_v56 = vld [vmem:[%s6434_s20] sm:$0xff]   ;;  %4318 = vmatprep.subr.bf16.mxu1 %v4760_v13 }
 0x502   :  { %v6174_v55 = vadd.f32 %v6072_v18, %v2805_v52  ;;  %v2806_v58 = vmul.f32 %v4285_v12, %v6067_v41  ;;  %4620 = vmatprep.mubr.bf16.mxu1 %v3022_v6  ;;  %v4762_v52 = vld [vmem:[%s6434_s20 + $0x48] sm:$0xff]   ;;  %4319 = vmatpush3.bf16.msra.mxu1 %v4761_v56  ;;  %v4764_v6 = vld [vmem:[%s6434_s20 + $0x50] sm:$0xff]  }
 0x503   :  { %v4578_v0 = vpop.f32.mrb[128].mxu1  ;;  %v4763_v12 = vld [vmem:[%s6434_s20 + $0x8] sm:$0xff]   ;;  %4320 = vmatprep.subr.bf16.mxu1 %v4762_v52 }
 0x504   :  { %v6178_v57 = vadd.f32 %v6072_v18, %v2806_v58  ;;  %v2953_v34 = vpop.f32.mrb[129].mxu1  ;;  %v2845_v3 = vmax.f32 %v6174_v55, 0.0  ;;  %v4765_v58 = vld [vmem:[%s6434_s20 + $0x10] sm:$0xff]  }
 0x505   :  { %v4579_v38 = vpop.f32.mrb[130].mxu1 }
 0x506   :  { %v2846_v21 = vmax.f32 %v6178_v57, 0.0  ;;  %v3187_v35 = vpack.c.bf16 %v4579_v38, %v4578_v0  ;;  %v2956_v48 = vpop.f32.mrb[131].mxu1  ;;  %4321 = vmatpush3.bf16.msra.mxu1 %v4763_v12  ;;  %v4766_v0 = vld [vmem:[%s6434_s20 + $0x58] sm:$0xff]  }
 0x507   :  { %v3185_v36 = vpack.c.bf16 %v2956_v48, %v2953_v34  ;;  %4322 = vmatprep.subr.bf16.mxu1 %v4764_v6  ;;  %v4767_v48 = vld [vmem:[%s6434_s20 + $0x18] sm:$0xff]  }
 0x508   :  { %v3023_v26 = vpack.c.bf16 %v2846_v21, %v2845_v3 }
 0x50a   :  { %4621 = vmatmul.mubr.bf16.gmra.mrb[156].mxu1 %v3023_v26 }
 0x50b   :  { %v4582_v41 = vpop.f32.mrb[132].mxu1  ;;  %4323 = vmatpush3.bf16.msra.mxu1 %v4765_v58 }
 0x50c   :  { %v2969_v9 = vpop.f32.mrb[133].mxu1  ;;  %4324 = vmatprep.subr.bf16.mxu1 %v4766_v0 }
 0x50d   :  { %v4583_v37 = vpop.f32.mrb[134].mxu1 }
 0x50e   :  { %v3191_v18 = vpack.c.bf16 %v4583_v37, %v4582_v41  ;;  %v2972_v32 = vpop.f32.mrb[135].mxu1 }
 0x50f   :  { %v3189_v42 = vpack.c.bf16 %v2972_v32, %v2969_v9  ;;  %4325 = vmatpush3.bf16.msra.mxu1 %v4767_v48  ;;  %v4768_v48 = vld [vmem:[%s6434_s20 + $0x60] sm:$0xff]  }
 0x510   :  { %4326 = vmatprep.subr.bf16.mxu1 %v4768_v48 }
 0x513   :  { %v4586_v33 = vpop.f32.mrb[136].mxu1 }
 0x514   :  { %v2985_v63 = vpop.f32.mrb[137].mxu1 }
 0x515   :  { %v4587_v19 = vpop.f32.mrb[138].mxu1 }
 0x516   :  { %v3195_v44 = vpack.c.bf16 %v4587_v19, %v4586_v33  ;;  %v2988_v49 = vpop.f32.mrb[139].mxu1 }
 0x517   :  { %v3193_v28 = vpack.c.bf16 %v2988_v49, %v2985_v63 }
 0x51b   :  { %v4590_v27 = vpop.f32.mrb[140].mxu1 }
 0x51c   :  { %v3001_v62 = vpop.f32.mrb[141].mxu1 }
 0x51d   :  { %v4591_v16 = vpop.f32.mrb[142].mxu1 }
 0x51e   :  { %v3199_v54 = vpack.c.bf16 %v4591_v16, %v4590_v27  ;;  %v3004_v24 = vpop.f32.mrb[143].mxu1 }
 0x51f   :  { %v3197_v29 = vpack.c.bf16 %v3004_v24, %v3001_v62 }
 0x5ad   :  { %v4610_v34 = vpop.f32.mrb[144].mxu1 }
 0x5ae   :  { %v3122_v38 = vpop.f32.mrb[145].mxu1 }
 0x5af   :  { %v4611_v26 = vpop.f32.mrb[146].mxu1 }
 0x5b0   :  { %v3188_v41 = vpack.c.bf16 %v4611_v26, %v4610_v34  ;;  %v3125_v9 = vpop.f32.mrb[147].mxu1  ;;  %v4782_v34 = vld [vmem:[%s6465_s7 + $0x30] sm:$0xff]   ;;  %v4769_v26 = vld [vmem:[%s6434_s20 + $0x20] sm:$0xff]  }
 0x5b1   :  { %v3186_v37 = vpack.c.bf16 %v3125_v9, %v3122_v38  ;;  %v4783_v38 = vld [vmem:[%s6465_s7 + $0x38] sm:$0xff]   ;;  %4327 = vmatpush3.bf16.msra.mxu1 %v4769_v26  ;;  %v4772_v9 = vld [vmem:[%s6434_s20 + $0x70] sm:$0xff]  }
 0x5b3   :  { %3201 = vmatprep.subr.bf16.mxu0 %v3186_v37  ;;  %v4773_v37 = vld [vmem:[%s6434_s20 + $0x30] sm:$0xff]  }
 0x5b4   :  { %3202 = vmatpush1.bf16.msra.mxu0 %v3185_v36 }
 0x5b5   :  { %3203 = vmatprep.subr.bf16.mxu0 %v3188_v41  ;;  %v4770_v41 = vld [vmem:[%s6434_s20 + $0x68] sm:$0xff]  }
 0x5b6   :  { %4328 = vmatprep.subr.bf16.mxu1 %v4770_v41 }
 0x5b8   :  { %3204 = vmatpush1.bf16.msra.mxu0 %v3187_v35 }
 0x5bd   :  { %v4614_v32 = vpop.f32.mrb[148].mxu1 }
 0x5be   :  { %v3138_v33 = vpop.f32.mrb[149].mxu1 }
 0x5bf   :  { %v4615_v63 = vpop.f32.mrb[150].mxu1 }
 0x5c0   :  { %v3192_v19 = vpack.c.bf16 %v4615_v63, %v4614_v32  ;;  %v3141_v49 = vpop.f32.mrb[151].mxu1  ;;  %v4774_v32 = vld [vmem:[%s6434_s20 + $0x78] sm:$0xff]   ;;  %v6268_v63 = vld [vmem:[%s6431_s17] ss:$0 sm:$0xff] }
 0x5c1   :  { %v3190_v27 = vpack.c.bf16 %v3141_v49, %v3138_v33  ;;  %v4775_v33 = vld [vmem:[%s6434_s20 + $0x38] sm:$0xff]  }
 0x5c3   :  { %3205 = vmatprep.subr.bf16.mxu0 %v3190_v27  ;;  %v6278_v27 = vld [vmem:[%s6431_s17 + $0x1] ss:$0 sm:$0xff] }
 0x5c4   :  { %3206 = vmatpush1.bf16.msra.mxu0 %v3189_v42  ;;  %v4777_v42 = vld [vmem:[%s6465_s7 + $0x8] sm:$0xff]  }
 0x5c5   :  { %3207 = vmatprep.subr.bf16.mxu0 %v3192_v19  ;;  %v6273_v19 = vld [vmem:[%s6433_s19] ss:$0 sm:$0xff] }
 0x5c8   :  { %3208 = vmatpush1.bf16.msra.mxu0 %v3191_v18  ;;  %v4776_v18 = vld [vmem:[%s6465_s7] sm:$0xff]  }
 0x5cd   :  { %v4618_v62 = vpop.f32.mrb[152].mxu1 }
 0x5ce   :  { %v3154_v16 = vpop.f32.mrb[153].mxu1 }
 0x5cf   :  { %v4619_v24 = vpop.f32.mrb[154].mxu1 }
 0x5d0   :  { %v3196_v13 = vpack.c.bf16 %v4619_v24, %v4618_v62  ;;  %v3157_v56 = vpop.f32.mrb[155].mxu1  ;;  %v6284_v24 = vld [vmem:[%s6433_s19 + $0x1] ss:$0 sm:$0xff] }
 0x5d1   :  { %v3194_v52 = vpack.c.bf16 %v3157_v56, %v3154_v16 }
 0x5d3   :  { %3209 = vmatprep.subr.bf16.mxu0 %v3194_v52 }
 0x5d4   :  { %3210 = vmatpush1.bf16.msra.mxu0 %v3193_v28  ;;  %v4779_v28 = vld [vmem:[%s6465_s7 + $0x18] sm:$0xff]  }
 0x5d5   :  { %3211 = vmatprep.subr.bf16.mxu0 %v3196_v13 }
 0x5d8   :  { %3212 = vmatpush1.bf16.msra.mxu0 %v3195_v44  ;;  %v4778_v44 = vld [vmem:[%s6465_s7 + $0x10] sm:$0xff]  }
 0x5dd   :  { %v4622_v35 = vpop.f32.mrb[156].mxu1 }
 0x5de   :  { %v3170_v36 = vpop.f32.mrb[157].mxu1 }
 0x5df   :  { %v4623_v12 = vpop.f32.mrb[158].mxu1 }
 0x5e0   :  { %v3200_v6 = vpack.c.bf16 %v4623_v12, %v4622_v35  ;;  %v3173_v58 = vpop.f32.mrb[159].mxu1 }
 0x5e1   :  { %v3198_v0 = vpack.c.bf16 %v3173_v58, %v3170_v36 }
 0x5e3   :  { %3213 = vmatprep.subr.bf16.mxu0 %v3198_v0 }
 0x5e4   :  { %3214 = vmatpush1.bf16.msra.mxu0 %v3197_v29  ;;  %v4781_v29 = vld [vmem:[%s6465_s7 + $0x28] sm:$0xff]  }
 0x5e5   :  { %3215 = vmatprep.subr.bf16.mxu0 %v3200_v6 }
 0x5e8   :  { %3216 = vmatpush1.bf16.msra.mxu0 %v3199_v54  ;;  %v4780_v54 = vld [vmem:[%s6465_s7 + $0x20] sm:$0xff]  }
 0x5eb   :  { %3234 = vmatmul.mubr.bf16.vlgmr.msra.gmra.mrb[160].mxu0 %v4776_v18 }
 0x5ec   :  { %3243 = vmatprep.mubr.bf16.mxu0 %v6472_v8 }
 0x5f3   :  { %3244 = vmatmul.mubr.bf16.gmra.mrb[164].mxu0 %v4777_v42 }
 0x5f4   :  { %3253 = vmatprep.mubr.bf16.mxu0 %v6472_v8 }
 0x5fb   :  { %3254 = vmatmul.mubr.bf16.gmra.mrb[168].mxu0 %v4778_v44 }
 0x5fc   :  { %3263 = vmatprep.mubr.bf16.mxu0 %v6472_v8 }
 0x603   :  { %3264 = vmatmul.mubr.bf16.gmra.mrb[172].mxu0 %v4779_v28 }
 0x604   :  { %3273 = vmatprep.mubr.bf16.mxu0 %v6472_v8 }
 0x60b   :  { %3274 = vmatmul.mubr.bf16.gmra.mrb[176].mxu0 %v4780_v54 }
 0x60c   :  { %3283 = vmatprep.mubr.bf16.mxu0 %v6472_v8 }
 0x613   :  { %3284 = vmatmul.mubr.bf16.gmra.mrb[180].mxu0 %v4781_v29 }
 0x614   :  { %3293 = vmatprep.mubr.bf16.mxu0 %v6472_v8 }
 0x61b   :  { %3294 = vmatmul.mubr.bf16.gmra.mrb[184].mxu0 %v4782_v34 }
 0x61c   :  { %3303 = vmatprep.mubr.bf16.mxu0 %v6472_v8  ;;  %v4771_v8 = vld [vmem:[%s6434_s20 + $0x28] sm:$0xff]  }
 0x61d   :  { %4329 = vmatpush3.bf16.msra.mxu1 %v4771_v8 }
 0x61e   :  { %4330 = vmatprep.subr.bf16.mxu1 %v4772_v9 }
 0x621   :  { %4331 = vmatpush3.bf16.msra.mxu1 %v4773_v37 }
 0x622   :  { %4332 = vmatprep.subr.bf16.mxu1 %v4774_v32 }
 0x623   :  { %3304 = vmatmul.mubr.bf16.gmra.mrb[188].mxu0 %v4783_v38 }
 0x625   :  { %4333 = vmatpush3.bf16.msra.mxu1 %v4775_v33 }
 0x6be   :  { %v3235_v49 = vpop.f32.mrb[160].mxu0 }
 0x6bf   :  { %v3321_v62 = vmul.f32 %v6268_v63, %v3235_v49  ;;  %v3237_v16 = vpop.f32.mrb[161].mxu0 }
 0x6c0   :  { %v3384_v13 = vmul.f32 %v6273_v19, %v3237_v16  ;;  %v3239_v56 = vpop.f32.mrb[162].mxu0 }
 0x6c1   :  { %v3345_v52 = vadd.f32 %v6278_v27, %v3321_v62  ;;  %v3322_v35 = vmul.f32 %v6268_v63, %v3239_v56  ;;  %v3241_v36 = vpop.f32.mrb[163].mxu0 }
 0x6c2   :  { %v3408_v12 = vadd.f32 %v6284_v24, %v3384_v13  ;;  %v3385_v6 = vmul.f32 %v6273_v19, %v3241_v36 }
 0x6c3   :  { %v3361_v58 = vmax.f32 %v3345_v52, 0.0  ;;  %v3346_v0 = vadd.f32 %v6278_v27, %v3322_v35 }
 0x6c4   :  { %v3424_v18 = vmax.f32 %v3408_v12, 0.0  ;;  %v3409_v42 = vadd.f32 %v6284_v24, %v3385_v6 }
 0x6c5   :  { %v3440_v44 = vadd.f32 %v3361_v58, %v2831_v53  ;;  %v3362_v28 = vmax.f32 %v3346_v0, 0.0 }
 0x6c6   :  { %v3425_v54 = vmax.f32 %v3409_v42, 0.0  ;;  %v3245_v29 = vpop.f32.mrb[164].mxu0 }
 0x6c7   :  { %v3456_v34 = vadd.f32 %v3440_v44, %v3424_v18  ;;  %v3441_v38 = vadd.f32 %v3362_v28, %v2832_v31  ;;  %v3323_v48 = vmul.f32 %v6268_v63, %v3245_v29  ;;  %v3247_v26 = vpop.f32.mrb[165].mxu0 }
 0x6c8   :  { %v3386_v41 = vmul.f32 %v6273_v19, %v3247_v26  ;;  %v3249_v8 = vpop.f32.mrb[166].mxu0 }
 0x6c9   :  { %v3472_v9 = vpack.c.bf16 %v3441_v38, %v3440_v44  ;;  %v3457_v37 = vadd.f32 %v3441_v38, %v3425_v54  ;;  %v3347_v32 = vadd.f32 %v6278_v27, %v3323_v48  ;;  %v3324_v25 = vmul.f32 %v6268_v63, %v3249_v8  ;;  %v3251_v53 = vpop.f32.mrb[167].mxu0 }
 0x6ca   :  { %v3410_v33 = vadd.f32 %v6284_v24, %v3386_v41  ;;  %v3387_v49 = vmul.f32 %v6273_v19, %v3251_v53 }
 0x6cb   :  { %v3363_v62 = vmax.f32 %v3347_v32, 0.0  ;;  %v3348_v43 = vadd.f32 %v6278_v27, %v3324_v25  ;;  %v3473_v31 = vpack.c.bf16 %v3457_v37, %v3456_v34 }
 0x6cc   :  { %v3426_v16 = vmax.f32 %v3410_v33, 0.0  ;;  %v3411_v13 = vadd.f32 %v6284_v24, %v3387_v49 }
 0x6cd   :  { %v3442_v56 = vadd.f32 %v3363_v62, %v2833_v59  ;;  %v3364_v52 = vmax.f32 %v3348_v43, 0.0  ;;  %3655 = vmatprep.mubr.bf16.mxu1 %v3473_v31 }
 0x6ce   :  { %v3427_v35 = vmax.f32 %v3411_v13, 0.0  ;;  %v3255_v36 = vpop.f32.mrb[168].mxu0  ;;  %3656 = vmatmul.mubr.bf16.vlgmr.msra.gmra.mrb[160].mxu1 %v3472_v9 }
 0x6cf   :  { %v3458_v12 = vadd.f32 %v3442_v56, %v3426_v16  ;;  %v3443_v6 = vadd.f32 %v3364_v52, %v2834_v50  ;;  %v3325_v58 = vmul.f32 %v6268_v63, %v3255_v36  ;;  %v3257_v0 = vpop.f32.mrb[169].mxu0 }
 0x6d0   :  { %v3388_v18 = vmul.f32 %v6273_v19, %v3257_v0  ;;  %v3259_v42 = vpop.f32.mrb[170].mxu0 }
 0x6d1   :  { %v3459_v44 = vadd.f32 %v3443_v6, %v3427_v35  ;;  %v3349_v28 = vadd.f32 %v6278_v27, %v3325_v58  ;;  %v3326_v20 = vmul.f32 %v6268_v63, %v3259_v42  ;;  %v3261_v59 = vpop.f32.mrb[171].mxu0  ;;  %v3474_v54 = vpack.c.bf16 %v3443_v6, %v3442_v56 }
 0x6d2   :  { %v3412_v29 = vadd.f32 %v6284_v24, %v3388_v18  ;;  %v3389_v34 = vmul.f32 %v6273_v19, %v3261_v59 }
 0x6d3   :  { %v3365_v38 = vmax.f32 %v3349_v28, 0.0  ;;  %v3350_v51 = vadd.f32 %v6278_v27, %v3326_v20  ;;  %v3475_v50 = vpack.c.bf16 %v3459_v44, %v3458_v12 }
 0x6d4   :  { %v3428_v48 = vmax.f32 %v3412_v29, 0.0  ;;  %v3413_v26 = vadd.f32 %v6284_v24, %v3389_v34 }
 0x6d5   :  { %v3444_v41 = vadd.f32 %v3365_v38, %v2835_v11  ;;  %v3366_v8 = vmax.f32 %v3350_v51, 0.0  ;;  %3663 = vmatprep.mubr.bf16.mxu1 %v3475_v50 }
 0x6d6   :  { %v3429_v9 = vmax.f32 %v3413_v26, 0.0  ;;  %v3265_v37 = vpop.f32.mrb[172].mxu0  ;;  %3664 = vmatmul.mubr.bf16.gmra.mrb[164].mxu1 %v3474_v54 }
 0x6d7   :  { %v3460_v32 = vadd.f32 %v3444_v41, %v3428_v48  ;;  %v3445_v25 = vadd.f32 %v3366_v8, %v2836_v7  ;;  %v3327_v53 = vmul.f32 %v6268_v63, %v3265_v37  ;;  %v3267_v33 = vpop.f32.mrb[173].mxu0 }
 0x6d8   :  { %v3390_v49 = vmul.f32 %v6273_v19, %v3267_v33  ;;  %v3269_v62 = vpop.f32.mrb[174].mxu0 }
 0x6d9   :  { %v3461_v43 = vadd.f32 %v3445_v25, %v3429_v9  ;;  %v3351_v31 = vadd.f32 %v6278_v27, %v3327_v53  ;;  %v3328_v2 = vmul.f32 %v6268_v63, %v3269_v62  ;;  %v3271_v11 = vpop.f32.mrb[175].mxu0  ;;  %v3476_v16 = vpack.c.bf16 %v3445_v25, %v3444_v41 }
 0x6da   :  { %v3414_v13 = vadd.f32 %v6284_v24, %v3390_v49  ;;  %v3391_v56 = vmul.f32 %v6273_v19, %v3271_v11 }
 0x6db   :  { %v3367_v52 = vmax.f32 %v3351_v31, 0.0  ;;  %v3352_v17 = vadd.f32 %v6278_v27, %v3328_v2  ;;  %v3477_v7 = vpack.c.bf16 %v3461_v43, %v3460_v32 }
 0x6dc   :  { %v3430_v35 = vmax.f32 %v3414_v13, 0.0  ;;  %v3415_v36 = vadd.f32 %v6284_v24, %v3391_v56 }
 0x6dd   :  { %v3446_v12 = vadd.f32 %v3367_v52, %v2837_v23  ;;  %v3368_v6 = vmax.f32 %v3352_v17, 0.0  ;;  %3671 = vmatprep.mubr.bf16.mxu1 %v3477_v7 }
 0x6de   :  { %v3431_v58 = vmax.f32 %v3415_v36, 0.0  ;;  %v3275_v0 = vpop.f32.mrb[176].mxu0  ;;  %3672 = vmatmul.mubr.bf16.gmra.mrb[168].mxu1 %v3476_v16 }
 0x6df   :  { %v3462_v18 = vadd.f32 %v3446_v12, %v3430_v35  ;;  %v3447_v42 = vadd.f32 %v3368_v6, %v2838_v1  ;;  %v3329_v44 = vmul.f32 %v6268_v63, %v3275_v0  ;;  %v3277_v28 = vpop.f32.mrb[177].mxu0 }
 0x6e0   :  { %v3392_v20 = vmul.f32 %v6273_v19, %v3277_v28  ;;  %v3279_v59 = vpop.f32.mrb[178].mxu0 }
 0x6e1   :  { %v3463_v54 = vadd.f32 %v3447_v42, %v3431_v58  ;;  %v3353_v29 = vadd.f32 %v6278_v27, %v3329_v44  ;;  %v3330_v10 = vmul.f32 %v6268_v63, %v3279_v59  ;;  %v3281_v23 = vpop.f32.mrb[179].mxu0  ;;  %v3478_v34 = vpack.c.bf16 %v3447_v42, %v3446_v12 }
 0x6e2   :  { %v3416_v38 = vadd.f32 %v6284_v24, %v3392_v20  ;;  %v3393_v51 = vmul.f32 %v6273_v19, %v3281_v23 }
 0x6e3   :  { %v3369_v50 = vmax.f32 %v3353_v29, 0.0  ;;  %v3354_v46 = vadd.f32 %v6278_v27, %v3330_v10  ;;  %v3479_v1 = vpack.c.bf16 %v3463_v54, %v3462_v18 }
 0x6e4   :  { %v3432_v48 = vmax.f32 %v3416_v38, 0.0  ;;  %v3417_v26 = vadd.f32 %v6284_v24, %v3393_v51 }
 0x6e5   :  { %v3448_v41 = vadd.f32 %v3369_v50, %v2839_v39  ;;  %v3370_v8 = vmax.f32 %v3354_v46, 0.0  ;;  %3679 = vmatprep.mubr.bf16.mxu1 %v3479_v1 }
 0x6e6   :  { %v3433_v9 = vmax.f32 %v3417_v26, 0.0  ;;  %v3285_v37 = vpop.f32.mrb[180].mxu0  ;;  %3680 = vmatmul.mubr.bf16.gmra.mrb[172].mxu1 %v3478_v34 }
 0x6e7   :  { %v3464_v32 = vadd.f32 %v3448_v41, %v3432_v48  ;;  %v3449_v25 = vadd.f32 %v3370_v8, %v2840_v15  ;;  %v3331_v53 = vmul.f32 %v6268_v63, %v3285_v37  ;;  %v3287_v33 = vpop.f32.mrb[181].mxu0 }
 0x6e8   :  { %v3394_v49 = vmul.f32 %v6273_v19, %v3287_v33  ;;  %v3289_v62 = vpop.f32.mrb[182].mxu0 }
 0x6e9   :  { %v3465_v43 = vadd.f32 %v3449_v25, %v3433_v9  ;;  %v3355_v31 = vadd.f32 %v6278_v27, %v3331_v53  ;;  %v3332_v61 = vmul.f32 %v6268_v63, %v3289_v62  ;;  %v3291_v39 = vpop.f32.mrb[183].mxu0  ;;  %v3480_v2 = vpack.c.bf16 %v3449_v25, %v3448_v41 }
 0x6ea   :  { %v3418_v11 = vadd.f32 %v6284_v24, %v3394_v49  ;;  %v3395_v16 = vmul.f32 %v6273_v19, %v3291_v39 }
 0x6eb   :  { %v3371_v13 = vmax.f32 %v3355_v31, 0.0  ;;  %v3356_v30 = vadd.f32 %v6278_v27, %v3332_v61  ;;  %v3481_v15 = vpack.c.bf16 %v3465_v43, %v3464_v32 }
 0x6ec   :  { %v3434_v56 = vmax.f32 %v3418_v11, 0.0  ;;  %v3419_v52 = vadd.f32 %v6284_v24, %v3395_v16 }
 0x6ed   :  { %v3450_v17 = vadd.f32 %v3371_v13, %v2841_v40  ;;  %v3372_v7 = vmax.f32 %v3356_v30, 0.0  ;;  %3687 = vmatprep.mubr.bf16.mxu1 %v3481_v15 }
 0x6ee   :  { %v3435_v35 = vmax.f32 %v3419_v52, 0.0  ;;  %v3295_v36 = vpop.f32.mrb[184].mxu0  ;;  %3688 = vmatmul.mubr.bf16.gmra.mrb[176].mxu1 %v3480_v2 }
 0x6ef   :  { %v3466_v12 = vadd.f32 %v3450_v17, %v3434_v56  ;;  %v3451_v6 = vadd.f32 %v3372_v7, %v2842_v47  ;;  %v3333_v58 = vmul.f32 %v6268_v63, %v3295_v36  ;;  %v3297_v0 = vpop.f32.mrb[185].mxu0 }
 0x6f0   :  { %v3396_v18 = vmul.f32 %v6273_v19, %v3297_v0  ;;  %v3299_v42 = vpop.f32.mrb[186].mxu0 }
 0x6f1   :  { %v3467_v44 = vadd.f32 %v3451_v6, %v3435_v35  ;;  %v3357_v28 = vadd.f32 %v6278_v27, %v3333_v58  ;;  %v3334_v14 = vmul.f32 %v6268_v63, %v3299_v42  ;;  %v3301_v40 = vpop.f32.mrb[187].mxu0  ;;  %v3482_v20 = vpack.c.bf16 %v3451_v6, %v3450_v17 }
 0x6f2   :  { %v3420_v59 = vadd.f32 %v6284_v24, %v3396_v18  ;;  %v3397_v54 = vmul.f32 %v6273_v19, %v3301_v40 }
 0x6f3   :  { %v3373_v29 = vmax.f32 %v3357_v28, 0.0  ;;  %v3358_v45 = vadd.f32 %v6278_v27, %v3334_v14  ;;  %v3483_v47 = vpack.c.bf16 %v3467_v44, %v3466_v12 }
 0x6f4   :  { %v3436_v10 = vmax.f32 %v3420_v59, 0.0  ;;  %v3421_v23 = vadd.f32 %v6284_v24, %v3397_v54 }
 0x6f5   :  { %v3452_v34 = vadd.f32 %v3373_v29, %v2843_v5  ;;  %v3374_v38 = vmax.f32 %v3358_v45, 0.0  ;;  %3695 = vmatprep.mubr.bf16.mxu1 %v3483_v47 }
 0x6f6   :  { %v3437_v51 = vmax.f32 %v3421_v23, 0.0  ;;  %v3305_v50 = vpop.f32.mrb[188].mxu0  ;;  %3696 = vmatmul.mubr.bf16.gmra.mrb[180].mxu1 %v3482_v20 }
 0x6f7   :  { %v3468_v46 = vadd.f32 %v3452_v34, %v3436_v10  ;;  %v3453_v1 = vadd.f32 %v3374_v38, %v2844_v4  ;;  %v3335_v48 = vmul.f32 %v6268_v63, %v3305_v50  ;;  %v3307_v26 = vpop.f32.mrb[189].mxu0 }
 0x6f8   :  { %v3398_v41 = vmul.f32 %v6273_v19, %v3307_v26  ;;  %v3309_v8 = vpop.f32.mrb[190].mxu0 }
 0x6f9   :  { %v3469_v9 = vadd.f32 %v3453_v1, %v3437_v51  ;;  %v3359_v37 = vadd.f32 %v6278_v27, %v3335_v48  ;;  %v3336_v60 = vmul.f32 %v6268_v63, %v3309_v8  ;;  %v3311_v5 = vpop.f32.mrb[191].mxu0  ;;  %v3484_v32 = vpack.c.bf16 %v3453_v1, %v3452_v34 }
 0x6fa   :  { %v3422_v25 = vadd.f32 %v6284_v24, %v3398_v41  ;;  %v3399_v53 = vmul.f32 %v6273_v19, %v3311_v5 }
 0x6fb   :  { %v3375_v33 = vmax.f32 %v3359_v37, 0.0  ;;  %v3360_v22 = vadd.f32 %v6278_v27, %v3336_v60  ;;  %v3485_v4 = vpack.c.bf16 %v3469_v9, %v3468_v46 }
 0x6fc   :  { %v3438_v49 = vmax.f32 %v3422_v25, 0.0  ;;  %v3423_v62 = vadd.f32 %v6284_v24, %v3399_v53  ;;  %v6384_v24 = vld [vmem:[%s6435_s21] ss:$0 sm:$0xff]  ;;  %s4809_s21 = smov [#allocation2]  }
 0x6fd   :  { %v3454_v43 = vadd.f32 %v3375_v33, %v2845_v3  ;;  %v3376_v31 = vmax.f32 %v3360_v22, 0.0  ;;  %3703 = vmatprep.mubr.bf16.mxu1 %v3485_v4  ;;  %s3741_s11 = sshll.u32 %s4809_s21, 4  ;;  %s3742_s11 = int_to_ptr.vmem [resolvable:$true] %s3741_s11 }
 0x6fe   :  { %v3439_v61 = vmax.f32 %v3423_v62, 0.0  ;;  %3704 = vmatmul.mubr.bf16.gmra.mrb[184].mxu1 %v3484_v32  ;;  %s4784_s14 = scalar_lea.vmem %s3742_s11, 2048  ;;  %p4789_p1 = scmp.lt.s32.totalorder %s3742_s11, %s3742_s11 }
 0x6ff   :  { %v3470_v63 = vadd.f32 %v3454_v43, %v3438_v49  ;;  %v3455_v39 = vadd.f32 %v3376_v31, %v2846_v21  ;;  %p4785_p0 = scmp.ne.s32.totalorder %s3742_s11, %s4784_s14  ;;  %p4790_p2 = scmp.lt.s32.totalorder %s4784_s14, %s4784_s14 }
 0x701   :  { %v3471_v2 = vadd.f32 %v3455_v39, %v3439_v61  ;;  %v3486_v19 = vpack.c.bf16 %v3455_v39, %v3454_v43  ;;  %p4791_p3 = por %p4790_p2, %p4789_p1 }
 0x703   :  { %v3487_v11 = vpack.c.bf16 %v3471_v2, %v3470_v63  ;;  %p4792_p4 = pnand %p4791_p3, %p4785_p0 }
 0x705   :  { %3711 = vmatprep.mubr.bf16.mxu1 %v3487_v11 }
 0x706   :  { %3712 = vmatmul.mubr.bf16.gmra.mrb[188].mxu1 %v3486_v19 }
 0x7a1   :  { %v4334_v27 = vpop.f32.mrb[160].mxu1 }
 0x7a2   :  { %v4335_v55 = vpop.f32.mrb[161].mxu1 }
 0x7a3   :  { %v4336_v3 = vadd.f32 %v4335_v55, %v4334_v27  ;;  %v4337_v16 = vpop.f32.mrb[162].mxu1 }
 0x7a4   :  { %v4338_v13 = vpop.f32.mrb[163].mxu1 }
 0x7a5   :  { %v3658_v30 = vadd.f32 %v4336_v3, %v6384_v24  ;;  %v4339_v15 = vadd.f32 %v4338_v13, %v4337_v16 }
 0x7a7   :  { %3720 = vst [vmem:[#allocation2] sm:$0xff] %v3658_v30  ;;  %v3661_v57 = vadd.f32 %v4339_v15, %v6384_v24 }
 0x7a9   :  { %3721 = vst [vmem:[#allocation2 + $0x8] sm:$0xff] %v3661_v57  ;;  %v4340_v21 = vpop.f32.mrb[164].mxu1 }
 0x7aa   :  { %v4341_v56 = vpop.f32.mrb[165].mxu1 }
 0x7ab   :  { %v4342_v52 = vadd.f32 %v4341_v56, %v4340_v21  ;;  %v4343_v17 = vpop.f32.mrb[166].mxu1 }
 0x7ac   :  { %v4344_v7 = vpop.f32.mrb[167].mxu1 }
 0x7ad   :  { %v3666_v35 = vadd.f32 %v4342_v52, %v6384_v24  ;;  %v4345_v36 = vadd.f32 %v4344_v7, %v4343_v17 }
 0x7af   :  { %3722 = vst [vmem:[#allocation2 + $0x10] sm:$0xff] %v3666_v35  ;;  %v3669_v12 = vadd.f32 %v4345_v36, %v6384_v24 }
 0x7b1   :  { %3723 = vst [vmem:[#allocation2 + $0x18] sm:$0xff] %v3669_v12  ;;  %v4346_v6 = vpop.f32.mrb[168].mxu1 }
 0x7b2   :  { %v4347_v58 = vpop.f32.mrb[169].mxu1 }
 0x7b3   :  { %v4348_v0 = vadd.f32 %v4347_v58, %v4346_v6  ;;  %v4349_v18 = vpop.f32.mrb[170].mxu1 }
 0x7b4   :  { %v4350_v42 = vpop.f32.mrb[171].mxu1 }
 0x7b5   :  { %v3674_v44 = vadd.f32 %v4348_v0, %v6384_v24  ;;  %v4351_v28 = vadd.f32 %v4350_v42, %v4349_v18 }
 0x7b7   :  { %3724 = vst [vmem:[#allocation2 + $0x20] sm:$0xff] %v3674_v44  ;;  %v3677_v14 = vadd.f32 %v4351_v28, %v6384_v24 }
 0x7b9   :  { %3725 = vst [vmem:[#allocation2 + $0x28] sm:$0xff] %v3677_v14  ;;  %v4352_v40 = vpop.f32.mrb[172].mxu1 }
 0x7ba   :  { %v4353_v20 = vpop.f32.mrb[173].mxu1 }
 0x7bb   :  { %v4354_v59 = vadd.f32 %v4353_v20, %v4352_v40  ;;  %v4355_v54 = vpop.f32.mrb[174].mxu1 }
 0x7bc   :  { %v4356_v29 = vpop.f32.mrb[175].mxu1 }
 0x7bd   :  { %v3682_v45 = vadd.f32 %v4354_v59, %v6384_v24  ;;  %v4357_v47 = vadd.f32 %v4356_v29, %v4355_v54 }
 0x7bf   :  { %3726 = vst [vmem:[#allocation2 + $0x30] sm:$0xff] %v3682_v45  ;;  %v3685_v10 = vadd.f32 %v4357_v47, %v6384_v24 }
 0x7c1   :  { %3727 = vst [vmem:[#allocation2 + $0x38] sm:$0xff] %v3685_v10  ;;  %v4358_v23 = vpop.f32.mrb[176].mxu1 }
 0x7c2   :  { %v4359_v34 = vpop.f32.mrb[177].mxu1 }
 0x7c3   :  { %v4360_v38 = vadd.f32 %v4359_v34, %v4358_v23  ;;  %v4361_v51 = vpop.f32.mrb[178].mxu1 }
 0x7c4   :  { %v4362_v50 = vpop.f32.mrb[179].mxu1 }
 0x7c5   :  { %v3690_v46 = vadd.f32 %v4360_v38, %v6384_v24  ;;  %v4363_v1 = vadd.f32 %v4362_v50, %v4361_v51 }
 0x7c7   :  { %3728 = vst [vmem:[#allocation2 + $0x40] sm:$0xff] %v3690_v46  ;;  %v3693_v48 = vadd.f32 %v4363_v1, %v6384_v24 }
 0x7c9   :  { %3729 = vst [vmem:[#allocation2 + $0x48] sm:$0xff] %v3693_v48  ;;  %v4364_v26 = vpop.f32.mrb[180].mxu1 }
 0x7ca   :  { %v4365_v41 = vpop.f32.mrb[181].mxu1 }
 0x7cb   :  { %v4366_v8 = vadd.f32 %v4365_v41, %v4364_v26  ;;  %v4367_v9 = vpop.f32.mrb[182].mxu1 }
 0x7cc   :  { %v4368_v37 = vpop.f32.mrb[183].mxu1 }
 0x7cd   :  { %v3698_v60 = vadd.f32 %v4366_v8, %v6384_v24  ;;  %v4369_v5 = vadd.f32 %v4368_v37, %v4367_v9 }
 0x7cf   :  { %3730 = vst [vmem:[#allocation2 + $0x50] sm:$0xff] %v3698_v60  ;;  %v3701_v32 = vadd.f32 %v4369_v5, %v6384_v24 }
 0x7d1   :  { %3731 = vst [vmem:[#allocation2 + $0x58] sm:$0xff] %v3701_v32  ;;  %v4370_v25 = vpop.f32.mrb[184].mxu1 }
 0x7d2   :  { %v4371_v53 = vpop.f32.mrb[185].mxu1 }
 0x7d3   :  { %v4372_v33 = vadd.f32 %v4371_v53, %v4370_v25  ;;  %v4373_v22 = vpop.f32.mrb[186].mxu1 }
 0x7d4   :  { %v4374_v4 = vpop.f32.mrb[187].mxu1 }
 0x7d5   :  { %v3706_v49 = vadd.f32 %v4372_v33, %v6384_v24  ;;  %v4375_v62 = vadd.f32 %v4374_v4, %v4373_v22 }
 0x7d7   :  { %3732 = vst [vmem:[#allocation2 + $0x60] sm:$0xff] %v3706_v49  ;;  %v3709_v43 = vadd.f32 %v4375_v62, %v6384_v24 }
 0x7d9   :  { %3733 = vst [vmem:[#allocation2 + $0x68] sm:$0xff] %v3709_v43  ;;  %v4376_v31 = vpop.f32.mrb[188].mxu1 }
 0x7da   :  { %v4377_v61 = vpop.f32.mrb[189].mxu1 }
 0x7db   :  { %v4378_v63 = vadd.f32 %v4377_v61, %v4376_v31  ;;  %v4379_v39 = vpop.f32.mrb[190].mxu1 }
 0x7dc   :  { %v4380_v2 = vpop.f32.mrb[191].mxu1 }
 0x7dd   :  { %v3714_v19 = vadd.f32 %v4378_v63, %v6384_v24  ;;  %v4381_v11 = vadd.f32 %v4380_v2, %v4379_v39 }
 0x7df   :  { %3734 = vst [vmem:[#allocation2 + $0x70] sm:$0xff] %v3714_v19  ;;  %v3717_v27 = vadd.f32 %v4381_v11, %v6384_v24 }
 0x7e1   :  { %3735 = vst [vmem:[#allocation2 + $0x78] sm:$0xff] %v3717_v27 }
 0x7e2   :  { %4795 = shalt.err (!%p4792_p4)
}
 0x7e3   :  { %s4796_s10 = scalar_lea.hbm %s6436_s22, 2048 }
 0x7e4   :  { %p4797_p5 = scmp.ne.s32.totalorder %s6436_s22, %s4796_s10  ;;  %p4800_p6 = scmp.lt.u32.totalorder %s4796_s10, %s6436_s22 }
 0x7e6   :  { %p4802_p7 = pnand %p4800_p6, %p4797_p5 }
 0x7e8   :  { %4805 = shalt.err (!%p4802_p7)
}
 0x7e9   :  { %s4810_s26 = smov 128   ;;  %s4811_s2 = smov 8  }
 0x7ea   :  { %3747 = dma.vmem_to_hbm [thread:$0]  %s3742_s11, 2048, %s6436_s22, [#allocation3], %s4810_s26, %s4810_s26, %s4811_s2  }
 0x7eb   :  { %4806 = dma.done.wait [#allocation3], 2048  }
 0x7ec   :  { %4807 = vsyncadd [#allocation3], 4294965248 }
 0x7ed   :  { %3751 = vsyncpa [#allocation3], 1 }

</bundles_post_ra>
